<compile_context>
chip_gen: v5e
topology: v5e:2x2
jax: 0.10.0
libtpu: 0.0.40
codegen_flags: <defaults>
</compile_context>

<pallas_src>
import functools

import jax
import jax.numpy as jnp
import numpy as np
from jax import lax
from jax.experimental import pallas as pl
from jax.experimental.pallas import tpu as pltpu

BN_EPS = 1e-5
# Scoped-VMEM cap; leaves headroom on v7x (64 MiB physical), plenty on v5e/v6e.
_VMEM_LIMIT = 64 * 1024 * 1024


def _cparams():
    return pltpu.CompilerParams(
        dimension_semantics=("parallel",),
        vmem_limit_bytes=_VMEM_LIMIT,
    )


def _round_up(x, n):
    return ((x + n - 1) // n) * n


# ---------------------------------------------------------------------------
# Optional single-buffering of constant-index inputs (weights / BN packs).
# pipeline_mode=pl.Buffered(1) halves their VMEM footprint; probe once so the
# script still runs cleanly on jax/libtpu versions without TPU support for it.
# ---------------------------------------------------------------------------
def _probe_buffered_support():
    if not hasattr(pl, "Buffered"):
        return False

    def _copy_kernel(x_ref, o_ref):
        o_ref[...] = x_ref[...]

    try:
        fn = pl.pallas_call(
            _copy_kernel,
            out_shape=jax.ShapeDtypeStruct((16, 128), jnp.float32),
            grid_spec=pl.GridSpec(
                grid=(2,),
                in_specs=[pl.BlockSpec((8, 128), lambda i: (0, 0),
                                       pipeline_mode=pl.Buffered(1))],
                out_specs=pl.BlockSpec((8, 128), lambda i: (i, 0)),
            ),
        )
        out = jax.block_until_ready(fn(jnp.ones((8, 128), jnp.float32)))
        return bool(jnp.all(out == 1.0))
    except Exception:  # pragma: no cover - depends on jax/libtpu version
        return False


_BUFFERED_OK = _probe_buffered_support()


def _const_spec(block_shape, index_map):
    """BlockSpec for an input whose block never changes across the grid."""
    if _BUFFERED_OK:
        return pl.BlockSpec(block_shape, index_map, pipeline_mode=pl.Buffered(1))
    return pl.BlockSpec(block_shape, index_map)


def _pick_m_tile(m, target):
    """Multiple-of-16 row tile <= target; caller pads M up to a tile multiple."""
    target = max(16, (target // 16) * 16)
    if m <= target:
        return _round_up(m, 16)
    for t in range(target, 15, -16):
        if m % t == 0:
            return t
    # No multiple-of-16 divisor <= target: keep the target tile; the caller
    # zero-pads M and the conv3 kernel masks the tail out of the BN stats.
    return target


# ---------------------------------------------------------------------------
# In-kernel helpers
# ---------------------------------------------------------------------------
def _write_stats(st_ref, y):
    """One aligned (8, C) store: row0 = per-channel sum, row1 = sum of squares."""
    c = y.shape[-1]
    stats = jnp.concatenate(
        [jnp.sum(y, axis=0, keepdims=True),
         jnp.sum(y * y, axis=0, keepdims=True),
         jnp.zeros((6, c), jnp.float32)],
        axis=0)
    st_ref[0] = stats


def _bn_relu_bf16(y, bn):
    """Folded BN (+ReLU) applied in f32, returned as the bf16 MXU input."""
    z = jnp.maximum(y.astype(jnp.float32) * bn[0:1, :] + bn[1:2, :], 0.0)
    return z.astype(jnp.bfloat16)


# ---------------------------------------------------------------------------
# Kernel 1: conv1 (1x1, stride) + downsample 1x1 conv fused (shared X tile),
#           each emitting bf16 outputs + per-tile BN partial stats (f32).
# ---------------------------------------------------------------------------
def _conv1_ds_kernel(x_ref, w1_ref, wd_ref, y1_ref, yd_ref, s1_ref, sd_ref):
    x = x_ref[...]                                            # (Mt, Cin) bf16
    y1 = jnp.dot(x, w1_ref[...], preferred_element_type=jnp.float32)
    yd = jnp.dot(x, wd_ref[...], preferred_element_type=jnp.float32)
    y1_ref[...] = y1.astype(jnp.bfloat16)
    yd_ref[...] = yd.astype(jnp.bfloat16)
    # Zero-padded tail rows (if any) contribute exactly 0 to both stats
    # (zero input rows, no conv bias in the kernel path) -> no masking needed.
    _write_stats(s1_ref, y1)
    _write_stats(sd_ref, yd)


def conv1_and_downsample(x2d_bf16, w1, wd, m_tile):
    m_pad, c_in = x2d_bf16.shape
    c_mid, c_exp = w1.shape[1], wd.shape[1]
    t = m_pad // m_tile
    return pl.pallas_call(
        _conv1_ds_kernel,
        out_shape=(
            jax.ShapeDtypeStruct((m_pad, c_mid), jnp.bfloat16),
            jax.ShapeDtypeStruct((m_pad, c_exp), jnp.bfloat16),
            jax.ShapeDtypeStruct((t, 8, c_mid), jnp.float32),
            jax.ShapeDtypeStruct((t, 8, c_exp), jnp.float32),
        ),
        grid_spec=pl.GridSpec(
            grid=(t,),
            in_specs=[
                pl.BlockSpec((m_tile, c_in), lambda i: (i, 0)),
                _const_spec((c_in, c_mid), lambda i: (0, 0)),
                _const_spec((c_in, c_exp), lambda i: (0, 0)),
            ],
            out_specs=(
                pl.BlockSpec((m_tile, c_mid), lambda i: (i, 0)),
                pl.BlockSpec((m_tile, c_exp), lambda i: (i, 0)),
                pl.BlockSpec((1, 8, c_mid), lambda i: (i, 0, 0)),
                pl.BlockSpec((1, 8, c_exp), lambda i: (i, 0, 0)),
            ),
        ),
        compiler_params=_cparams(),
    )(x2d_bf16, w1, wd)


# ---------------------------------------------------------------------------
# Kernel 2: 3x3 conv (stride 1, pad 1), bn1+relu folded into the prologue.
# The bn'd tile is written into a zero-halo VMEM scratch; the 9 shifted taps
# (column-edge masked via in-kernel iota masks) are stacked into a
# (R, 9*c_mid) slab and contracted with the (9*c_mid, c_out) weight in a
# single MXU matmul.  Only the compact interior result is stored.
# ---------------------------------------------------------------------------
def _conv3x3_kernel(y1_ref, bn1_ref, w2_ref, y2_ref, s2_ref, apad_ref, cat_ref,
                    *, ho, wo, pad_top):
    r = ho * wo
    c_mid = y1_ref.shape[-1]
    # Prologue: folded bn1 + relu, straight into the zero-halo scratch.
    a = _bn_relu_bf16(y1_ref[0], bn1_ref[...])
    apad_ref[0:pad_top, :] = jnp.zeros((pad_top, c_mid), jnp.bfloat16)
    apad_ref[pad_top + r:pad_top + r + pad_top, :] = jnp.zeros(
        (pad_top, c_mid), jnp.bfloat16)
    apad_ref[pad_top:pad_top + r, :] = a
    # In-kernel column-boundary masks (left / right image edge).
    w_idx = lax.broadcasted_iota(jnp.int32, (r, 1), 0) % wo
    mask_l = (w_idx >= 1).astype(jnp.bfloat16)          # tap reads column w-1
    mask_r = (w_idx <= wo - 2).astype(jnp.bfloat16)     # tap reads column w+1
    # Stack the 9 shifted taps along channels -> one K = 9*c_mid MXU matmul.
    for kh in range(3):
        for kw in range(3):
            k = kh * 3 + kw
            start = pad_top + (kh - 1) * wo + (kw - 1)  # static shift per tap
            tap = apad_ref[start:start + r, :]
            if kw == 0:
                tap = tap * mask_l
            elif kw == 2:
                tap = tap * mask_r
            cat_ref[:, k * c_mid:(k + 1) * c_mid] = tap
    acc = jnp.dot(cat_ref[...], w2_ref[...], preferred_element_type=jnp.float32)
    y2_ref[0] = acc.astype(jnp.bfloat16)
    _write_stats(s2_ref, acc)


def conv2_3x3(y1_img, bn1_pack, w2_flat, ho, wo):
    n, r, c_mid = y1_img.shape
    c_out = w2_flat.shape[-1]
    pad_top = _round_up(wo + 1, 8)       # aligned zero halo above/below the data
    kernel = functools.partial(_conv3x3_kernel, ho=ho, wo=wo, pad_top=pad_top)
    return pl.pallas_call(
        kernel,
        out_shape=(
            jax.ShapeDtypeStruct((n, r, c_out), jnp.bfloat16),
            jax.ShapeDtypeStruct((n, 8, c_out), jnp.float32),
        ),
        grid_spec=pltpu.PrefetchScalarGridSpec(
            num_scalar_prefetch=0,
            grid=(n,),
            in_specs=[
                pl.BlockSpec((1, r, c_mid), lambda i: (i, 0, 0)),
                _const_spec((2, c_mid), lambda i: (0, 0)),
                _const_spec((9 * c_mid, c_out), lambda i: (0, 0)),
            ],
            out_specs=(
                pl.BlockSpec((1, r, c_out), lambda i: (i, 0, 0)),
                pl.BlockSpec((1, 8, c_out), lambda i: (i, 0, 0)),
            ),
            scratch_shapes=[
                pltpu.VMEM((r + 2 * pad_top, c_mid), jnp.bfloat16),   # zero-halo'd a
                pltpu.VMEM((r, 9 * c_mid), jnp.bfloat16),             # stacked taps
            ],
        ),
        compiler_params=_cparams(),
    )(y1_img, bn1_pack, w2_flat)


# ---------------------------------------------------------------------------
# Kernel 3: conv3 (1x1) with bn2+relu folded into the prologue, + bn3 partials.
# ---------------------------------------------------------------------------
def _conv3_kernel(y2_ref, bn2_ref, w3_ref, y3_ref, s3_ref, *, m_tile, m_real,
                  mask_tail):
    a = _bn_relu_bf16(y2_ref[...], bn2_ref[...])
    y3 = jnp.dot(a, w3_ref[...], preferred_element_type=jnp.float32)
    y3_ref[...] = y3.astype(jnp.bfloat16)
    if mask_tail:
        # Zero-padded tail rows pass through bn2's shift (non-zero), so mask
        # them out of the bn3 statistics.
        row = pl.program_id(0) * m_tile + lax.broadcasted_iota(
            jnp.int32, (m_tile, 1), 0)
        y3 = jnp.where(row < m_real, y3, 0.0)
    _write_stats(s3_ref, y3)


def conv3_with_folded_bn2(y2_2d, bn2_pack, w3, m_tile, m_real):
    m_pad, c_mid = y2_2d.shape
    c_exp = w3.shape[1]
    t = m_pad // m_tile
    kernel = functools.partial(_conv3_kernel, m_tile=m_tile, m_real=m_real,
                               mask_tail=(m_pad != m_real))
    return pl.pallas_call(
        kernel,
        out_shape=(
            jax.ShapeDtypeStruct((m_pad, c_exp), jnp.bfloat16),
            jax.ShapeDtypeStruct((t, 8, c_exp), jnp.float32),
        ),
        grid_spec=pl.GridSpec(
            grid=(t,),
            in_specs=[
                pl.BlockSpec((m_tile, c_mid), lambda i: (i, 0)),
                _const_spec((2, c_mid), lambda i: (0, 0)),
                _const_spec((c_mid, c_exp), lambda i: (0, 0)),
            ],
            out_specs=(
                pl.BlockSpec((m_tile, c_exp), lambda i: (i, 0)),
                pl.BlockSpec((1, 8, c_exp), lambda i: (i, 0, 0)),
            ),
        ),
        compiler_params=_cparams(),
    )(y2_2d, bn2_pack, w3)


# ---------------------------------------------------------------------------
# Kernel 4: bn3(main) + bn_ds(residual) + add + final ReLU (bf16 streaming in).
# ---------------------------------------------------------------------------
def _epilogue_kernel(y3_ref, yd_ref, bn3_ref, bnd_ref, o_ref):
    bn3 = bn3_ref[...]
    bnd = bnd_ref[...]
    main = y3_ref[...].astype(jnp.float32) * bn3[0:1, :] + bn3[1:2, :]
    res = yd_ref[...].astype(jnp.float32) * bnd[0:1, :] + bnd[1:2, :]
    o_ref[...] = jnp.maximum(main + res, 0.0)


def bn_add_relu_epilogue(y3, yd, bn3_pack, bnd_pack, m_tile):
    m_pad, c_exp = y3.shape
    t = m_pad // m_tile
    return pl.pallas_call(
        _epilogue_kernel,
        out_shape=jax.ShapeDtypeStruct((m_pad, c_exp), jnp.float32),
        grid_spec=pl.GridSpec(
            grid=(t,),
            in_specs=[
                pl.BlockSpec((m_tile, c_exp), lambda i: (i, 0)),
                pl.BlockSpec((m_tile, c_exp), lambda i: (i, 0)),
                _const_spec((2, c_exp), lambda i: (0, 0)),
                _const_spec((2, c_exp), lambda i: (0, 0)),
            ],
            out_specs=pl.BlockSpec((m_tile, c_exp), lambda i: (i, 0)),
        ),
        compiler_params=_cparams(),
    )(y3, yd, bn3_pack, bnd_pack)


# ---------------------------------------------------------------------------
# JAX glue: layout plumbing, BN partial-stat reduction, scale/shift folding.
# ---------------------------------------------------------------------------
def _finalize_bn(partial_stats, count, gamma, beta):
    """(T, 8, C) per-tile [sum; sum_sq; 0...] -> folded (2, C) = [scale; shift]."""
    tot = jnp.sum(partial_stats, axis=0)                       # (8, C)
    mean = tot[0] / count
    var = jnp.maximum(tot[1] / count - mean * mean, 0.0)       # biased, as in torch BN
    scale = gamma * lax.rsqrt(var + BN_EPS)
    shift = beta - mean * scale
    return jnp.stack([scale, shift], axis=0).astype(jnp.float32)


def resnet50_block_forward(x_nchw, p, stride, m_tile_target=512):
    n, c_in = x_nchw.shape[0], x_nchw.shape[1]
    c_mid = p["conv1_w"].shape[0]
    c_exp = p["conv3_w"].shape[0]

    # Strided 1x1 conv == spatial subsampling; subsample BEFORE the NCHW->NHWC
    # transpose so layout plumbing only touches the ho*wo pixels we keep.
    x_s = x_nchw[:, :, ::stride, ::stride]
    ho, wo = x_s.shape[2], x_s.shape[3]
    m = n * ho * wo
    m_tile = _pick_m_tile(m, m_tile_target)
    m_pad = _round_up(m, m_tile)
    x2d = jnp.transpose(x_s, (0, 2, 3, 1)).reshape(m, c_in).astype(jnp.bfloat16)
    if m_pad != m:
        x2d = jnp.pad(x2d, ((0, m_pad - m), (0, 0)))

    # Matmul-layout weights (bf16, native MXU path).  Conv biases are dropped
    # in the kernel path: a bias added before training-mode BN cancels exactly
    # in the mean subtraction (the reference keeps them; outputs still match).
    w1 = jnp.transpose(p["conv1_w"].reshape(c_mid, c_in), (1, 0)).astype(jnp.bfloat16)
    wd = jnp.transpose(p["ds_w"].reshape(c_exp, c_in), (1, 0)).astype(jnp.bfloat16)
    w2 = jnp.transpose(p["conv2_w"], (2, 3, 1, 0)).reshape(9 * c_mid, c_mid).astype(jnp.bfloat16)
    w3 = jnp.transpose(p["conv3_w"].reshape(c_exp, c_mid), (1, 0)).astype(jnp.bfloat16)

    # --- Stage 1: conv1 + downsample conv (fused kernel, shared X DMA) -------
    y1, yd, s1, sd = conv1_and_downsample(x2d, w1, wd, m_tile)
    bn1 = _finalize_bn(s1, m, p["bn1_g"], p["bn1_b"])
    bnd = _finalize_bn(sd, m, p["dsbn_g"], p["dsbn_b"])

    # --- Stage 2: 3x3 conv, bn1+relu folded in, zero-halo built in VMEM ------
    y1_img = y1[:m].reshape(n, ho * wo, c_mid)
    y2_img, s2 = conv2_3x3(y1_img, bn1, w2, ho, wo)
    bn2 = _finalize_bn(s2, m, p["bn2_g"], p["bn2_b"])

    # --- Stage 3: conv3 1x1 (bn2+relu folded in) ------------------------------
    y2_2d = y2_img.reshape(m, c_mid)
    if m_pad != m:
        y2_2d = jnp.pad(y2_2d, ((0, m_pad - m), (0, 0)))
    y3, s3 = conv3_with_folded_bn2(y2_2d, bn2, w3, m_tile, m)
    bn3 = _finalize_bn(s3, m, p["bn3_g"], p["bn3_b"])

    # --- Stage 4: bn3 + downsample-bn + residual add + final relu ------------
    out2d = bn_add_relu_epilogue(y3, yd, bn3, bnd, m_tile)

    out = out2d[:m].reshape(n, ho, wo, c_exp)
    return jnp.transpose(out, (0, 3, 1, 2))                    # back to NCHW


# ---------------------------------------------------------------------------
# Deterministic parameter init (shapes from ResNet50Block.__init__).
# ---------------------------------------------------------------------------
def init_params(key, in_channels, out_channels):
    exp = out_channels * 4
    ks = jax.random.split(key, 16)

    def w(k, shape, scale=0.1):
        return scale * jax.random.normal(k, shape, jnp.float32)

    return {
        "conv1_w": w(ks[0], (out_channels, in_channels, 1, 1)),
        "conv1_b": w(ks[1], (out_channels,), 0.05),
        "bn1_g": 1.0 + w(ks[2], (out_channels,)),
        "bn1_b": w(ks[3], (out_channels,)),
        "conv2_w": w(ks[4], (out_channels, out_channels, 3, 3)),
        "conv2_b": w(ks[5], (out_channels,), 0.05),
        "bn2_g": 1.0 + w(ks[6], (out_channels,)),
        "bn2_b": w(ks[7], (out_channels,)),
        "conv3_w": w(ks[8], (exp, out_channels, 1, 1)),
        "conv3_b": w(ks[9], (exp,), 0.05),
        "bn3_g": 1.0 + w(ks[10], (exp,)),
        "bn3_b": w(ks[11], (exp,)),
        "ds_w": w(ks[12], (exp, in_channels, 1, 1)),
        "ds_b": w(ks[13], (exp,), 0.05),
        "dsbn_g": 1.0 + w(ks[14], (exp,)),
        "dsbn_b": w(ks[15], (exp,)),
    }


# ---------------------------------------------------------------------------
# Pure-JAX reference (PyTorch forward semantics, NCHW).  Conv inputs/weights
# are cast to bf16 (f32 accumulation) to mirror the kernels' native MXU path.
# ---------------------------------------------------------------------------
def reference_forward(x, p, stride):
    bf16 = jnp.bfloat16

    def conv(t, w, b, s, padding):
        y = lax.conv_general_dilated(
            t.astype(bf16), w.astype(bf16), (s, s), padding,
            dimension_numbers=("NCHW", "OIHW", "NCHW"),
            preferred_element_type=jnp.float32)
        return y + b.reshape(1, -1, 1, 1)

    def bn(t, g, b):
        mean = jnp.mean(t, axis=(0, 2, 3), keepdims=True)
        var = jnp.mean(jnp.square(t - mean), axis=(0, 2, 3), keepdims=True)
        return (t - mean) * (g.reshape(1, -1, 1, 1) / jnp.sqrt(var + BN_EPS)) \
            + b.reshape(1, -1, 1, 1)

    relu = lambda t: jnp.maximum(t, 0.0)
    out = relu(bn(conv(x, p["conv1_w"], p["conv1_b"], stride, "VALID"),
                  p["bn1_g"], p["bn1_b"]))
    out = relu(bn(conv(out, p["conv2_w"], p["conv2_b"], 1, ((1, 1), (1, 1))),
                  p["bn2_g"], p["bn2_b"]))
    out = bn(conv(out, p["conv3_w"], p["conv3_b"], 1, "VALID"),
             p["bn3_g"], p["bn3_b"])
    res = bn(conv(x, p["ds_w"], p["ds_b"], stride, "VALID"),
             p["dsbn_g"], p["dsbn_b"])
    return relu(out + res)


if __name__ == "__main__":
    key = jax.random.PRNGKey(0)
    kx, kp = jax.random.split(key)

    # Small shapes: batch=2, in_channels=8, spatial 16x16, out_channels=8
    # (expansion -> 32), stride=2  =>  ho=wo=8, m = 2*8*8 = 128 output rows.
    N, Cin, H, W = 2, 8, 16, 16
    Cmid = 8
    stride = 2

    x = jax.random.normal(kx, (N, Cin, H, W), jnp.float32)
    params = init_params(kp, Cin, Cmid)

    # m_tile_target=64 -> two row tiles, exercising the multi-tile grid and the
    # per-tile BN partial-stat reduction.
    fwd = jax.jit(functools.partial(resnet50_block_forward, stride=stride,
                                    m_tile_target=64))
    out = jax.block_until_ready(fwd(x, params))

    ref = jax.block_until_ready(reference_forward(x, params, stride))
    assert out.shape == ref.shape, (out.shape, ref.shape)
    # Both paths use bf16 MXU inputs with f32 accumulation; the kernel path
    # additionally stores inter-stage activations in bf16, so allow slightly
    # more slack than pure summation-order noise.
    np.testing.assert_allclose(np.asarray(out), np.asarray(ref), rtol=2e-2, atol=3e-2)

    print("KERNEL_OK")
</pallas_src>

<mosaic_0001>
module attributes {stable_mosaic.version = 11 : i64} {
  func.func @_copy_kernel(%arg0: i32, %arg1: memref<8x128xf32, #tpu.memory_space<vmem>>, %arg2: memref<8x128xf32, #tpu.memory_space<vmem>>) attributes {dimension_semantics = [#tpu.dimension_semantics<arbitrary>], iteration_bounds = array<i64: 2>, scalar_prefetch = 0 : i64, scratch_operands = 0 : i64, tpu.core_type = #tpu.core_type<tc>, window_params = [{pipeline_mode = #tpu.pipeline_mode<synchronous>, transform_indices = @transform_0, window_bounds = array<i64: 8, 128>}, {transform_indices = @transform_1, window_bounds = array<i64: 8, 128>}]} {
    %c0 = arith.constant 0 : index
    %c0_0 = arith.constant 0 : index
    %0 = vector.load %arg1[%c0, %c0_0] : memref<8x128xf32, #tpu.memory_space<vmem>>, vector<8x128xf32>
    %c0_1 = arith.constant 0 : index
    %c0_2 = arith.constant 0 : index
    %1 = vector.load %arg2[%c0_1, %c0_2] : memref<8x128xf32, #tpu.memory_space<vmem>>, vector<8x128xf32>
    tpu.vector_store %arg2[%c0_1, %c0_2], %0 {strides = array<i32>} : memref<8x128xf32, #tpu.memory_space<vmem>>, vector<8x128xf32>,
    return
  }
  func.func @transform_0(%arg0: i32) -> (i32, i32) {
    %c0_i32 = arith.constant 0 : i32
    %c0_i32_0 = arith.constant 0 : i32
    %c0_i32_1 = arith.constant 0 : i32
    return %c0_i32, %c0_i32_0 : i32, i32
  }
  func.func @transform_1(%arg0: i32) -> (i32, i32) {
    %c0_i32 = arith.constant 0 : i32
    %c0_i32_0 = arith.constant 0 : i32
    return %arg0, %c0_i32 : i32, i32
  }
}

module attributes {stable_mosaic.version = 11 : i64} {
  func.func @_conv1_ds_kernel(%arg0: i32, %arg1: memref<64x8xbf16, #tpu.memory_space<vmem>>, %arg2: memref<8x8xbf16, #tpu.memory_space<vmem>>, %arg3: memref<8x32xbf16, #tpu.memory_space<vmem>>, %arg4: memref<64x8xbf16, #tpu.memory_space<vmem>>, %arg5: memref<64x32xbf16, #tpu.memory_space<vmem>>, %arg6: memref<1x8x8xf32, #tpu.memory_space<vmem>>, %arg7: memref<1x8x32xf32, #tpu.memory_space<vmem>>) attributes {dimension_semantics = [#tpu.dimension_semantics<parallel>], iteration_bounds = array<i64: 2>, scalar_prefetch = 0 : i64, scratch_operands = 0 : i64, tpu.core_type = #tpu.core_type<tc>, window_params = [{transform_indices = @transform_0, window_bounds = array<i64: 64, 8>}, {pipeline_mode = #tpu.pipeline_mode<synchronous>, transform_indices = @transform_1, window_bounds = array<i64: 8, 8>}, {pipeline_mode = #tpu.pipeline_mode<synchronous>, transform_indices = @transform_2, window_bounds = array<i64: 8, 32>}, {transform_indices = @transform_3, window_bounds = array<i64: 64, 8>}, {transform_indices = @transform_4, window_bounds = array<i64: 64, 32>}, {transform_indices = @transform_5, window_bounds = array<i64: 1, 8, 8>}, {transform_indices = @transform_6, window_bounds = array<i64: 1, 8, 32>}]} {
    %c0 = arith.constant 0 : index
    %c0_0 = arith.constant 0 : index
    %0 = vector.load %arg1[%c0, %c0_0] : memref<64x8xbf16, #tpu.memory_space<vmem>>, vector<64x8xbf16>
    %c0_1 = arith.constant 0 : index
    %c0_2 = arith.constant 0 : index
    %1 = vector.load %arg2[%c0_1, %c0_2] : memref<8x8xbf16, #tpu.memory_space<vmem>>, vector<8x8xbf16>
    %cst = arith.constant dense<0.000000e+00> : vector<64x8xf32>
    %2 = tpu.matmul %0, %1, %cst {dimension_numbers = #tpu.dot_dimension_numbers<[1], [0], [0], [1], [0, 0, 1, 1], [], []>} : vector<64x8xbf16>, vector<8x8xbf16>, vector<64x8xf32> -> vector<64x8xf32>
    %c0_3 = arith.constant 0 : index
    %c0_4 = arith.constant 0 : index
    %3 = vector.load %arg3[%c0_3, %c0_4] : memref<8x32xbf16, #tpu.memory_space<vmem>>, vector<8x32xbf16>
    %cst_5 = arith.constant dense<0.000000e+00> : vector<64x32xf32>
    %4 = tpu.matmul %0, %3, %cst_5 {dimension_numbers = #tpu.dot_dimension_numbers<[1], [0], [0], [1], [0, 0, 1, 1], [], []>} : vector<64x8xbf16>, vector<8x32xbf16>, vector<64x32xf32> -> vector<64x32xf32>
    %5 = arith.truncf %2 : vector<64x8xf32> to vector<64x8xbf16>
    %c0_6 = arith.constant 0 : index
    %c0_7 = arith.constant 0 : index
    %6 = vector.load %arg4[%c0_6, %c0_7] : memref<64x8xbf16, #tpu.memory_space<vmem>>, vector<64x8xbf16>
    tpu.vector_store %arg4[%c0_6, %c0_7], %5 {strides = array<i32>} : memref<64x8xbf16, #tpu.memory_space<vmem>>, vector<64x8xbf16>,
    %7 = arith.truncf %4 : vector<64x32xf32> to vector<64x32xbf16>
    %c0_8 = arith.constant 0 : index
    %c0_9 = arith.constant 0 : index
    %8 = vector.load %arg5[%c0_8, %c0_9] : memref<64x32xbf16, #tpu.memory_space<vmem>>, vector<64x32xbf16>
    tpu.vector_store %arg5[%c0_8, %c0_9], %7 {strides = array<i32>} : memref<64x32xbf16, #tpu.memory_space<vmem>>, vector<64x32xbf16>,
    %cst_10 = arith.constant dense<0.000000e+00> : vector<8xf32>
    %9 = vector.multi_reduction <add>, %2, %cst_10 [0] : vector<64x8xf32> to vector<8xf32>
    %10 = vector.shape_cast %9 : vector<8xf32> to vector<1x8xf32>
    %11 = arith.mulf %2, %2 : vector<64x8xf32>
    %cst_11 = arith.constant dense<0.000000e+00> : vector<8xf32>
    %12 = vector.multi_reduction <add>, %11, %cst_11 [0] : vector<64x8xf32> to vector<8xf32>
    %13 = vector.shape_cast %12 : vector<8xf32> to vector<1x8xf32>
    %cst_12 = arith.constant 0.000000e+00 : f32
    %14 = vector.broadcast %cst_12 : f32 to vector<6x8xf32>
    %15 = tpu.concatenate %10, %13, %14 in 0 : vector<1x8xf32>, vector<1x8xf32>, vector<6x8xf32> -> vector<8x8xf32>
    %c0_13 = arith.constant 0 : index
    %c0_14 = arith.constant 0 : index
    %c0_15 = arith.constant 0 : index
    %16 = vector.load %arg6[%c0_13, %c0_14, %c0_15] : memref<1x8x8xf32, #tpu.memory_space<vmem>>, vector<1x8x8xf32>
    %17 = vector.shape_cast %16 : vector<1x8x8xf32> to vector<8x8xf32>
    %18 = vector.shape_cast %15 : vector<8x8xf32> to vector<1x8x8xf32>
    tpu.vector_store %arg6[%c0_13, %c0_14, %c0_15], %18 {strides = array<i32>} : memref<1x8x8xf32, #tpu.memory_space<vmem>>, vector<1x8x8xf32>,
    %cst_16 = arith.constant dense<0.000000e+00> : vector<32xf32>
    %19 = vector.multi_reduction <add>, %4, %cst_16 [0] : vector<64x32xf32> to vector<32xf32>
    %20 = vector.shape_cast %19 : vector<32xf32> to vector<1x32xf32>
    %21 = arith.mulf %4, %4 : vector<64x32xf32>
    %cst_17 = arith.constant dense<0.000000e+00> : vector<32xf32>
    %22 = vector.multi_reduction <add>, %21, %cst_17 [0] : vector<64x32xf32> to vector<32xf32>
    %23 = vector.shape_cast %22 : vector<32xf32> to vector<1x32xf32>
    %cst_18 = arith.constant 0.000000e+00 : f32
    %24 = vector.broadcast %cst_18 : f32 to vector<6x32xf32>
    %25 = tpu.concatenate %20, %23, %24 in 0 : vector<1x32xf32>, vector<1x32xf32>, vector<6x32xf32> -> vector<8x32xf32>
    %c0_19 = arith.constant 0 : index
    %c0_20 = arith.constant 0 : index
    %c0_21 = arith.constant 0 : index
    %26 = vector.load %arg7[%c0_19, %c0_20, %c0_21] : memref<1x8x32xf32, #tpu.memory_space<vmem>>, vector<1x8x32xf32>
    %27 = vector.shape_cast %26 : vector<1x8x32xf32> to vector<8x32xf32>
    %28 = vector.shape_cast %25 : vector<8x32xf32> to vector<1x8x32xf32>
    tpu.vector_store %arg7[%c0_19, %c0_20, %c0_21], %28 {strides = array<i32>} : memref<1x8x32xf32, #tpu.memory_space<vmem>>, vector<1x8x32xf32>,
    return
  }
  func.func @transform_0(%arg0: i32) -> (i32, i32) {
    %c0_i32 = arith.constant 0 : i32
    %c0_i32_0 = arith.constant 0 : i32
    return %arg0, %c0_i32 : i32, i32
  }
  func.func @transform_1(%arg0: i32) -> (i32, i32) {
    %c0_i32 = arith.constant 0 : i32
    %c0_i32_0 = arith.constant 0 : i32
    %c0_i32_1 = arith.constant 0 : i32
    return %c0_i32, %c0_i32_0 : i32, i32
  }
  func.func @transform_2(%arg0: i32) -> (i32, i32) {
    %c0_i32 = arith.constant 0 : i32
    %c0_i32_0 = arith.constant 0 : i32
    %c0_i32_1 = arith.constant 0 : i32
    return %c0_i32, %c0_i32_0 : i32, i32
  }
  func.func @transform_3(%arg0: i32) -> (i32, i32) {
    %c0_i32 = arith.constant 0 : i32
    %c0_i32_0 = arith.constant 0 : i32
    return %arg0, %c0_i32 : i32, i32
  }
  func.func @transform_4(%arg0: i32) -> (i32, i32) {
    %c0_i32 = arith.constant 0 : i32
    %c0_i32_0 = arith.constant 0 : i32
    return %arg0, %c0_i32 : i32, i32
  }
  func.func @transform_5(%arg0: i32) -> (i32, i32, i32) {
    %c0_i32 = arith.constant 0 : i32
    %c0_i32_0 = arith.constant 0 : i32
    %c0_i32_1 = arith.constant 0 : i32
    return %arg0, %c0_i32, %c0_i32_0 : i32, i32, i32
  }
  func.func @transform_6(%arg0: i32) -> (i32, i32, i32) {
    %c0_i32 = arith.constant 0 : i32
    %c0_i32_0 = arith.constant 0 : i32
    %c0_i32_1 = arith.constant 0 : i32
    return %arg0, %c0_i32, %c0_i32_0 : i32, i32, i32
  }
}

module attributes {stable_mosaic.version = 11 : i64} {
  func.func @_conv3_kernel(%arg0: i32, %arg1: memref<64x8xbf16, #tpu.memory_space<vmem>>, %arg2: memref<2x8xf32, #tpu.memory_space<vmem>>, %arg3: memref<8x32xbf16, #tpu.memory_space<vmem>>, %arg4: memref<64x32xbf16, #tpu.memory_space<vmem>>, %arg5: memref<1x8x32xf32, #tpu.memory_space<vmem>>) attributes {dimension_semantics = [#tpu.dimension_semantics<parallel>], iteration_bounds = array<i64: 2>, scalar_prefetch = 0 : i64, scratch_operands = 0 : i64, tpu.core_type = #tpu.core_type<tc>, window_params = [{transform_indices = @transform_0, window_bounds = array<i64: 64, 8>}, {pipeline_mode = #tpu.pipeline_mode<synchronous>, transform_indices = @transform_1, window_bounds = array<i64: 2, 8>}, {pipeline_mode = #tpu.pipeline_mode<synchronous>, transform_indices = @transform_2, window_bounds = array<i64: 8, 32>}, {transform_indices = @transform_3, window_bounds = array<i64: 64, 32>}, {transform_indices = @transform_4, window_bounds = array<i64: 1, 8, 32>}]} {
    %c0 = arith.constant 0 : index
    %c0_0 = arith.constant 0 : index
    %0 = vector.load %arg1[%c0, %c0_0] : memref<64x8xbf16, #tpu.memory_space<vmem>>, vector<64x8xbf16>
    %c0_1 = arith.constant 0 : index
    %c0_2 = arith.constant 0 : index
    %1 = vector.load %arg2[%c0_1, %c0_2] : memref<2x8xf32, #tpu.memory_space<vmem>>, vector<2x8xf32>
    %2 = arith.extf %0 : vector<64x8xbf16> to vector<64x8xf32>
    %3 = vector.extract_strided_slice %1 {offsets = [0, 0], sizes = [1, 8], strides = [1, 1]} : vector<2x8xf32> to vector<1x8xf32>
    %4 = vector.broadcast %3 : vector<1x8xf32> to vector<64x8xf32>
    %5 = arith.mulf %2, %4 : vector<64x8xf32>
    %6 = vector.extract_strided_slice %1 {offsets = [1, 0], sizes = [1, 8], strides = [1, 1]} : vector<2x8xf32> to vector<1x8xf32>
    %7 = vector.broadcast %6 : vector<1x8xf32> to vector<64x8xf32>
    %8 = arith.addf %5, %7 : vector<64x8xf32>
    %cst = arith.constant 0.000000e+00 : f32
    %9 = vector.broadcast %cst : f32 to vector<64x8xf32>
    %10 = arith.maximumf %8, %9 : vector<64x8xf32>
    %11 = arith.truncf %10 : vector<64x8xf32> to vector<64x8xbf16>
    %c0_3 = arith.constant 0 : index
    %c0_4 = arith.constant 0 : index
    %12 = vector.load %arg3[%c0_3, %c0_4] : memref<8x32xbf16, #tpu.memory_space<vmem>>, vector<8x32xbf16>
    %cst_5 = arith.constant dense<0.000000e+00> : vector<64x32xf32>
    %13 = tpu.matmul %11, %12, %cst_5 {dimension_numbers = #tpu.dot_dimension_numbers<[1], [0], [0], [1], [0, 0, 1, 1], [], []>} : vector<64x8xbf16>, vector<8x32xbf16>, vector<64x32xf32> -> vector<64x32xf32>
    %14 = arith.truncf %13 : vector<64x32xf32> to vector<64x32xbf16>
    %c0_6 = arith.constant 0 : index
    %c0_7 = arith.constant 0 : index
    %15 = vector.load %arg4[%c0_6, %c0_7] : memref<64x32xbf16, #tpu.memory_space<vmem>>, vector<64x32xbf16>
    tpu.vector_store %arg4[%c0_6, %c0_7], %14 {strides = array<i32>} : memref<64x32xbf16, #tpu.memory_space<vmem>>, vector<64x32xbf16>,
    %cst_8 = arith.constant dense<0.000000e+00> : vector<32xf32>
    %16 = vector.multi_reduction <add>, %13, %cst_8 [0] : vector<64x32xf32> to vector<32xf32>
    %17 = vector.shape_cast %16 : vector<32xf32> to vector<1x32xf32>
    %18 = arith.mulf %13, %13 : vector<64x32xf32>
    %cst_9 = arith.constant dense<0.000000e+00> : vector<32xf32>
    %19 = vector.multi_reduction <add>, %18, %cst_9 [0] : vector<64x32xf32> to vector<32xf32>
    %20 = vector.shape_cast %19 : vector<32xf32> to vector<1x32xf32>
    %cst_10 = arith.constant 0.000000e+00 : f32
    %21 = vector.broadcast %cst_10 : f32 to vector<6x32xf32>
    %22 = tpu.concatenate %17, %20, %21 in 0 : vector<1x32xf32>, vector<1x32xf32>, vector<6x32xf32> -> vector<8x32xf32>
    %c0_11 = arith.constant 0 : index
    %c0_12 = arith.constant 0 : index
    %c0_13 = arith.constant 0 : index
    %23 = vector.load %arg5[%c0_11, %c0_12, %c0_13] : memref<1x8x32xf32, #tpu.memory_space<vmem>>, vector<1x8x32xf32>
    %24 = vector.shape_cast %23 : vector<1x8x32xf32> to vector<8x32xf32>
    %25 = vector.shape_cast %22 : vector<8x32xf32> to vector<1x8x32xf32>
    tpu.vector_store %arg5[%c0_11, %c0_12, %c0_13], %25 {strides = array<i32>} : memref<1x8x32xf32, #tpu.memory_space<vmem>>, vector<1x8x32xf32>,
    return
  }
  func.func @transform_0(%arg0: i32) -> (i32, i32) {
    %c0_i32 = arith.constant 0 : i32
    %c0_i32_0 = arith.constant 0 : i32
    return %arg0, %c0_i32 : i32, i32
  }
  func.func @transform_1(%arg0: i32) -> (i32, i32) {
    %c0_i32 = arith.constant 0 : i32
    %c0_i32_0 = arith.constant 0 : i32
    %c0_i32_1 = arith.constant 0 : i32
    return %c0_i32, %c0_i32_0 : i32, i32
  }
  func.func @transform_2(%arg0: i32) -> (i32, i32) {
    %c0_i32 = arith.constant 0 : i32
    %c0_i32_0 = arith.constant 0 : i32
    %c0_i32_1 = arith.constant 0 : i32
    return %c0_i32, %c0_i32_0 : i32, i32
  }
  func.func @transform_3(%arg0: i32) -> (i32, i32) {
    %c0_i32 = arith.constant 0 : i32
    %c0_i32_0 = arith.constant 0 : i32
    return %arg0, %c0_i32 : i32, i32
  }
  func.func @transform_4(%arg0: i32) -> (i32, i32, i32) {
    %c0_i32 = arith.constant 0 : i32
    %c0_i32_0 = arith.constant 0 : i32
    %c0_i32_1 = arith.constant 0 : i32
    return %arg0, %c0_i32, %c0_i32_0 : i32, i32, i32
  }
}

module attributes {stable_mosaic.version = 11 : i64} {
  func.func @_conv3x3_kernel(%arg0: i32, %arg1: memref<1x64x8xbf16, #tpu.memory_space<vmem>>, %arg2: memref<2x8xf32, #tpu.memory_space<vmem>>, %arg3: memref<72x8xbf16, #tpu.memory_space<vmem>>, %arg4: memref<1x64x8xbf16, #tpu.memory_space<vmem>>, %arg5: memref<1x8x8xf32, #tpu.memory_space<vmem>>, %arg6: memref<96x8xbf16, #tpu.memory_space<vmem>>, %arg7: memref<64x72xbf16, #tpu.memory_space<vmem>>) attributes {dimension_semantics = [#tpu.dimension_semantics<parallel>], iteration_bounds = array<i64: 2>, scalar_prefetch = 0 : i64, scratch_operands = 2 : i64, tpu.core_type = #tpu.core_type<tc>, window_params = [{transform_indices = @transform_0, window_bounds = array<i64: 1, 64, 8>}, {pipeline_mode = #tpu.pipeline_mode<synchronous>, transform_indices = @transform_1, window_bounds = array<i64: 2, 8>}, {pipeline_mode = #tpu.pipeline_mode<synchronous>, transform_indices = @transform_2, window_bounds = array<i64: 72, 8>}, {transform_indices = @transform_3, window_bounds = array<i64: 1, 64, 8>}, {transform_indices = @transform_4, window_bounds = array<i64: 1, 8, 8>}]} {
    %c0 = arith.constant 0 : index
    %c0_0 = arith.constant 0 : index
    %c0_1 = arith.constant 0 : index
    %0 = vector.load %arg1[%c0, %c0_0, %c0_1] : memref<1x64x8xbf16, #tpu.memory_space<vmem>>, vector<1x64x8xbf16>
    %1 = vector.shape_cast %0 : vector<1x64x8xbf16> to vector<64x8xbf16>
    %c0_2 = arith.constant 0 : index
    %c0_3 = arith.constant 0 : index
    %2 = vector.load %arg2[%c0_2, %c0_3] : memref<2x8xf32, #tpu.memory_space<vmem>>, vector<2x8xf32>
    %3 = arith.extf %1 : vector<64x8xbf16> to vector<64x8xf32>
    %4 = vector.extract_strided_slice %2 {offsets = [0, 0], sizes = [1, 8], strides = [1, 1]} : vector<2x8xf32> to vector<1x8xf32>
    %5 = vector.broadcast %4 : vector<1x8xf32> to vector<64x8xf32>
    %6 = arith.mulf %3, %5 : vector<64x8xf32>
    %7 = vector.extract_strided_slice %2 {offsets = [1, 0], sizes = [1, 8], strides = [1, 1]} : vector<2x8xf32> to vector<1x8xf32>
    %8 = vector.broadcast %7 : vector<1x8xf32> to vector<64x8xf32>
    %9 = arith.addf %6, %8 : vector<64x8xf32>
    %cst = arith.constant 0.000000e+00 : f32
    %10 = vector.broadcast %cst : f32 to vector<64x8xf32>
    %11 = arith.maximumf %9, %10 : vector<64x8xf32>
    %12 = arith.truncf %11 : vector<64x8xf32> to vector<64x8xbf16>
    %cst_4 = arith.constant 0.000000e+00 : bf16
    %13 = vector.broadcast %cst_4 : bf16 to vector<16x8xbf16>
    %c0_5 = arith.constant 0 : index
    %c0_6 = arith.constant 0 : index
    %14 = vector.load %arg6[%c0_5, %c0_6] : memref<96x8xbf16, #tpu.memory_space<vmem>>, vector<16x8xbf16>
    tpu.vector_store %arg6[%c0_5, %c0_6], %13 {strides = array<i32>} : memref<96x8xbf16, #tpu.memory_space<vmem>>, vector<16x8xbf16>,
    %cst_7 = arith.constant 0.000000e+00 : bf16
    %15 = vector.broadcast %cst_7 : bf16 to vector<16x8xbf16>
    %c80 = arith.constant 80 : index
    %c0_8 = arith.constant 0 : index
    %16 = vector.load %arg6[%c80, %c0_8] : memref<96x8xbf16, #tpu.memory_space<vmem>>, vector<16x8xbf16>
    tpu.vector_store %arg6[%c80, %c0_8], %15 {strides = array<i32>} : memref<96x8xbf16, #tpu.memory_space<vmem>>, vector<16x8xbf16>,
    %c16 = arith.constant 16 : index
    %c0_9 = arith.constant 0 : index
    %17 = vector.load %arg6[%c16, %c0_9] : memref<96x8xbf16, #tpu.memory_space<vmem>>, vector<64x8xbf16>
    tpu.vector_store %arg6[%c16, %c0_9], %12 {strides = array<i32>} : memref<96x8xbf16, #tpu.memory_space<vmem>>, vector<64x8xbf16>,
    %18 = tpu.iota {dimensions = array<i32: 0>} : vector<64x1xi32>
    %c8_i32 = arith.constant 8 : i32
    %c0_i32 = arith.constant 0 : i32
    %19 = arith.cmpi eq, %c8_i32, %c0_i32 : i32
    %c1_i32 = arith.constant 1 : i32
    %20 = arith.select %19, %c1_i32, %c8_i32 : i32
    %21 = vector.broadcast %20 : i32 to vector<64x1xi32>
    %22 = arith.remsi %18, %21 : vector<64x1xi32>
    %c0_i32_10 = arith.constant 0 : i32
    %23 = vector.broadcast %c0_i32_10 : i32 to vector<64x1xi32>
    %24 = arith.cmpi ne, %22, %23 : vector<64x1xi32>
    %c0_i32_11 = arith.constant 0 : i32
    %25 = vector.broadcast %c0_i32_11 : i32 to vector<64x1xi32>
    %26 = arith.cmpi slt, %22, %25 : vector<64x1xi32>
    %c0_i32_12 = arith.constant 0 : i32
    %27 = arith.cmpi slt, %20, %c0_i32_12 : i32
    %28 = vector.broadcast %27 : i1 to vector<64x1xi1>
    %29 = vector.broadcast %28 : vector<64x1xi1> to vector<64x1xi1>
    %30 = arith.xori %26, %29 : vector<64x1xi1>
    %31 = arith.andi %30, %24 : vector<64x1xi1>
    %32 = vector.broadcast %20 : i32 to vector<64x1xi32>
    %33 = arith.addi %22, %32 : vector<64x1xi32>
    %34 = arith.select %31, %33, %22 : vector<64x1xi1>, vector<64x1xi32>
    %c1_i32_13 = arith.constant 1 : i32
    %35 = vector.broadcast %c1_i32_13 : i32 to vector<64x1xi32>
    %36 = arith.cmpi sge, %34, %35 : vector<64x1xi32>
    %37 = arith.extui %36 : vector<64x1xi1> to vector<64x1xi32>
    %38 = arith.sitofp %37 : vector<64x1xi32> to vector<64x1xf32>
    %39 = arith.truncf %38 : vector<64x1xf32> to vector<64x1xbf16>
    %c6_i32 = arith.constant 6 : i32
    %40 = vector.broadcast %c6_i32 : i32 to vector<64x1xi32>
    %41 = arith.cmpi sle, %34, %40 : vector<64x1xi32>
    %42 = arith.extui %41 : vector<64x1xi1> to vector<64x1xi32>
    %43 = arith.sitofp %42 : vector<64x1xi32> to vector<64x1xf32>
    %44 = arith.truncf %43 : vector<64x1xf32> to vector<64x1xbf16>
    %c7 = arith.constant 7 : index
    %c0_14 = arith.constant 0 : index
    %45 = vector.load %arg6[%c7, %c0_14] : memref<96x8xbf16, #tpu.memory_space<vmem>>, vector<64x8xbf16>
    %46 = vector.broadcast %39 : vector<64x1xbf16> to vector<64x8xbf16>
    %47 = arith.mulf %45, %46 : vector<64x8xbf16>
    %c0_15 = arith.constant 0 : index
    %c0_16 = arith.constant 0 : index
    %48 = vector.load %arg7[%c0_15, %c0_16] : memref<64x72xbf16, #tpu.memory_space<vmem>>, vector<64x8xbf16>
    tpu.vector_store %arg7[%c0_15, %c0_16], %47 {strides = array<i32>} : memref<64x72xbf16, #tpu.memory_space<vmem>>, vector<64x8xbf16>,
    %c8 = arith.constant 8 : index
    %c0_17 = arith.constant 0 : index
    %49 = vector.load %arg6[%c8, %c0_17] : memref<96x8xbf16, #tpu.memory_space<vmem>>, vector<64x8xbf16>
    %c0_18 = arith.constant 0 : index
    %c8_19 = arith.constant 8 : index
    %50 = vector.load %arg7[%c0_18, %c8_19] : memref<64x72xbf16, #tpu.memory_space<vmem>>, vector<64x8xbf16>
    tpu.vector_store %arg7[%c0_18, %c8_19], %49 {strides = array<i32>} : memref<64x72xbf16, #tpu.memory_space<vmem>>, vector<64x8xbf16>,
    %c9 = arith.constant 9 : index
    %c0_20 = arith.constant 0 : index
    %51 = vector.load %arg6[%c9, %c0_20] : memref<96x8xbf16, #tpu.memory_space<vmem>>, vector<64x8xbf16>
    %52 = vector.broadcast %44 : vector<64x1xbf16> to vector<64x8xbf16>
    %53 = arith.mulf %51, %52 : vector<64x8xbf16>
    %c0_21 = arith.constant 0 : index
    %c16_22 = arith.constant 16 : index
    %54 = vector.load %arg7[%c0_21, %c16_22] : memref<64x72xbf16, #tpu.memory_space<vmem>>, vector<64x8xbf16>
    tpu.vector_store %arg7[%c0_21, %c16_22], %53 {strides = array<i32>} : memref<64x72xbf16, #tpu.memory_space<vmem>>, vector<64x8xbf16>,
    %c15 = arith.constant 15 : index
    %c0_23 = arith.constant 0 : index
    %55 = vector.load %arg6[%c15, %c0_23] : memref<96x8xbf16, #tpu.memory_space<vmem>>, vector<64x8xbf16>
    %56 = vector.broadcast %39 : vector<64x1xbf16> to vector<64x8xbf16>
    %57 = arith.mulf %55, %56 : vector<64x8xbf16>
    %c0_24 = arith.constant 0 : index
    %c24 = arith.constant 24 : index
    %58 = vector.load %arg7[%c0_24, %c24] : memref<64x72xbf16, #tpu.memory_space<vmem>>, vector<64x8xbf16>
    tpu.vector_store %arg7[%c0_24, %c24], %57 {strides = array<i32>} : memref<64x72xbf16, #tpu.memory_space<vmem>>, vector<64x8xbf16>,
    %c16_25 = arith.constant 16 : index
    %c0_26 = arith.constant 0 : index
    %59 = vector.load %arg6[%c16_25, %c0_26] : memref<96x8xbf16, #tpu.memory_space<vmem>>, vector<64x8xbf16>
    %c0_27 = arith.constant 0 : index
    %c32 = arith.constant 32 : index
    %60 = vector.load %arg7[%c0_27, %c32] : memref<64x72xbf16, #tpu.memory_space<vmem>>, vector<64x8xbf16>
    tpu.vector_store %arg7[%c0_27, %c32], %59 {strides = array<i32>} : memref<64x72xbf16, #tpu.memory_space<vmem>>, vector<64x8xbf16>,
    %c17 = arith.constant 17 : index
    %c0_28 = arith.constant 0 : index
    %61 = vector.load %arg6[%c17, %c0_28] : memref<96x8xbf16, #tpu.memory_space<vmem>>, vector<64x8xbf16>
    %62 = vector.broadcast %44 : vector<64x1xbf16> to vector<64x8xbf16>
    %63 = arith.mulf %61, %62 : vector<64x8xbf16>
    %c0_29 = arith.constant 0 : index
    %c40 = arith.constant 40 : index
    %64 = vector.load %arg7[%c0_29, %c40] : memref<64x72xbf16, #tpu.memory_space<vmem>>, vector<64x8xbf16>
    tpu.vector_store %arg7[%c0_29, %c40], %63 {strides = array<i32>} : memref<64x72xbf16, #tpu.memory_space<vmem>>, vector<64x8xbf16>,
    %c23 = arith.constant 23 : index
    %c0_30 = arith.constant 0 : index
    %65 = vector.load %arg6[%c23, %c0_30] : memref<96x8xbf16, #tpu.memory_space<vmem>>, vector<64x8xbf16>
    %66 = vector.broadcast %39 : vector<64x1xbf16> to vector<64x8xbf16>
    %67 = arith.mulf %65, %66 : vector<64x8xbf16>
    %c0_31 = arith.constant 0 : index
    %c48 = arith.constant 48 : index
    %68 = vector.load %arg7[%c0_31, %c48] : memref<64x72xbf16, #tpu.memory_space<vmem>>, vector<64x8xbf16>
    tpu.vector_store %arg7[%c0_31, %c48], %67 {strides = array<i32>} : memref<64x72xbf16, #tpu.memory_space<vmem>>, vector<64x8xbf16>,
    %c24_32 = arith.constant 24 : index
    %c0_33 = arith.constant 0 : index
    %69 = vector.load %arg6[%c24_32, %c0_33] : memref<96x8xbf16, #tpu.memory_space<vmem>>, vector<64x8xbf16>
    %c0_34 = arith.constant 0 : index
    %c56 = arith.constant 56 : index
    %70 = vector.load %arg7[%c0_34, %c56] : memref<64x72xbf16, #tpu.memory_space<vmem>>, vector<64x8xbf16>
    tpu.vector_store %arg7[%c0_34, %c56], %69 {strides = array<i32>} : memref<64x72xbf16, #tpu.memory_space<vmem>>, vector<64x8xbf16>,
    %c25 = arith.constant 25 : index
    %c0_35 = arith.constant 0 : index
    %71 = vector.load %arg6[%c25, %c0_35] : memref<96x8xbf16, #tpu.memory_space<vmem>>, vector<64x8xbf16>
    %72 = vector.broadcast %44 : vector<64x1xbf16> to vector<64x8xbf16>
    %73 = arith.mulf %71, %72 : vector<64x8xbf16>
    %c0_36 = arith.constant 0 : index
    %c64 = arith.constant 64 : index
    %74 = vector.load %arg7[%c0_36, %c64] : memref<64x72xbf16, #tpu.memory_space<vmem>>, vector<64x8xbf16>
    tpu.vector_store %arg7[%c0_36, %c64], %73 {strides = array<i32>} : memref<64x72xbf16, #tpu.memory_space<vmem>>, vector<64x8xbf16>,
    %c0_37 = arith.constant 0 : index
    %c0_38 = arith.constant 0 : index
    %75 = vector.load %arg7[%c0_37, %c0_38] : memref<64x72xbf16, #tpu.memory_space<vmem>>, vector<64x72xbf16>
    %c0_39 = arith.constant 0 : index
    %c0_40 = arith.constant 0 : index
    %76 = vector.load %arg3[%c0_39, %c0_40] : memref<72x8xbf16, #tpu.memory_space<vmem>>, vector<72x8xbf16>
    %cst_41 = arith.constant dense<0.000000e+00> : vector<64x8xf32>
    %77 = tpu.matmul %75, %76, %cst_41 {dimension_numbers = #tpu.dot_dimension_numbers<[1], [0], [0], [1], [0, 0, 1, 1], [], []>} : vector<64x72xbf16>, vector<72x8xbf16>, vector<64x8xf32> -> vector<64x8xf32>
    %78 = arith.truncf %77 : vector<64x8xf32> to vector<64x8xbf16>
    %c0_42 = arith.constant 0 : index
    %c0_43 = arith.constant 0 : index
    %c0_44 = arith.constant 0 : index
    %79 = vector.load %arg4[%c0_42, %c0_43, %c0_44] : memref<1x64x8xbf16, #tpu.memory_space<vmem>>, vector<1x64x8xbf16>
    %80 = vector.shape_cast %79 : vector<1x64x8xbf16> to vector<64x8xbf16>
    %81 = vector.shape_cast %78 : vector<64x8xbf16> to vector<1x64x8xbf16>
    tpu.vector_store %arg4[%c0_42, %c0_43, %c0_44], %81 {strides = array<i32>} : memref<1x64x8xbf16, #tpu.memory_space<vmem>>, vector<1x64x8xbf16>,
    %cst_45 = arith.constant dense<0.000000e+00> : vector<8xf32>
    %82 = vector.multi_reduction <add>, %77, %cst_45 [0] : vector<64x8xf32> to vector<8xf32>
    %83 = vector.shape_cast %82 : vector<8xf32> to vector<1x8xf32>
    %84 = arith.mulf %77, %77 : vector<64x8xf32>
    %cst_46 = arith.constant dense<0.000000e+00> : vector<8xf32>
    %85 = vector.multi_reduction <add>, %84, %cst_46 [0] : vector<64x8xf32> to vector<8xf32>
    %86 = vector.shape_cast %85 : vector<8xf32> to vector<1x8xf32>
    %cst_47 = arith.constant 0.000000e+00 : f32
    %87 = vector.broadcast %cst_47 : f32 to vector<6x8xf32>
    %88 = tpu.concatenate %83, %86, %87 in 0 : vector<1x8xf32>, vector<1x8xf32>, vector<6x8xf32> -> vector<8x8xf32>
    %c0_48 = arith.constant 0 : index
    %c0_49 = arith.constant 0 : index
    %c0_50 = arith.constant 0 : index
    %89 = vector.load %arg5[%c0_48, %c0_49, %c0_50] : memref<1x8x8xf32, #tpu.memory_space<vmem>>, vector<1x8x8xf32>
    %90 = vector.shape_cast %89 : vector<1x8x8xf32> to vector<8x8xf32>
    %91 = vector.shape_cast %88 : vector<8x8xf32> to vector<1x8x8xf32>
    tpu.vector_store %arg5[%c0_48, %c0_49, %c0_50], %91 {strides = array<i32>} : memref<1x8x8xf32, #tpu.memory_space<vmem>>, vector<1x8x8xf32>,
    return
  }
  func.func @transform_0(%arg0: i32) -> (i32, i32, i32) {
    %c0_i32 = arith.constant 0 : i32
    %c0_i32_0 = arith.constant 0 : i32
    %c0_i32_1 = arith.constant 0 : i32
    return %arg0, %c0_i32, %c0_i32_0 : i32, i32, i32
  }
  func.func @transform_1(%arg0: i32) -> (i32, i32) {
    %c0_i32 = arith.constant 0 : i32
    %c0_i32_0 = arith.constant 0 : i32
    %c0_i32_1 = arith.constant 0 : i32
    return %c0_i32, %c0_i32_0 : i32, i32
  }
  func.func @transform_2(%arg0: i32) -> (i32, i32) {
    %c0_i32 = arith.constant 0 : i32
    %c0_i32_0 = arith.constant 0 : i32
    %c0_i32_1 = arith.constant 0 : i32
    return %c0_i32, %c0_i32_0 : i32, i32
  }
  func.func @transform_3(%arg0: i32) -> (i32, i32, i32) {
    %c0_i32 = arith.constant 0 : i32
    %c0_i32_0 = arith.constant 0 : i32
    %c0_i32_1 = arith.constant 0 : i32
    return %arg0, %c0_i32, %c0_i32_0 : i32, i32, i32
  }
  func.func @transform_4(%arg0: i32) -> (i32, i32, i32) {
    %c0_i32 = arith.constant 0 : i32
    %c0_i32_0 = arith.constant 0 : i32
    %c0_i32_1 = arith.constant 0 : i32
    return %arg0, %c0_i32, %c0_i32_0 : i32, i32, i32
  }
}

module attributes {stable_mosaic.version = 11 : i64} {
  func.func @_epilogue_kernel(%arg0: i32, %arg1: memref<64x32xbf16, #tpu.memory_space<vmem>>, %arg2: memref<64x32xbf16, #tpu.memory_space<vmem>>, %arg3: memref<2x32xf32, #tpu.memory_space<vmem>>, %arg4: memref<2x32xf32, #tpu.memory_space<vmem>>, %arg5: memref<64x32xf32, #tpu.memory_space<vmem>>) attributes {dimension_semantics = [#tpu.dimension_semantics<parallel>], iteration_bounds = array<i64: 2>, scalar_prefetch = 0 : i64, scratch_operands = 0 : i64, tpu.core_type = #tpu.core_type<tc>, window_params = [{transform_indices = @transform_0, window_bounds = array<i64: 64, 32>}, {transform_indices = @transform_1, window_bounds = array<i64: 64, 32>}, {pipeline_mode = #tpu.pipeline_mode<synchronous>, transform_indices = @transform_2, window_bounds = array<i64: 2, 32>}, {pipeline_mode = #tpu.pipeline_mode<synchronous>, transform_indices = @transform_3, window_bounds = array<i64: 2, 32>}, {transform_indices = @transform_4, window_bounds = array<i64: 64, 32>}]} {
    %c0 = arith.constant 0 : index
    %c0_0 = arith.constant 0 : index
    %0 = vector.load %arg3[%c0, %c0_0] : memref<2x32xf32, #tpu.memory_space<vmem>>, vector<2x32xf32>
    %c0_1 = arith.constant 0 : index
    %c0_2 = arith.constant 0 : index
    %1 = vector.load %arg4[%c0_1, %c0_2] : memref<2x32xf32, #tpu.memory_space<vmem>>, vector<2x32xf32>
    %c0_3 = arith.constant 0 : index
    %c0_4 = arith.constant 0 : index
    %2 = vector.load %arg1[%c0_3, %c0_4] : memref<64x32xbf16, #tpu.memory_space<vmem>>, vector<64x32xbf16>
    %3 = arith.extf %2 : vector<64x32xbf16> to vector<64x32xf32>
    %4 = vector.extract_strided_slice %0 {offsets = [0, 0], sizes = [1, 32], strides = [1, 1]} : vector<2x32xf32> to vector<1x32xf32>
    %5 = vector.broadcast %4 : vector<1x32xf32> to vector<64x32xf32>
    %6 = arith.mulf %3, %5 : vector<64x32xf32>
    %7 = vector.extract_strided_slice %0 {offsets = [1, 0], sizes = [1, 32], strides = [1, 1]} : vector<2x32xf32> to vector<1x32xf32>
    %8 = vector.broadcast %7 : vector<1x32xf32> to vector<64x32xf32>
    %9 = arith.addf %6, %8 : vector<64x32xf32>
    %c0_5 = arith.constant 0 : index
    %c0_6 = arith.constant 0 : index
    %10 = vector.load %arg2[%c0_5, %c0_6] : memref<64x32xbf16, #tpu.memory_space<vmem>>, vector<64x32xbf16>
    %11 = arith.extf %10 : vector<64x32xbf16> to vector<64x32xf32>
    %12 = vector.extract_strided_slice %1 {offsets = [0, 0], sizes = [1, 32], strides = [1, 1]} : vector<2x32xf32> to vector<1x32xf32>
    %13 = vector.broadcast %12 : vector<1x32xf32> to vector<64x32xf32>
    %14 = arith.mulf %11, %13 : vector<64x32xf32>
    %15 = vector.extract_strided_slice %1 {offsets = [1, 0], sizes = [1, 32], strides = [1, 1]} : vector<2x32xf32> to vector<1x32xf32>
    %16 = vector.broadcast %15 : vector<1x32xf32> to vector<64x32xf32>
    %17 = arith.addf %14, %16 : vector<64x32xf32>
    %18 = arith.addf %9, %17 : vector<64x32xf32>
    %cst = arith.constant 0.000000e+00 : f32
    %19 = vector.broadcast %cst : f32 to vector<64x32xf32>
    %20 = arith.maximumf %18, %19 : vector<64x32xf32>
    %c0_7 = arith.constant 0 : index
    %c0_8 = arith.constant 0 : index
    %21 = vector.load %arg5[%c0_7, %c0_8] : memref<64x32xf32, #tpu.memory_space<vmem>>, vector<64x32xf32>
    tpu.vector_store %arg5[%c0_7, %c0_8], %20 {strides = array<i32>} : memref<64x32xf32, #tpu.memory_space<vmem>>, vector<64x32xf32>,
    return
  }
  func.func @transform_0(%arg0: i32) -> (i32, i32) {
    %c0_i32 = arith.constant 0 : i32
    %c0_i32_0 = arith.constant 0 : i32
    return %arg0, %c0_i32 : i32, i32
  }
  func.func @transform_1(%arg0: i32) -> (i32, i32) {
    %c0_i32 = arith.constant 0 : i32
    %c0_i32_0 = arith.constant 0 : i32
    return %arg0, %c0_i32 : i32, i32
  }
  func.func @transform_2(%arg0: i32) -> (i32, i32) {
    %c0_i32 = arith.constant 0 : i32
    %c0_i32_0 = arith.constant 0 : i32
    %c0_i32_1 = arith.constant 0 : i32
    return %c0_i32, %c0_i32_0 : i32, i32
  }
  func.func @transform_3(%arg0: i32) -> (i32, i32) {
    %c0_i32 = arith.constant 0 : i32
    %c0_i32_0 = arith.constant 0 : i32
    %c0_i32_1 = arith.constant 0 : i32
    return %c0_i32, %c0_i32_0 : i32, i32
  }
  func.func @transform_4(%arg0: i32) -> (i32, i32) {
    %c0_i32 = arith.constant 0 : i32
    %c0_i32_0 = arith.constant 0 : i32
    return %arg0, %c0_i32 : i32, i32
  }
}

</mosaic_0001>

<bundles_post_ra>
// kernel: tpu_custom_call.1
= control target key start
LH: loop header
LB: loop body
LE: loop exit
PB: predicated region body
PF: predicated region fallthrough
CT: control target
= control target key end

     0   :  { %6 = vsyncpa [#allocation3], 0  ;;  %s440_s0 = inlined_call_operand.hbm [shape: f32[8,128], index: 0, kind: input, shape index: {}]   ;;  %s441_s1 = inlined_call_operand.hbm [shape: f32[16,128], index: 1, kind: output, shape index: {}]  }
   0x1   :  { %7 = vsyncpa [#allocation4], 0 }
   0x2   :  { %9 = vsyncpa [#allocation4 + $0x1], 0  ;;  %s356_s6 = smov 0   ;;  %s358_s7 = smov 0  }
   0x3   :  { %s360_s8 = smov 0   ;;  %s362_s9 = smov 0  }
   0x4 LB: > { %s377_s10 = sadd.s32 4294967295, %s343_s9   ;;  %s187_s11 = sadd.s32 4294967294, %s343_s9   ;;  %s343_s9 = sphi %s362_s9, %s447_s9   ;;  %s339_s8 = sphi %s360_s8, %s446_s8   ;;  %s335_s7 = sphi %s358_s7, %s445_s7   ;;  %s331_s6 = sphi %s356_s6, %s444_s6  }
   0x5   : > { %s381_s12 = sadd.s32 1, %s343_s9   ;;  %s43_s13 = sadd.s32 1, %s339_s8 }
   0x6   : > { %s40_s14 = ssub.s32 %s343_s9, %s381_s12  ;;  %p53_p0 = scmp.ne.s32.totalorder %s339_s8, %s335_s7 }
   0x7   : > { %p41_p1 = scmp.eq.s32.totalorder %s40_s14, 0  ;;  %p54_p2 = scmp.eq.s32.totalorder %s377_s10, 1 }
   0x8   : > { %p59_p3 = scmp.ne.s32.totalorder %s335_s7, %s331_s6  ;;  %p60_p4 = scmp.eq.s32.totalorder %s187_s11, 1 }
   0x9   : > { %s392_s15 = scalar_select %p41_p1, %s339_s8, %s43_s13  }
   0xa   : > { %p394_p5 = por %p54_p2, %p53_p0  ;;  %p398_p6 = por %p60_p4, %p59_p3 }
   0xb   : > { %p188_p7 = scmp.ge.s32.totalorder %s343_s9, 1  ;;  %p67_p8 = scmp.lt.s32.totalorder %s343_s9, 3 }
   0xc   : > { %p211_p9 = scmp.eq.s32.totalorder %s377_s10, 0  ;;  %s79_s20 = sshll.u32 %s440_s0, 4  ;;  %s80_s20 = int_to_ptr.hbm [resolvable:$true] %s79_s20 }
   0xd   : > { %p68_p10 = pnand %p188_p7, %p67_p8  ;;  %s345_s21 = smov [#allocation2]  }
   0xe   : > { %s81_s22 = sshll.u32 %s345_s21, 4  ;;  %s82_s22 = int_to_ptr.vmem [resolvable:$true] %s81_s22 }
   0xf   : > { %p203_p11 = pneg %p68_p10  ;;  %94 = sbr.rel (%p68_p10) target bundleno = 37 (0x25), region = 24 }
  0x11   : > { %p204_p12 = pnand %p211_p9, %p203_p11 }
  0x13   : > { %206 = dma.hbm_to_vmem [thread:$0]  (!%p204_p12), %s80_s20, 128, %s82_s22, [#allocation3]  }
  0x14   : > { %322 = dma.done.wait (%p211_p9), [#allocation3], 128  }
  0x15   : > { %324 = vsyncadd (%p211_p9), [#allocation3], 4294967168  ;;  %s107_s23 = sand.u32 1, %s335_s7   ;;  %s194_s24 = sshll.u32 %s377_s10, 3  ;;  %v110_v0 = vld [vmem:[#allocation2] sm:$0xff] }
  0x16   : > { %s192_s25 = sshll.u32 %s107_s23, 3  ;;  %s123_s28 = scalar_lea.hbm %s441_s1, %s194_s24 }
  0x17   : > { %s109_s29 = scalar_lea.vmem [#allocation5], %s192_s25  ;;  %s127_s2 = sshll.u32 %s123_s28, 4  ;;  %s128_s2 = int_to_ptr.hbm [resolvable:$true] %s127_s2 }
  0x18   : > { %s125_s30 = sshll.u32 %s109_s29, 4  ;;  %111 = vst [vmem:[%s109_s29] sm:$0xff] %v110_v0  ;;  %s113_s3 = scalar_lea.sflag [#allocation4], %s107_s23  ;;  %s126_s30 = int_to_ptr.vmem [resolvable:$true] %s125_s30 }
  0x19   : > { %s291_s4 = sshra.s32 %s128_s2, 4  ;;  %s297_s13 = scalar_lea.hbm %s441_s1, 16  ;;  %s292_s4 = int_to_ptr.hbm [resolvable:$true] %s291_s4 }
  0x1a   : > { %s293_s5 = scalar_lea.hbm %s292_s4, 8  ;;  %p298_p2 = scmp.lt.s32.totalorder %s292_s4, %s441_s1 }
  0x1b   : > { %p294_p13 = scmp.ne.s32.totalorder %s292_s4, %s293_s5  ;;  %p299_p3 = scmp.lt.s32.totalorder %s297_s13, %s293_s5 }
  0x1d   : > { %p295_p0 = pnand %p294_p13, %p394_p5  ;;  %p300_p4 = por %p299_p3, %p298_p2 }
  0x1f   : > { %p296_p1 = pneg %p295_p0 }
  0x21   : > { %p301_p7 = pnand %p300_p4, %p296_p1 }
  0x23   : > { %304 = shalt.err (!%p301_p7)
}
  0x24   : > { %201 = dma.vmem_to_hbm [thread:$0]  (%p394_p5), %s126_s30, 128, %s128_s2, %s113_s3  }
  0x25 PF: > { %p213_p8 = scmp.ge.s32.totalorder %s343_s9, 2  ;;  %s139_s19 = sand.u32 1, %s331_s6  }
  0x26   : > { %s140_s20 = scalar_lea.sflag [#allocation4], %s139_s19 }
  0x27   : > { %p208_p9 = pnand %p213_p8, %p398_p6 }
  0x29   : > { %p209_p10 = pneg %p208_p9 }
  0x2b   : > { %326 = dma.done.wait (%p209_p10), %s140_s20, 128  }
  0x2c   : > { %328 = vsyncadd (%p209_p10), %s140_s20, 4294967168  ;;  %p12_p11 = scmp.ge.s32.totalorder %s381_s12, 4   ;;  %s444_s6 = smov %s335_s7 }
  0x2d   : > { %s445_s7 = smov %s339_s8  ;;  %s446_s8 = smov %s392_s15 }
  0x2e   : > { %s447_s9 = smov %s381_s12  ;;  %14 = sbr.rel (!%p12_p11) target bundleno = 4 (0x4), region = 61 }
  0x33   :  { %146 = vsyncpa [#allocation3], 1 }
  0x34   :  { %148 = vsyncpa [#allocation3 + $0x1], 1 }
  0x35   :  { %149 = vsyncpa [#allocation4], 1 }
  0x36   :  { %151 = vsyncpa [#allocation4 + $0x1], 1 }

// kernel: resnet50_block_forward.4
= control target key start
LH: loop header
LB: loop body
LE: loop exit
PB: predicated region body
PF: predicated region fallthrough
CT: control target
= control target key end

     0   :  { %s789_s21 = smov 0   ;;  %s904_s0 = inlined_call_operand.vmem [shape: bf16[128,8], index: 0, kind: input, shape index: {}]   ;;  %s905_s1 = inlined_call_operand.vmem [shape: bf16[8,8], index: 1, kind: input, shape index: {}]   ;;  %s906_s2 = inlined_call_operand.vmem [shape: bf16[8,32], index: 2, kind: input, shape index: {}]   ;;  %s907_s3 = inlined_call_operand.vmem [shape: bf16[128,8], index: 3, kind: output, shape index: {0}]   ;;  %s908_s4 = inlined_call_operand.vmem [shape: bf16[128,32], index: 4, kind: output, shape index: {1}]   ;;  %s909_s5 = inlined_call_operand.vmem [shape: f32[2,8,8], index: 5, kind: output, shape index: {2}]   ;;  %s910_s6 = inlined_call_operand.vmem [shape: f32[2,8,32], index: 6, kind: output, shape index: {3}]  }
   0x1 LB: > { %s795_s22 = sadd.s32 4294967295, %s752_s21   ;;  %p697_p0 = scmp.ge.s32.totalorder %s752_s21, 1  ;;  %s752_s21 = sphi %s789_s21, %s17_s21  }
   0x2   : > { %p220_p1 = scmp.lt.s32.totalorder %s752_s21, 3 }
   0x4   : > { %p221_p2 = pnand %p697_p0, %p220_p1 }
   0x5   : > { %s698_s27 = sshll.u32 (!%p221_p2), %s795_s22, 3  ;;  %p281_p4 = scmp.lt.s32.totalorder (!%p221_p2), %s795_s22, 1 }
   0x6   : > { %224 = sbr.rel (%p221_p2) target bundleno = 195 (0xc3), region = 32  ;;  %p264_p3 = scmp.lt.s32.totalorder (!%p221_p2), %s698_s27, 15 }
   0xb   : > { %v298_v0 = vld [vmem:[%s905_s1] sm:$0xf]  ;;  %vm332_vm0 = vcmask 1043456   ;;  %s912_s27 = smov (!%p264_p3, %s698_s27), 15  ;;  %vm319_vm1 = vcmask 64512   ;;  %vm406_vm2 = vcmask 60416  }
   0xc   : > { %v365_v1 = vld [vmem:[%s906_s2] sm:$0xf]  ;;  %v334_v2 = vsel %vm332_vm0, %v298_v0, 0  ;;  %s699_s28 = sshll.u32 %s912_s27, 2  ;;  %vm423_vm3 = vcmask 257024   ;;  %vm487_vm4 = vcmask 261120  }
   0xd   : > { %v367_v3 = vsel %vm332_vm0, %v365_v1, 0  ;;  %343 = vmatpush.bf16.msra.mxu0 %v334_v2  ;;  %736 = vmatpush.bf16.msra.mxu2 %v334_v2  ;;  %s267_s7 = scalar_lea.vmem %s904_s0, %s699_s28  ;;  %s820_s10 = scalar_lea.vmem %s907_s3, %s699_s28  ;;  %vm482_vm5 = vcmask 1040384   ;;  %vm484_vm6 = vcmask 1041408  }
   0xe   : > { %376 = vmatpush.bf16.msra.mxu1 %v367_v3  ;;  %737 = vmatpush.bf16.msra.mxu3 %v367_v3  ;;  %v732_v4 = vld [vmem:[%s267_s7] sm:$0xff]  ;;  %v734_v5 = vld [vmem:[%s267_s7 + $0x10] sm:$0xff]  ;;  %v733_v6 = vld [vmem:[%s267_s7 + $0x8] sm:$0xff]  ;;  %s825_s13 = scalar_lea.vmem %s908_s4, %s699_s28  ;;  %s914_s22 = smov (!%p281_p4, %s795_s22), 1 }
   0xf   : > { %v735_v7 = vld [vmem:[%s267_s7 + $0x18] sm:$0xff]  ;;  %s704_s14 = sshll.u32 %s914_s22, 3 }
  0x10   : > { %722 = vmatmul.msk.bf16.vlgmr.msra.gmra.mxu0 %vm319_vm1, %v732_v4  ;;  %724 = vmatmul.msk.bf16.vlgmr.msra.gmra.mxu2 %vm319_vm1, %v734_v5  ;;  %s284_s17 = scalar_lea.vmem %s909_s5, %s704_s14  ;;  %s288_s20 = scalar_lea.vmem %s910_s6, %s704_s14 }
  0x11   : > { %726 = vmatmul.msk.bf16.vlgmr.msra.gmra.mxu1 %vm319_vm1, %v732_v4  ;;  %728 = vmatmul.msk.bf16.vlgmr.msra.gmra.mxu3 %vm319_vm1, %v734_v5 }
  0x20   : > { %723 = vmatmul.msk.bf16.gmra.mxu0 %vm319_vm1, %v733_v6  ;;  %725 = vmatmul.msk.bf16.gmra.mxu2 %vm319_vm1, %v735_v7 }
  0x21   : > { %727 = vmatmul.msk.bf16.gmra.mxu1 %vm319_vm1, %v733_v6  ;;  %729 = vmatmul.msk.bf16.gmra.mxu3 %vm319_vm1, %v735_v7 }
  0x8d   : > { %v345_v8 = vpop.f32.mrf.mxu0 }
  0x8e   : > { %v398_v9 = vpack.c.bf16 %v345_v8, %v345_v8  ;;  %v378_v10 = vpop.f32.mrf.mxu1  ;;  %v453_v20 = vmul.f32 %v345_v8, %v345_v8  ;;  %v432_v31 = vsel %vm319_vm1, %v345_v8, 0.0 }
  0x8f   : > { %v415_v11 = vpack.c.bf16 %v378_v10, %v378_v10  ;;  %v509_v21 = vmul.f32 %v378_v10, %v378_v10  ;;  %v488_v32 = vsel %vm487_vm4, %v378_v10, 0.0 }
  0x90   : > { %407 = vst.msk [vmem:[%s820_s10] sm:$0xf] %vm406_vm2, %v398_v9  ;;  %v461_v35 = vsel %vm319_vm1, %v453_v20, 0.0 }
  0x91   : > { %424 = vst.msk [vmem:[%s825_s13] sm:$0xf] %vm423_vm3, %v415_v11  ;;  %v517_v36 = vsel %vm487_vm4, %v509_v21, 0.0 }
  0x93   : > { %v355_v12 = vpop.f32.mrf.mxu2 }
  0x94   : > { %v402_v13 = vpack.c.bf16 %v355_v12, %v355_v12  ;;  %v388_v14 = vpop.f32.mrf.mxu3  ;;  %v457_v27 = vmul.f32 %v355_v12, %v355_v12  ;;  %v439_v43 = vsel %vm319_vm1, %v355_v12, 0.0 }
  0x95   : > { %v419_v15 = vpack.c.bf16 %v388_v14, %v388_v14  ;;  %v347_v16 = vpop.f32.mrf.mxu0  ;;  %v513_v28 = vmul.f32 %v388_v14, %v388_v14  ;;  %v495_v45 = vsel %vm487_vm4, %v388_v14, 0.0 }
  0x96   : > { %411 = vst.msk [vmem:[%s820_s10 + $0x10] sm:$0xf] %vm406_vm2, %v402_v13  ;;  %v399_v17 = vpack.c.bf16 %v347_v16, %v347_v16  ;;  %v380_v18 = vpop.f32.mrf.mxu1  ;;  %v454_v23 = vmul.f32 %v347_v16, %v347_v16  ;;  %v433_v37 = vsel %vm319_vm1, %v347_v16, 0.0  ;;  %v468_v44 = vsel %vm319_vm1, %v457_v27, 0.0 }
  0x97   : > { %428 = vst.msk [vmem:[%s825_s13 + $0x10] sm:$0xf] %vm423_vm3, %v419_v15  ;;  %v416_v19 = vpack.c.bf16 %v380_v18, %v380_v18  ;;  %v510_v24 = vmul.f32 %v380_v18, %v380_v18  ;;  %v489_v40 = vsel %vm487_vm4, %v380_v18, 0.0  ;;  %v524_v46 = vsel %vm487_vm4, %v513_v28, 0.0 }
  0x98   : > { %408 = vst.msk [vmem:[%s820_s10 + $0x4] sm:$0xf] %vm406_vm2, %v399_v17  ;;  %v462_v39 = vsel %vm319_vm1, %v454_v23, 0.0  ;;  %v434_v47 = vadd.f32 %v433_v37, %v432_v31  ;;  %v490_v52 = vadd.f32 %v489_v40, %v488_v32 }
  0x99   : > { %425 = vst.msk [vmem:[%s825_s13 + $0x4] sm:$0xf] %vm423_vm3, %v416_v19  ;;  %v518_v41 = vsel %vm487_vm4, %v510_v24, 0.0  ;;  %v463_v51 = vadd.f32 %v462_v39, %v461_v35 }
  0x9a   : > { %v519_v53 = vadd.f32 %v518_v41, %v517_v36 }
  0x9b   : > { %v357_v22 = vpop.f32.mrf.mxu2 }
  0x9c   : > { %v403_v25 = vpack.c.bf16 %v357_v22, %v357_v22  ;;  %v390_v26 = vpop.f32.mrf.mxu3  ;;  %v441_v54 = vsel %vm319_vm1, %v357_v22, 0.0  ;;  %v458_v56 = vmul.f32 %v357_v22, %v357_v22 }
  0x9d   : > { %v420_v29 = vpack.c.bf16 %v390_v26, %v390_v26  ;;  %v350_v30 = vpop.f32.mrf.mxu0  ;;  %v497_v57 = vsel %vm487_vm4, %v390_v26, 0.0  ;;  %v514_v61 = vmul.f32 %v390_v26, %v390_v26 }
  0x9e   : > { %412 = vst.msk [vmem:[%s820_s10 + $0x14] sm:$0xf] %vm406_vm2, %v403_v25  ;;  %v400_v33 = vpack.c.bf16 %v350_v30, %v350_v30  ;;  %v383_v34 = vpop.f32.mrf.mxu1  ;;  %v455_v42 = vmul.f32 %v350_v30, %v350_v30  ;;  %v435_v48 = vsel %vm319_vm1, %v350_v30, 0.0  ;;  %v470_v11 = vsel %vm319_vm1, %v458_v56, 0.0 }
  0x9f   : > { %429 = vst.msk [vmem:[%s825_s13 + $0x14] sm:$0xf] %vm423_vm3, %v420_v29  ;;  %v417_v38 = vpack.c.bf16 %v383_v34, %v383_v34  ;;  %v491_v49 = vsel %vm487_vm4, %v383_v34, 0.0  ;;  %v511_v50 = vmul.f32 %v383_v34, %v383_v34  ;;  %v436_v62 = vadd.f32 %v435_v48, %v434_v47 }
  0xa0   : > { %409 = vst.msk [vmem:[%s820_s10 + $0x8] sm:$0xf] %vm406_vm2, %v400_v33  ;;  %v464_v58 = vsel %vm319_vm1, %v455_v42, 0.0  ;;  %v492_v63 = vadd.f32 %v491_v49, %v490_v52  ;;  %v526_v15 = vsel %vm487_vm4, %v514_v61, 0.0 }
  0xa1   : > { %426 = vst.msk [vmem:[%s825_s13 + $0x8] sm:$0xf] %vm423_vm3, %v417_v38  ;;  %v520_v2 = vsel %vm487_vm4, %v511_v50, 0.0  ;;  %v465_v7 = vadd.f32 %v464_v58, %v463_v51 }
  0xa2   : > { %v521_v16 = vadd.f32 %v520_v2, %v519_v53 }
  0xa3   : > { %v360_v55 = vpop.f32.mrf.mxu2 }
  0xa4   : > { %v404_v59 = vpack.c.bf16 %v360_v55, %v360_v55  ;;  %v393_v60 = vpop.f32.mrf.mxu3  ;;  %v443_v19 = vsel %vm319_vm1, %v360_v55, 0.0  ;;  %v459_v20 = vmul.f32 %v360_v55, %v360_v55 }
  0xa5   : > { %v421_v0 = vpack.c.bf16 %v393_v60, %v393_v60  ;;  %v352_v1 = vpop.f32.mrf.mxu0  ;;  %v499_v23 = vsel %vm487_vm4, %v393_v60, 0.0  ;;  %v515_v28 = vmul.f32 %v393_v60, %v393_v60 }
  0xa6   : > { %413 = vst.msk [vmem:[%s820_s10 + $0x18] sm:$0xf] %vm406_vm2, %v404_v59  ;;  %v401_v3 = vpack.c.bf16 %v352_v1, %v352_v1  ;;  %v437_v4 = vsel %vm319_vm1, %v352_v1, 0.0  ;;  %v456_v5 = vmul.f32 %v352_v1, %v352_v1  ;;  %v385_v6 = vpop.f32.mrf.mxu1  ;;  %v472_v37 = vsel %vm319_vm1, %v459_v20, 0.0 }
  0xa7   : > { %430 = vst.msk [vmem:[%s825_s13 + $0x18] sm:$0xf] %vm423_vm3, %v421_v0  ;;  %v438_v8 = vadd.f32 %v437_v4, %v436_v62  ;;  %v418_v9 = vpack.c.bf16 %v385_v6, %v385_v6  ;;  %v493_v10 = vsel %vm487_vm4, %v385_v6, 0.0  ;;  %v512_v14 = vmul.f32 %v385_v6, %v385_v6 }
  0xa8   : > { %410 = vst.msk [vmem:[%s820_s10 + $0xc] sm:$0xf] %vm406_vm2, %v401_v3  ;;  %v466_v12 = vsel %vm319_vm1, %v456_v5, 0.0  ;;  %v494_v13 = vadd.f32 %v493_v10, %v492_v63 }
  0xa9   : > { %v440_v17 = vadd.f32 %v439_v43, %v438_v8  ;;  %v467_v18 = vadd.f32 %v466_v12, %v465_v7  ;;  %427 = vst.msk [vmem:[%s825_s13 + $0xc] sm:$0xf] %vm423_vm3, %v418_v9  ;;  %v522_v22 = vsel %vm487_vm4, %v512_v14, 0.0 }
  0xaa   : > { %v496_v21 = vadd.f32 %v495_v45, %v494_v13  ;;  %v523_v25 = vadd.f32 %v522_v22, %v521_v16  ;;  %v528_v45 = vsel %vm487_vm4, %v515_v28, 0.0 }
  0xab   : > { %v469_v24 = vadd.f32 %v468_v44, %v467_v18  ;;  %v362_v26 = vpop.f32.mrf.mxu2  ;;  %v442_v27 = vadd.f32 %v441_v54, %v440_v17 }
  0xac   : > { %v405_v29 = vpack.c.bf16 %v362_v26, %v362_v26  ;;  %v460_v30 = vmul.f32 %v362_v26, %v362_v26  ;;  %v395_v31 = vpop.f32.mrf.mxu3  ;;  %v498_v32 = vadd.f32 %v497_v57, %v496_v21  ;;  %v525_v33 = vadd.f32 %v524_v46, %v523_v25 }
  0xad   : > { %v444_v34 = vadd.f32 %v443_v19, %v442_v27  ;;  %v471_v35 = vadd.f32 %v470_v11, %v469_v24  ;;  %v422_v36 = vpack.c.bf16 %v395_v31, %v395_v31  ;;  %v445_v38 = vsel %vm319_vm1, %v362_v26, 0.0 }
  0xae   : > { %414 = vst.msk [vmem:[%s820_s10 + $0x1c] sm:$0xf] %vm406_vm2, %v405_v29  ;;  %v500_v39 = vadd.f32 %v499_v23, %v498_v32  ;;  %v516_v40 = vmul.f32 %v395_v31, %v395_v31  ;;  %v501_v43 = vsel %vm487_vm4, %v395_v31, 0.0  ;;  %v527_v44 = vadd.f32 %v526_v15, %v525_v33 }
  0xaf   : > { %v446_v41 = vadd.f32 %v445_v38, %v444_v34  ;;  %v473_v42 = vadd.f32 %v472_v37, %v471_v35  ;;  %431 = vst.msk [vmem:[%s825_s13 + $0x1c] sm:$0xf] %vm423_vm3, %v422_v36  ;;  %v474_v46 = vsel %vm319_vm1, %v460_v30, 0.0 }
  0xb0   : > { %v502_v47 = vadd.f32 %v501_v43, %v500_v39  ;;  %v529_v50 = vadd.f32 %v528_v45, %v527_v44  ;;  %v530_v52 = vsel %vm487_vm4, %v516_v40, 0.0 }
  0xb1   : > { %v447_v48 = vrot.slane %v446_v41, 4  ;;  %v475_v49 = vadd.f32 %v474_v46, %v473_v42 }
  0xb2   : > { %v503_v51 = vrot.slane %v502_v47, 4  ;;  %v531_v55 = vadd.f32 %v530_v52, %v529_v50 }
  0xb3   : > { %v448_v53 = vadd.f32 %v447_v48, %v446_v41  ;;  %v476_v54 = vrot.slane %v475_v49, 4 }
  0xb4   : > { %v504_v56 = vadd.f32 %v503_v51, %v502_v47  ;;  %v532_v59 = vrot.slane %v531_v55, 4 }
  0xb5   : > { %v449_v57 = vrot.slane %v448_v53, 2  ;;  %v477_v58 = vadd.f32 %v476_v54, %v475_v49 }
  0xb6   : > { %v505_v60 = vrot.slane %v504_v56, 2  ;;  %v533_v63 = vadd.f32 %v532_v59, %v531_v55 }
  0xb7   : > { %v450_v61 = vadd.f32 %v449_v57, %v448_v53  ;;  %v478_v62 = vrot.slane %v477_v58, 2 }
  0xb8   : > { %v506_v0 = vadd.f32 %v505_v60, %v504_v56  ;;  %v534_v3 = vrot.slane %v533_v63, 2 }
  0xb9   : > { %v451_v1 = vrot.slane %v450_v61, 1  ;;  %v479_v2 = vadd.f32 %v478_v62, %v477_v58 }
  0xba   : > { %v507_v5 = vrot.slane %v506_v0, 1  ;;  %v535_v6 = vadd.f32 %v534_v3, %v533_v63 }
  0xbb   : > { %v480_v4 = vrot.slane %v479_v2, 1  ;;  %v452_v7 = vadd.f32 %v451_v1, %v450_v61 }
  0xbc   : > { %v536_v9 = vrot.slane %v535_v6, 1  ;;  %v508_v11 = vadd.f32 %v507_v5, %v506_v0 }
  0xbd   : > { %v481_v8 = vadd.f32 %v480_v4, %v479_v2 }
  0xbe   : > { %v537_v12 = vadd.f32 %v536_v9, %v535_v6 }
  0xbf   : > { %v483_v10 = vsel %vm482_vm5, %v452_v7, %v481_v8 }
  0xc0   : > { %v485_v13 = vsel %vm484_vm6, %v483_v10, 0.0  ;;  %v538_v14 = vsel %vm482_vm5, %v508_v11, %v537_v12 }
  0xc1   : > { %486 = vst.msk [vmem:[%s284_s17] sm:$0xff] %vm319_vm1, %v485_v13  ;;  %v539_v15 = vsel %vm484_vm6, %v538_v14, 0.0 }
  0xc2   : > { %540 = vst.msk [vmem:[%s288_s20] sm:$0xff] %vm487_vm4, %v539_v15 }
  0xc3 PF: > { %s17_s21 = sadd.s32 1, %s752_s21  }
  0xc4   : > { %p14_p5 = scmp.ge.s32.totalorder %s17_s21, 4  }
  0xc6   :  { %16 = sbr.rel (!%p14_p5) target bundleno = 1 (0x1), region = 98 }

// kernel: resnet50_block_forward.6
= control target key start
LH: loop header
LB: loop body
LE: loop exit
PB: predicated region body
PF: predicated region fallthrough
CT: control target
= control target key end

     0   :  { %s546_s15 = smov 0   ;;  %s623_s0 = inlined_call_operand.vmem [shape: bf16[128,8], index: 0, kind: input, shape index: {}]   ;;  %s624_s1 = inlined_call_operand.vmem [shape: f32[2,8], index: 1, kind: input, shape index: {}]   ;;  %s625_s2 = inlined_call_operand.vmem [shape: bf16[8,32], index: 2, kind: input, shape index: {}]   ;;  %s626_s3 = inlined_call_operand.vmem [shape: bf16[128,32], index: 3, kind: output, shape index: {0}]   ;;  %s627_s4 = inlined_call_operand.vmem [shape: f32[2,8,32], index: 4, kind: output, shape index: {1}]  }
   0x1 LB: > { %s552_s16 = sadd.s32 4294967295, %s519_s15   ;;  %p471_p0 = scmp.ge.s32.totalorder %s519_s15, 1  ;;  %s519_s15 = sphi %s546_s15, %s15_s15  }
   0x2   : > { %p166_p1 = scmp.lt.s32.totalorder %s519_s15, 3 }
   0x4   : > { %p167_p2 = pnand %p471_p0, %p166_p1 }
   0x5   : > { %s472_s19 = sshll.u32 (!%p167_p2), %s552_s16, 3  ;;  %p208_p4 = scmp.lt.s32.totalorder (!%p167_p2), %s552_s16, 1 }
   0x6   : > { %170 = sbr.rel (%p167_p2) target bundleno = 191 (0xbf), region = 32  ;;  %p197_p3 = scmp.lt.s32.totalorder (!%p167_p2), %s472_s19, 15 }
   0xb   : > { %v260_v0 = vld [vmem:[%s625_s2] sm:$0xf]  ;;  %vm274_vm0 = vcmask 1043456   ;;  %s629_s19 = smov (!%p197_p3, %s472_s19), 15  ;;  %vm261_vm1 = vcmask 64512   ;;  %vm315_vm2 = vcmask 257024  }
   0xc   : > { %v276_v1 = vsel %vm274_vm0, %v260_v0, 0  ;;  %v221_v2 = vld [vmem:[%s624_s1] sm:$0x3]  ;;  %s473_s22 = sshll.u32 %s629_s19, 2  ;;  %vm324_vm3 = vcmask 261120   ;;  %s631_s16 = smov (!%p208_p4, %s552_s16), 1 }
   0xd   : > { %285 = vmatpush.bf16.msra.mxu0 %v276_v1  ;;  %502 = vmatpush.bf16.msra.mxu1 %v276_v1  ;;  %s200_s25 = scalar_lea.vmem %s623_s0, %s473_s22  ;;  %v230_v3 = vperm.slane %v221_v2, 0  ;;  %v239_v5 = vperm.slane %v221_v2, 1  ;;  %s580_s28 = scalar_lea.vmem %s626_s3, %s473_s22  ;;  %vm375_vm4 = vcmask 1040384   ;;  %vm377_vm5 = vcmask 1041408  }
   0xe   : > { %503 = vmatpush.bf16.msra.mxu2 %v276_v1  ;;  %504 = vmatpush.bf16.msra.mxu3 %v276_v1  ;;  %v484_v4 = vld [vmem:[%s200_s25] sm:$0xff]   ;;  %v499_v6 = vld [vmem:[%s200_s25 + $0x8] sm:$0xff]   ;;  %v500_v7 = vld [vmem:[%s200_s25 + $0x10] sm:$0xff]   ;;  %s476_s29 = sshll.u32 %s631_s16, 3 }
   0xf   : > { %v485_v8 = vunpack.c.l.bf16 %v484_v4  ;;  %v486_v9 = vunpack.c.h.bf16 %v484_v4  ;;  %v489_v10 = vunpack.c.l.bf16 %v499_v6  ;;  %v490_v11 = vunpack.c.h.bf16 %v499_v6  ;;  %v501_v12 = vld [vmem:[%s200_s25 + $0x18] sm:$0xff]   ;;  %s211_s6 = scalar_lea.vmem %s627_s4, %s476_s29 }
  0x10   : > { %v493_v13 = vunpack.c.l.bf16 %v500_v7  ;;  %v494_v14 = vunpack.c.h.bf16 %v500_v7  ;;  %v497_v15 = vunpack.c.l.bf16 %v501_v12  ;;  %v498_v16 = vunpack.c.h.bf16 %v501_v12 }
  0x11   : > { %v231_v17 = vmul.f32 %v485_v8, %v230_v3  ;;  %v232_v18 = vmul.f32 %v486_v9, %v230_v3  ;;  %v233_v19 = vmul.f32 %v489_v10, %v230_v3  ;;  %v234_v20 = vmul.f32 %v490_v11, %v230_v3 }
  0x12   : > { %v235_v21 = vmul.f32 %v493_v13, %v230_v3  ;;  %v236_v22 = vmul.f32 %v494_v14, %v230_v3  ;;  %v237_v23 = vmul.f32 %v497_v15, %v230_v3  ;;  %v238_v24 = vmul.f32 %v498_v16, %v230_v3 }
  0x13   : > { %v240_v25 = vadd.f32 %v239_v5, %v231_v17  ;;  %v241_v26 = vadd.f32 %v239_v5, %v232_v18  ;;  %v242_v27 = vadd.f32 %v239_v5, %v233_v19  ;;  %v243_v28 = vadd.f32 %v239_v5, %v234_v20 }
  0x14   : > { %v244_v29 = vadd.f32 %v239_v5, %v235_v21  ;;  %v245_v30 = vadd.f32 %v239_v5, %v236_v22  ;;  %v246_v31 = vadd.f32 %v239_v5, %v237_v23  ;;  %v247_v32 = vadd.f32 %v239_v5, %v238_v24 }
  0x15   : > { %v248_v33 = vmax.f32 %v240_v25, 0.0  ;;  %v249_v34 = vmax.f32 %v241_v26, 0.0  ;;  %v250_v35 = vmax.f32 %v242_v27, 0.0  ;;  %v251_v36 = vmax.f32 %v243_v28, 0.0 }
  0x16   : > { %v252_v37 = vmax.f32 %v244_v29, 0.0  ;;  %v253_v38 = vmax.f32 %v245_v30, 0.0  ;;  %v254_v39 = vmax.f32 %v246_v31, 0.0  ;;  %v255_v40 = vmax.f32 %v247_v32, 0.0 }
  0x17   : > { %v256_v41 = vpack.c.bf16 %v249_v34, %v248_v33  ;;  %v257_v42 = vpack.c.bf16 %v251_v36, %v250_v35 }
  0x18   : > { %v258_v43 = vpack.c.bf16 %v253_v38, %v252_v37  ;;  %v259_v44 = vpack.c.bf16 %v255_v40, %v254_v39 }
  0x19   : > { %477 = vmatmul.msk.bf16.vlgmr.msra.gmra.mxu0 %vm261_vm1, %v256_v41  ;;  %478 = vmatmul.msk.bf16.vlgmr.msra.gmra.mxu1 %vm261_vm1, %v257_v42 }
  0x1a   : > { %479 = vmatmul.msk.bf16.vlgmr.msra.gmra.mxu2 %vm261_vm1, %v258_v43  ;;  %480 = vmatmul.msk.bf16.vlgmr.msra.gmra.mxu3 %vm261_vm1, %v259_v44 }
  0x96   : > { %v287_v45 = vpop.f32.mrf.mxu0  ;;  %v292_v46 = vpop.f32.mrf.mxu1 }
  0x97   : > { %v307_v47 = vpack.c.bf16 %v287_v45, %v287_v45  ;;  %v309_v48 = vpack.c.bf16 %v292_v46, %v292_v46  ;;  %v346_v51 = vmul.f32 %v287_v45, %v287_v45  ;;  %v325_v56 = vsel %vm324_vm3, %v287_v45, 0.0 }
  0x98   : > { %v348_v59 = vmul.f32 %v292_v46, %v292_v46  ;;  %v328_v63 = vsel %vm324_vm3, %v292_v46, 0.0 }
  0x99   : > { %316 = vst.msk [vmem:[%s580_s28] sm:$0xf] %vm315_vm2, %v307_v47  ;;  %v354_v0 = vsel %vm324_vm3, %v346_v51, 0.0 }
  0x9a   : > { %318 = vst.msk [vmem:[%s580_s28 + $0x8] sm:$0xf] %vm315_vm2, %v309_v48  ;;  %v357_v6 = vsel %vm324_vm3, %v348_v59, 0.0 }
  0x9d   : > { %v297_v49 = vpop.f32.mrf.mxu2  ;;  %v302_v50 = vpop.f32.mrf.mxu3 }
  0x9e   : > { %v311_v52 = vpack.c.bf16 %v297_v49, %v297_v49  ;;  %v313_v53 = vpack.c.bf16 %v302_v50, %v302_v50  ;;  %v289_v54 = vpop.f32.mrf.mxu0  ;;  %v294_v55 = vpop.f32.mrf.mxu1  ;;  %v350_v7 = vmul.f32 %v297_v49, %v297_v49  ;;  %v332_v9 = vsel %vm324_vm3, %v297_v49, 0.0 }
  0x9f   : > { %v308_v57 = vpack.c.bf16 %v289_v54, %v289_v54  ;;  %v326_v58 = vsel %vm324_vm3, %v289_v54, 0.0  ;;  %v347_v61 = vmul.f32 %v289_v54, %v289_v54  ;;  %v310_v62 = vpack.c.bf16 %v294_v55, %v294_v55 }
  0xa0   : > { %320 = vst.msk [vmem:[%s580_s28 + $0x10] sm:$0xf] %vm315_vm2, %v311_v52  ;;  %v327_v60 = vadd.f32 %v326_v58, %v325_v56  ;;  %v349_v3 = vmul.f32 %v294_v55, %v294_v55  ;;  %v330_v5 = vsel %vm324_vm3, %v294_v55, 0.0  ;;  %v361_v20 = vsel %vm324_vm3, %v350_v7, 0.0 }
  0xa1   : > { %322 = vst.msk [vmem:[%s580_s28 + $0x18] sm:$0xf] %vm315_vm2, %v313_v53  ;;  %v355_v1 = vsel %vm324_vm3, %v347_v61, 0.0  ;;  %v352_v21 = vmul.f32 %v302_v50, %v302_v50  ;;  %v336_v23 = vsel %vm324_vm3, %v302_v50, 0.0 }
  0xa2   : > { %317 = vst.msk [vmem:[%s580_s28 + $0x4] sm:$0xf] %vm315_vm2, %v308_v57  ;;  %v329_v2 = vadd.f32 %v328_v63, %v327_v60  ;;  %v356_v4 = vadd.f32 %v355_v1, %v354_v0  ;;  %v359_v13 = vsel %vm324_vm3, %v349_v3, 0.0 }
  0xa3   : > { %319 = vst.msk [vmem:[%s580_s28 + $0xc] sm:$0xf] %vm315_vm2, %v310_v62  ;;  %v365_v30 = vsel %vm324_vm3, %v352_v21, 0.0 }
  0xa4   : > { %v331_v8 = vadd.f32 %v330_v5, %v329_v2  ;;  %v358_v10 = vadd.f32 %v357_v6, %v356_v4 }
  0xa5   : > { %v299_v11 = vpop.f32.mrf.mxu2  ;;  %v304_v12 = vpop.f32.mrf.mxu3 }
  0xa6   : > { %v312_v14 = vpack.c.bf16 %v299_v11, %v299_v11  ;;  %v333_v15 = vadd.f32 %v332_v9, %v331_v8  ;;  %v351_v16 = vmul.f32 %v299_v11, %v299_v11  ;;  %v360_v17 = vadd.f32 %v359_v13, %v358_v10 }
  0xa7   : > { %v334_v18 = vsel %vm324_vm3, %v299_v11, 0.0  ;;  %v314_v19 = vpack.c.bf16 %v304_v12, %v304_v12  ;;  %v353_v27 = vmul.f32 %v304_v12, %v304_v12  ;;  %v338_v29 = vsel %vm324_vm3, %v304_v12, 0.0 }
  0xa8   : > { %321 = vst.msk [vmem:[%s580_s28 + $0x14] sm:$0xf] %vm315_vm2, %v312_v14  ;;  %v335_v22 = vadd.f32 %v334_v18, %v333_v15  ;;  %v362_v24 = vadd.f32 %v361_v20, %v360_v17  ;;  %v363_v25 = vsel %vm324_vm3, %v351_v16, 0.0 }
  0xa9   : > { %323 = vst.msk [vmem:[%s580_s28 + $0x1c] sm:$0xf] %vm315_vm2, %v314_v19  ;;  %v367_v34 = vsel %vm324_vm3, %v353_v27, 0.0 }
  0xaa   : > { %v337_v26 = vadd.f32 %v336_v23, %v335_v22  ;;  %v364_v28 = vadd.f32 %v363_v25, %v362_v24 }
  0xac   : > { %v339_v31 = vadd.f32 %v338_v29, %v337_v26  ;;  %v366_v32 = vadd.f32 %v365_v30, %v364_v28 }
  0xae   : > { %v340_v33 = vrot.slane %v339_v31, 4  ;;  %v368_v35 = vadd.f32 %v367_v34, %v366_v32 }
  0xb0   : > { %v341_v36 = vadd.f32 %v340_v33, %v339_v31  ;;  %v369_v37 = vrot.slane %v368_v35, 4 }
  0xb2   : > { %v342_v38 = vrot.slane %v341_v36, 2  ;;  %v370_v39 = vadd.f32 %v369_v37, %v368_v35 }
  0xb4   : > { %v343_v40 = vadd.f32 %v342_v38, %v341_v36  ;;  %v371_v41 = vrot.slane %v370_v39, 2 }
  0xb6   : > { %v344_v42 = vrot.slane %v343_v40, 1  ;;  %v372_v43 = vadd.f32 %v371_v41, %v370_v39 }
  0xb8   : > { %v373_v44 = vrot.slane %v372_v43, 1  ;;  %v345_v45 = vadd.f32 %v344_v42, %v343_v40 }
  0xba   : > { %v374_v46 = vadd.f32 %v373_v44, %v372_v43 }
  0xbc   : > { %v376_v47 = vsel %vm375_vm4, %v345_v45, %v374_v46 }
  0xbd   : > { %v378_v48 = vsel %vm377_vm5, %v376_v47, 0.0 }
  0xbe   : > { %379 = vst.msk [vmem:[%s211_s6] sm:$0xff] %vm324_vm3, %v378_v48 }
  0xbf PF: > { %s15_s15 = sadd.s32 1, %s519_s15  }
  0xc0   : > { %p12_p5 = scmp.ge.s32.totalorder %s15_s15, 4  }
  0xc2   :  { %14 = sbr.rel (!%p12_p5) target bundleno = 1 (0x1), region = 74 }

// kernel: resnet50_block_forward.7
= control target key start
LH: loop header
LB: loop body
LE: loop exit
PB: predicated region body
PF: predicated region fallthrough
CT: control target
= control target key end

     0   :  { %9 = vsyncpa [#allocation3], 0  ;;  %s759_s0 = inlined_call_operand.vmem [shape: bf16[128,32], index: 0, kind: input, shape index: {}]   ;;  %s760_s1 = inlined_call_operand.vmem [shape: bf16[128,32], index: 1, kind: input, shape index: {}]   ;;  %s761_s2 = inlined_call_operand.vmem [shape: f32[2,32], index: 2, kind: input, shape index: {}]   ;;  %s762_s3 = inlined_call_operand.vmem [shape: f32[2,32], index: 3, kind: input, shape index: {}]   ;;  %s763_s4 = inlined_call_operand.hbm [shape: f32[128,32], index: 4, kind: output, shape index: {}]  }
   0x1   :  { %11 = vsyncpa [#allocation3 + $0x1], 0  ;;  %s591_s15 = smov 0   ;;  %s593_s16 = smov 0  }
   0x2   :  { %s595_s17 = smov 0   ;;  %s597_s18 = smov 0  }
   0x3 LB: > { %s612_s19 = sadd.s32 4294967295, %s562_s18   ;;  %s406_s20 = sadd.s32 4294967294, %s562_s18   ;;  %s562_s18 = sphi %s597_s18, %s769_s18   ;;  %s558_s17 = sphi %s595_s17, %s768_s17   ;;  %s554_s16 = sphi %s593_s16, %s767_s16   ;;  %s550_s15 = sphi %s591_s15, %s766_s15  }
   0x4   : > { %s616_s21 = sadd.s32 1, %s562_s18   ;;  %s118_s22 = sadd.s32 1, %s558_s17 }
   0x5   : > { %s115_s23 = ssub.s32 %s562_s18, %s616_s21  ;;  %p128_p0 = scmp.ne.s32.totalorder %s558_s17, %s554_s16 }
   0x6   : > { %p116_p1 = scmp.eq.s32.totalorder %s115_s23, 0  ;;  %p129_p2 = scmp.eq.s32.totalorder %s612_s19, 1 }
   0x7   : > { %p134_p3 = scmp.ne.s32.totalorder %s554_s16, %s550_s15  ;;  %p135_p4 = scmp.eq.s32.totalorder %s406_s20, 1 }
   0x8   : > { %s627_s24 = scalar_select %p116_p1, %s558_s17, %s118_s22  }
   0x9   : > { %p629_p5 = por %p129_p2, %p128_p0  ;;  %p633_p6 = por %p135_p4, %p134_p3 }
   0xa   : > { %p409_p7 = scmp.ge.s32.totalorder %s562_s18, 1  ;;  %p177_p8 = scmp.lt.s32.totalorder %s562_s18, 3 }
   0xc   : > { %p178_p9 = pnand %p409_p7, %p177_p8 }
   0xd   : > { %s411_s27 = sshll.u32 (!%p178_p9), %s612_s19, 3  ;;  %s205_s13 = sand.u32 (!%p178_p9), 1, %s554_s16  }
   0xe   : > { %181 = sbr.rel (%p178_p9) target bundleno = 48 (0x30), region = 36  ;;  %p209_p10 = scmp.lt.s32.totalorder (!%p178_p9), %s411_s27, 15 }
   0xf   : > { %s410_s14 = sshll.u32 (!%p178_p9), %s205_s13, 6  ;;  %s420_s22 = sshll.u32 (!%p178_p9), %s612_s19, 6 }
  0x10   : > { %s695_s20 = scalar_lea.vmem (!%p178_p9), [#allocation2], %s410_s14  ;;  %s317_s30 = scalar_lea.sflag (!%p178_p9), [#allocation3], %s205_s13 }
  0x11   : > { %s329_s28 = sshll.u32 (!%p178_p9), %s695_s20, 4  ;;  %s330_s28 = int_to_ptr.vmem [resolvable:$true] %s329_s28 }
  0x13   : > { %s771_s27 = smov (!%p209_p10, %s411_s27), 15  ;;  %v221_v0 = vld [vmem:[%s761_s2] sm:$0x3]  ;;  %vm307_vm0 = vcmask 261120  }
  0x14   : > { %v222_v1 = vld [vmem:[%s762_s3] sm:$0x3]  ;;  %s412_s6 = sshll.u32 %s771_s27, 2  ;;  %v656_v2 = vperm.slane %v221_v0, 0  ;;  %v661_v5 = vperm.slane %v221_v0, 1  ;;  %s328_s27 = scalar_lea.hbm %s763_s4, %s420_s22 }
  0x15   : > { %s649_s9 = scalar_lea.vmem %s759_s0, %s412_s6  ;;  %s654_s12 = scalar_lea.vmem %s760_s1, %s412_s6  ;;  %v658_v3 = vperm.slane %v222_v1, 0  ;;  %v664_v7 = vperm.slane %v222_v1, 1 }
  0x16   : > { %v422_v4 = vld [vmem:[%s649_s9] sm:$0xff]   ;;  %v453_v8 = vld [vmem:[%s649_s9 + $0x8] sm:$0xff]   ;;  %v454_v26 = vld [vmem:[%s649_s9 + $0x10] sm:$0xff]   ;;  %s331_s29 = sshll.u32 %s328_s27, 4  ;;  %s332_s29 = int_to_ptr.hbm [resolvable:$true] %s331_s29 }
  0x17   : > { %v438_v6 = vld [vmem:[%s654_s12] sm:$0xff]   ;;  %v423_v9 = vunpack.c.l.bf16 %v422_v4  ;;  %v424_v11 = vunpack.c.h.bf16 %v422_v4  ;;  %v456_v13 = vld [vmem:[%s654_s12 + $0x8] sm:$0xff]   ;;  %v427_v14 = vunpack.c.l.bf16 %v453_v8  ;;  %v428_v16 = vunpack.c.h.bf16 %v453_v8  ;;  %v457_v27 = vld [vmem:[%s654_s12 + $0x10] sm:$0xff]   ;;  %s514_s5 = sshra.s32 %s332_s29, 4  ;;  %s515_s5 = int_to_ptr.hbm [resolvable:$true] %s514_s5 }
  0x18   : > { %v439_v10 = vunpack.c.l.bf16 %v438_v6  ;;  %v440_v12 = vunpack.c.h.bf16 %v438_v6  ;;  %v443_v15 = vunpack.c.l.bf16 %v456_v13  ;;  %v444_v17 = vunpack.c.h.bf16 %v456_v13  ;;  %v455_v44 = vld [vmem:[%s649_s9 + $0x18] sm:$0xff]   ;;  %s516_s6 = scalar_lea.hbm %s515_s5, 64  ;;  %s520_s9 = scalar_lea.hbm %s763_s4, 128 }
  0x19   : > { %v240_v18 = vmul.f32 %v423_v9, %v656_v2  ;;  %v241_v20 = vmul.f32 %v424_v11, %v656_v2  ;;  %v242_v22 = vmul.f32 %v427_v14, %v656_v2  ;;  %v243_v24 = vmul.f32 %v428_v16, %v656_v2  ;;  %v458_v45 = vld [vmem:[%s654_s12 + $0x18] sm:$0xff]   ;;  %p517_p11 = scmp.ne.s32.totalorder %s515_s5, %s516_s6  ;;  %p521_p0 = scmp.lt.s32.totalorder %s515_s5, %s763_s4 }
  0x1a   : > { %v274_v19 = vmul.f32 %v439_v10, %v658_v3  ;;  %v275_v21 = vmul.f32 %v440_v12, %v658_v3  ;;  %v276_v23 = vmul.f32 %v443_v15, %v658_v3  ;;  %v277_v25 = vmul.f32 %v444_v17, %v658_v3  ;;  %p522_p1 = scmp.lt.s32.totalorder %s520_s9, %s516_s6 }
  0x1b   : > { %v249_v28 = vadd.f32 %v661_v5, %v240_v18  ;;  %v250_v30 = vadd.f32 %v661_v5, %v241_v20  ;;  %v251_v32 = vadd.f32 %v661_v5, %v242_v22  ;;  %v252_v34 = vadd.f32 %v661_v5, %v243_v24  ;;  %p518_p12 = pnand %p517_p11, %p629_p5 }
  0x1c   : > { %v283_v29 = vadd.f32 %v664_v7, %v274_v19  ;;  %v284_v31 = vadd.f32 %v664_v7, %v275_v21  ;;  %v285_v33 = vadd.f32 %v664_v7, %v276_v23  ;;  %v286_v35 = vadd.f32 %v664_v7, %v277_v25  ;;  %p523_p2 = por %p522_p1, %p521_p0 }
  0x1d   : > { %v431_v38 = vunpack.c.l.bf16 %v454_v26  ;;  %v447_v39 = vunpack.c.l.bf16 %v457_v27  ;;  %v432_v42 = vunpack.c.h.bf16 %v454_v26  ;;  %v448_v43 = vunpack.c.h.bf16 %v457_v27  ;;  %p519_p13 = pneg %p518_p12 }
  0x1e   : > { %v291_v36 = vadd.f32 %v283_v29, %v249_v28  ;;  %v292_v37 = vadd.f32 %v284_v31, %v250_v30  ;;  %v293_v40 = vadd.f32 %v285_v33, %v251_v32  ;;  %v294_v41 = vadd.f32 %v286_v35, %v252_v34 }
  0x1f   : > { %v244_v48 = vmul.f32 %v431_v38, %v656_v2  ;;  %v278_v49 = vmul.f32 %v447_v39, %v658_v3  ;;  %v245_v52 = vmul.f32 %v432_v42, %v656_v2  ;;  %v279_v53 = vmul.f32 %v448_v43, %v658_v3  ;;  %p524_p3 = pnand %p523_p2, %p519_p13 }
  0x20   : > { %v299_v46 = vmax.f32 %v291_v36, 0.0  ;;  %v300_v47 = vmax.f32 %v292_v37, 0.0  ;;  %v301_v50 = vmax.f32 %v293_v40, 0.0  ;;  %v302_v51 = vmax.f32 %v294_v41, 0.0 }
  0x21   : > { %v253_v54 = vadd.f32 %v661_v5, %v244_v48  ;;  %v287_v55 = vadd.f32 %v664_v7, %v278_v49  ;;  %v435_v56 = vunpack.c.l.bf16 %v455_v44  ;;  %v451_v57 = vunpack.c.l.bf16 %v458_v45 }
  0x22   : > { %308 = vst.msk [vmem:[%s695_s20] sm:$0xff] %vm307_vm0, %v299_v46  ;;  %v254_v58 = vadd.f32 %v661_v5, %v245_v52  ;;  %v288_v59 = vadd.f32 %v664_v7, %v279_v53  ;;  %v436_v60 = vunpack.c.h.bf16 %v455_v44  ;;  %v452_v61 = vunpack.c.h.bf16 %v458_v45 }
  0x23   : > { %309 = vst.msk [vmem:[%s695_s20 + $0x8] sm:$0xff] %vm307_vm0, %v300_v47  ;;  %v295_v62 = vadd.f32 %v287_v55, %v253_v54  ;;  %v246_v63 = vmul.f32 %v435_v56, %v656_v2  ;;  %v280_v0 = vmul.f32 %v451_v57, %v658_v3 }
  0x24   : > { %310 = vst.msk [vmem:[%s695_s20 + $0x10] sm:$0xff] %vm307_vm0, %v301_v50  ;;  %v296_v1 = vadd.f32 %v288_v59, %v254_v58  ;;  %v247_v4 = vmul.f32 %v436_v60, %v656_v2  ;;  %v281_v6 = vmul.f32 %v452_v61, %v658_v3 }
  0x25   : > { %311 = vst.msk [vmem:[%s695_s20 + $0x18] sm:$0xff] %vm307_vm0, %v302_v51  ;;  %v303_v8 = vmax.f32 %v295_v62, 0.0  ;;  %v255_v9 = vadd.f32 %v661_v5, %v246_v63  ;;  %v289_v10 = vadd.f32 %v664_v7, %v280_v0 }
  0x26   : > { %v304_v11 = vmax.f32 %v296_v1, 0.0  ;;  %v256_v12 = vadd.f32 %v661_v5, %v247_v4  ;;  %v290_v2 = vadd.f32 %v664_v7, %v281_v6 }
  0x27   : > { %312 = vst.msk [vmem:[%s695_s20 + $0x20] sm:$0xff] %vm307_vm0, %v303_v8  ;;  %v297_v3 = vadd.f32 %v289_v10, %v255_v9 }
  0x28   : > { %313 = vst.msk [vmem:[%s695_s20 + $0x28] sm:$0xff] %vm307_vm0, %v304_v11  ;;  %v298_v13 = vadd.f32 %v290_v2, %v256_v12 }
  0x29   : > { %v305_v14 = vmax.f32 %v297_v3, 0.0 }
  0x2a   : > { %v306_v15 = vmax.f32 %v298_v13, 0.0 }
  0x2b   : > { %314 = vst.msk [vmem:[%s695_s20 + $0x30] sm:$0xff] %vm307_vm0, %v305_v14 }
  0x2c   : > { %315 = vst.msk [vmem:[%s695_s20 + $0x38] sm:$0xff] %vm307_vm0, %v306_v15 }
  0x2d   : > { %527 = shalt.err (!%p524_p3)
}
  0x2e   : > { %s564_s12 = smov 128   ;;  %s565_s13 = smov 8  }
  0x2f   : > { %459 = dma.vmem_to_hbm [thread:$0]  (%p629_p5), %s330_s28, 1024, %s332_s29, %s317_s30, %s564_s12, %s564_s12, %s565_s13  }
  0x30 PF: > { %p465_p4 = scmp.ge.s32.totalorder %s562_s18, 2  ;;  %s346_s14 = sand.u32 1, %s550_s15  }
  0x31   : > { %s347_s20 = scalar_lea.sflag [#allocation3], %s346_s14 }
  0x32   : > { %p462_p7 = pnand %p465_p4, %p633_p6 }
  0x34   : > { %p463_p8 = pneg %p462_p7 }
  0x36   : > { %545 = dma.done.wait (%p463_p8), %s347_s20, 1024  }
  0x37   : > { %547 = vsyncadd (%p463_p8), %s347_s20, 4294966272  ;;  %p14_p9 = scmp.ge.s32.totalorder %s616_s21, 4   ;;  %s766_s15 = smov %s554_s16 }
  0x38   : > { %s767_s16 = smov %s558_s17  ;;  %s768_s17 = smov %s627_s24 }
  0x39   : > { %s769_s18 = smov %s616_s21  ;;  %16 = sbr.rel (!%p14_p9) target bundleno = 3 (0x3), region = 74 }
  0x3e   :  { %353 = vsyncpa [#allocation3], 1 }
  0x3f   :  { %355 = vsyncpa [#allocation3 + $0x1], 1 }

// kernel: resnet50_block_forward.5
= control target key start
LH: loop header
LB: loop body
LE: loop exit
PB: predicated region body
PF: predicated region fallthrough
CT: control target
= control target key end

     0   :  { %s2094_s15 = smov 0   ;;  %s2937_s0 = inlined_call_operand.vmem [shape: bf16[2,64,8], index: 0, kind: input, shape index: {}]   ;;  %s2938_s1 = inlined_call_operand.vmem [shape: f32[2,8], index: 1, kind: input, shape index: {}]   ;;  %s2939_s2 = inlined_call_operand.vmem [shape: bf16[72,8], index: 2, kind: input, shape index: {}]   ;;  %s2940_s3 = inlined_call_operand.vmem [shape: bf16[2,64,8], index: 3, kind: output, shape index: {0}]   ;;  %s2941_s4 = inlined_call_operand.vmem [shape: f32[2,8,8], index: 4, kind: output, shape index: {1}]  }
   0x1 LB: > { %s1822_s16 = sadd.s32 4294967295, %s2057_s15   ;;  %p1826_p0 = scmp.ge.s32.totalorder %s2057_s15, 1  ;;  %s2057_s15 = sphi %s2094_s15, %s15_s15  }
   0x2   : > { %p165_p1 = scmp.lt.s32.totalorder %s2057_s15, 3 }
   0x4   : > { %p166_p2 = pnand %p1826_p0, %p165_p1 }
   0x6   : > { %169 = sbr.rel (%p166_p2) target bundleno = 479 (0x1df), region = 32 }
   0xb   : > { %vm261_vm0 = vcmask 60416   ;;  %p195_p3 = scmp.lt.s32.totalorder %s1822_s16, 1  ;;  %v274_v0 = vlaneseq  ;;  %v2059_v1 = vmov 0   ;;  %v218_v2 = vld [vmem:[%s2938_s1] sm:$0x3]  ;;  %v2944_v20 = vmov 0.0  }
   0xc   : > { %263 = vst.msk [vmem:[#allocation2 + $0x4] sm:$0xf] %vm261_vm0, %v2059_v1  ;;  %v2123_v6 = vperm.slane %v218_v2, 0  ;;  %v2125_v7 = vperm.slane %v218_v2, 1  ;;  %s2061_s23 = smov 8   ;;  %vm698_vm5 = vcmask 1040384  }
   0xd   : > { %264 = vst.msk [vmem:[#allocation2 + $0x28] sm:$0xf] %vm261_vm0, %v2059_v1  ;;  %s2968_s16 = smov (!%p195_p3, %s1822_s16), 1  ;;  %v2109_v3 = vshrl.u32 %v274_v0, 7  ;;  %vm477_vm6 = vcmask 1046528   ;;  %s2062_s24 = smov 32  }
   0xe   : > { %265 = vst.msk [vmem:[#allocation2 + $0x2c] sm:$0xf] %vm261_vm0, %v2059_v1  ;;  %s1889_s19 = sshll.u32 %s2968_s16, 5  ;;  %vm741_vm11 = vsmask.f32 3328  ;;  %s2063_s25 = smov 16  }
   0xf   : > { %262 = vst.msk [vmem:[#allocation2] sm:$0xf] %vm261_vm0, %v2059_v1  ;;  %v276_v4 = vadd.s32 8, %v2109_v3  ;;  %v287_v5 = vand.u32 7, %v2109_v3  ;;  %s2121_s22 = scalar_lea.vmem %s2937_s0, %s1889_s19  ;;  %v2130_v11 = vadd.s32 16, %v2109_v3  ;;  %v2133_v12 = vadd.s32 32, %v2109_v3  ;;  %s2894_s20 = scalar_lea.vmem %s2940_s3, %s1889_s19 }
  0x10   : > { %v1900_v8 = vld [vmem:[%s2121_s22] sm:$0xff]   ;;  %v1995_v9 = vld [vmem:[%s2121_s22 + $0x8] sm:$0xff]   ;;  %v1996_v17 = vld [vmem:[%s2121_s22 + $0x10] sm:$0xff]   ;;  %v2170_v46 = vadd.s32 40, %v2109_v3  ;;  %v2173_v47 = vadd.s32 48, %v2109_v3  ;;  %s2064_s26 = smov 24  }
  0x11   : > { %v294_v10 = vand.u32 7, %v276_v4  ;;  %vm411_vm1 = vcmp.le.s32.totalorder %v287_v5, 6  ;;  %v1901_v13 = vunpack.c.l.bf16 %v1900_v8  ;;  %v1905_v14 = vunpack.c.l.bf16 %v1995_v9  ;;  %s2065_s27 = smov 40   ;;  %s2066_s28 = smov 48  }
  0x12   : > { %v1902_v15 = vunpack.c.h.bf16 %v1900_v8  ;;  %v1906_v16 = vunpack.c.h.bf16 %v1995_v9  ;;  %v1840_v21 = vsel %vm411_vm1, 1.0, %v2944_v20  ;;  %vm2148_vm3 = vcmp.ge.s32.totalorder %v287_v5, 1  ;;  %s2067_s29 = smov 56   ;;  %s2068_s30 = smov 64  }
  0x13   : > { %v615_v18 = vld [vmem:[#allocation2 + $0x4] sm:$0xf]  ;;  %vm2136_vm2 = vcmp.le.s32.totalorder %v294_v10, 6  ;;  %v228_v23 = vmul.f32 %v1901_v13, %v2123_v6  ;;  %v230_v24 = vmul.f32 %v1905_v14, %v2123_v6  ;;  %v2146_v28 = vrot.slane %v1840_v21, 7  ;;  %s1831_s19 = sshll.u32 %s2968_s16, 3 }
  0x14   : > { %v664_v22 = vld [vmem:[#allocation2 + $0x4] sm:$0xf]  ;;  %631 = vrot.lane.b32.xlu0 %v615_v18, %s2061_s23  ;;  %v229_v25 = vmul.f32 %v1902_v15, %v2123_v6  ;;  %v231_v26 = vmul.f32 %v1906_v16, %v2123_v6  ;;  %v1909_v30 = vunpack.c.l.bf16 %v1996_v17  ;;  %v2159_v35 = vsel %vm2136_vm2, 1.0, %v2944_v20 }
  0x15   : > { %v673_v27 = vunpack.c.l.bf16 %v664_v22  ;;  %v237_v31 = vadd.f32 %v2125_v7, %v228_v23  ;;  %v239_v32 = vadd.f32 %v2125_v7, %v230_v24  ;;  %vm2162_vm4 = vcmp.ge.s32.totalorder %v294_v10, 1  ;;  %v861_v45 = vld [vmem:[#allocation2 + $0x4] sm:$0x8] }
  0x16   : > { %v238_v33 = vadd.f32 %v2125_v7, %v229_v25  ;;  %v240_v34 = vadd.f32 %v2125_v7, %v231_v26  ;;  %v1910_v38 = vunpack.c.h.bf16 %v1996_v17  ;;  %v1832_v44 = vsel %vm2148_vm3, 1.0, %v2944_v20 }
  0x17   : > { %v723_v36 = vmul.f32 %v2146_v28, %v673_v27  ;;  %v245_v39 = vmax.f32 %v237_v31, 0.0  ;;  %v247_v40 = vmax.f32 %v239_v32, 0.0  ;;  %v700_v51 = vrot.slane %v2159_v35, 7  ;;  %v1897_v35 = vld [vmem:[%s2939_s2 + $0x10] sm:$0xff] }
  0x18   : > { %v246_v41 = vmax.f32 %v238_v33, 0.0  ;;  %v248_v42 = vmax.f32 %v240_v34, 0.0  ;;  %v1833_v55 = vsel %vm2162_vm4, 1.0, %v2944_v20  ;;  %v2180_v56 = vrot.slane %v1832_v44, 1 }
  0x19   : > { %v732_v43 = vpack.c.bf16 %v723_v36, %v723_v36  ;;  %v253_v48 = vpack.c.bf16 %v245_v39, %v245_v39  ;;  %v255_v49 = vpack.c.bf16 %v247_v40, %v247_v40  ;;  %v870_v57 = vunpack.c.l.bf16 %v861_v45 }
  0x1a   : > { %v254_v50 = vpack.c.bf16 %v246_v41, %v246_v41  ;;  %v256_v52 = vpack.c.bf16 %v248_v42, %v248_v42  ;;  %v232_v58 = vmul.f32 %v1909_v30, %v2123_v6  ;;  %v233_v59 = vmul.f32 %v1910_v38, %v2123_v6 }
  0x1b   : > { %v745_v53 = vshrl.u32 %v732_v43, 16  ;;  %v748_v54 = vshll.u32 %v732_v43, 16  ;;  %266 = vst.msk [vmem:[#allocation2 + $0x8] sm:$0xf] %vm261_vm0, %v253_v48  ;;  %v301_v62 = vand.u32 7, %v2130_v11  ;;  %v315_v63 = vand.u32 7, %v2133_v12 }
  0x1c   : > { %268 = vst.msk [vmem:[#allocation2 + $0x10] sm:$0xf] %vm261_vm0, %v255_v49  ;;  %v879_v0 = vmul.f32 %v870_v57, %v2180_v56  ;;  %v241_v1 = vadd.f32 %v2125_v7, %v232_v58  ;;  %v242_v2 = vadd.f32 %v2125_v7, %v233_v59  ;;  %v322_v4 = vand.u32 7, %v2170_v46 }
  0x1d   : > { %v747_v60 = vrot.slane %v745_v53, 4  ;;  %v750_v61 = vrot.slane %v748_v54, 5  ;;  %267 = vst.msk [vmem:[#allocation2 + $0xc] sm:$0xf] %vm261_vm0, %v254_v50  ;;  %v479_v5 = vrot.slane %v1833_v55, 1  ;;  %vm381_vm7 = vcmp.ge.s32.totalorder %v301_v62, 1 }
  0x1e   : > { %269 = vst.msk [vmem:[#allocation2 + $0x14] sm:$0xf] %vm261_vm0, %v256_v52  ;;  %v329_v8 = vand.u32 7, %v2173_v47  ;;  %vm383_vm8 = vcmp.ge.s32.totalorder %v315_v63, 1  ;;  %v888_v9 = vpack.c.bf16 %v879_v0, %v879_v0  ;;  %v249_v10 = vmax.f32 %v241_v1, 0.0 }
  0x1f   : > { %v250_v11 = vmax.f32 %v242_v2, 0.0  ;;  %v2195_v12 = vsel %vm381_vm7, 1.0, %v2944_v20  ;;  %v751_v13 = vor.u32 %v750_v61, %v747_v60  ;;  %vm384_vm9 = vcmp.ge.s32.totalorder %v322_v4, 1 }
  0x20   : > { %v481_v14 = vrot.slane %v2195_v12, 1  ;;  %vm385_vm10 = vcmp.ge.s32.totalorder %v329_v8, 1  ;;  %vm742_vm12 = vsmask.f32 7440  ;;  %v2198_v15 = vshrl.u32 %v888_v9, 16 }
  0x21   : > { %v257_v16 = vpack.c.bf16 %v249_v10, %v249_v10  ;;  %v258_v17 = vpack.c.bf16 %v250_v11, %v250_v11  ;;  %v2201_v18 = vsel %vm383_vm8, 1.0, %v2944_v20  ;;  %v1837_v22 = vsel %vm384_vm9, 1.0, %v2944_v20  ;;  %vm2276_vm4 = vmor %vm741_vm11, %vm742_vm12 }
  0x22   : > { %v1006_v19 = vld [vmem:[#allocation2 + $0x8] sm:$0xf]  ;;  %v2205_v23 = vsel %vm385_vm10, 1.0, %v2944_v20  ;;  %v2213_v24 = vsel %vm698_vm5, %v2146_v28, %v700_v51  ;;  %v2217_v25 = vsel %vm477_vm6, %v2180_v56, %v479_v5  ;;  %vm520_vm13 = vsmask.f32 256 }
  0x23   : > { %v616_v21 = vld [vmem:[#allocation2 + $0x8] sm:$0xf]  ;;  %1022 = vrot.lane.b32.xlu1 %v1006_v19, %s2062_s24  ;;  %vm521_vm14 = vsmask.f32 4368  ;;  %270 = vst.msk [vmem:[#allocation2 + $0x18] sm:$0xf] %vm261_vm0, %v257_v16  ;;  %v2227_v31 = vsel %vm477_vm6, %v479_v5, %v481_v14 }
  0x24   : > { %633 = vrot.lane.b32.xlu0 %v616_v21, %s2061_s23  ;;  %v485_v26 = vrot.slane %v2201_v18, 1  ;;  %v2001_v27 = vld [vmem:[#allocation2 + $0x8] sm:$0xff]   ;;  %v2221_v29 = vrot.slane %v751_v13, 4  ;;  %v1849_v30 = vrot.slane %v2198_v15, 11  ;;  %271 = vst.msk [vmem:[#allocation2 + $0x1c] sm:$0xf] %vm261_vm0, %v258_v17  ;;  %vm2290_vm7 = vmor %vm520_vm13, %vm521_vm14 }
  0x25   : > { %v487_v32 = vrot.slane %v1837_v22, 1  ;;  %v619_v33 = vld [vmem:[#allocation2 + $0x14] sm:$0xf]  ;;  %v2230_v34 = vunpack.c.l.bf16 %v2001_v27  ;;  %v2232_v36 = vunpack.c.h.bf16 %v2001_v27  ;;  %v2942_v37 = vrot.slane %v2205_v23, 1  ;;  %v618_v40 = vld [vmem:[#allocation2 + $0x10] sm:$0xf] }
  0x26   : > { %vm413_vm15 = vcmp.le.s32.totalorder %v301_v62, 6  ;;  %639 = vrot.lane.b32.xlu2 %v619_v33, %s2061_s23  ;;  %vm415_vm1 = vcmp.le.s32.totalorder %v315_v63, 6  ;;  %vm416_vm2 = vcmp.le.s32.totalorder %v322_v4, 6  ;;  %v617_v45 = vld [vmem:[#allocation2 + $0xc] sm:$0xf]  ;;  %vm417_vm3 = vcmp.le.s32.totalorder %v329_v8, 6 }
  0x27   : > { %v2239_v38 = vsel %vm477_vm6, %v485_v26, %v487_v32  ;;  %v2242_v39 = vsel %vm413_vm15, 1.0, %v2944_v20  ;;  %v724_v41 = vmul.f32 %v2230_v34, %v2213_v24  ;;  %v880_v42 = vmul.f32 %v2230_v34, %v2217_v25  ;;  %v1007_v15 = vld [vmem:[#allocation2 + $0xc] sm:$0xf] }
  0x28   : > { %v881_v43 = vmul.f32 %v2232_v36, %v2227_v31  ;;  %v2253_v44 = vsel %vm477_vm6, %v487_v32, %v2942_v37  ;;  %v702_v46 = vrot.slane %v2242_v39, 7  ;;  %v2257_v47 = vsel %vm415_vm1, 1.0, %v2944_v20 }
  0x29   : > { %v1845_v48 = vsel %vm416_vm2, 1.0, %v2944_v20  ;;  %v733_v49 = vpack.c.bf16 %v724_v41, %v724_v41  ;;  %v889_v50 = vpack.c.bf16 %v880_v42, %v880_v42  ;;  %v2261_v53 = vsel %vm417_vm3, 1.0, %v2944_v20 }
  0x2a   : > { %v890_v52 = vpack.c.bf16 %v881_v43, %v881_v43  ;;  %v620_v54 = vld [vmem:[#allocation2 + $0x18] sm:$0xf]  ;;  %v2268_v55 = vsel %vm698_vm5, %v700_v51, %v702_v46  ;;  %v706_v57 = vrot.slane %v2257_v47, 7  ;;  %v708_v58 = vrot.slane %v1845_v48, 7 }
  0x2b   : > { %v2943_v59 = vrot.slane %v2261_v53, 7  ;;  %637 = vrot.lane.b32.xlu1 %v618_v40, %s2061_s23  ;;  %v754_v60 = vshll.u32 %v733_v49, 16  ;;  %v903_v61 = vshrl.u32 %v889_v50, 16  ;;  %v906_v62 = vshll.u32 %v889_v50, 16  ;;  %v2006_v0 = vld [vmem:[#allocation2 + $0x18] sm:$0xff]  }
  0x2c   : > { %635 = vrot.lane.b32.xlu0 %v617_v45, %s2061_s23  ;;  %v912_v63 = vshrl.u32 %v890_v52, 16  ;;  %v915_v51 = vshll.u32 %v890_v52, 16  ;;  %v2280_v1 = vunpack.c.l.bf16 %v2006_v0  ;;  %v2282_v2 = vunpack.c.h.bf16 %v2006_v0 }
  0x2d   : > { %v725_v4 = vmul.f32 %v2232_v36, %v2268_v55  ;;  %v756_v5 = vrot.slane %v754_v60, 5  ;;  %v905_v8 = vrot.slane %v903_v61, 7  ;;  %v758_v10 = vshrl.u32 %v733_v49, 16  ;;  %v2005_v60 = vld [vmem:[#allocation2 + $0x10] sm:$0xff]  }
  0x2e   : > { %2956 = vst [vmem:[#allocation4_spill] sm:$0xff] %v2282_v2  ;;  %v2286_v9 = vrot.slane %v912_v63, 7  ;;  %641 = vrot.lane.b32.xlu2 %v620_v54, %s2061_s23  ;;  %v884_v13 = vmul.f32 %v2280_v1, %v2239_v38  ;;  %v885_v16 = vmul.f32 %v2282_v2, %v2253_v44  ;;  %v2304_v19 = vsel %vm698_vm5, %v706_v57, %v708_v58 }
  0x2f   : > { %v2299_v17 = vpack.c.bf16 %v725_v4, %v725_v4  ;;  %v757_v21 = vsel %vm2276_vm4, %v2221_v29, %v756_v5  ;;  %v908_v22 = vor.u32 %v906_v62, %v905_v8  ;;  %v910_v27 = vrot.slane %v905_v8, 4 }
  0x30   : > { %v2309_v32 = vpack.c.bf16 %v884_v13, %v884_v13  ;;  %v894_v33 = vpack.c.bf16 %v885_v16, %v885_v16  ;;  %v760_v40 = vrot.slane %v758_v10, 4  ;;  %v917_v43 = vor.u32 %v915_v51, %v2286_v9 }
  0x31   : > { %v764_v41 = vshll.u32 %v2299_v17, 16  ;;  %v909_v42 = vsel %vm2290_vm7, %v1849_v30, %v908_v22  ;;  %v2320_v45 = vsel %vm698_vm5, %v708_v58, %v2943_v59  ;;  %v728_v29 = vmul.f32 %v2280_v1, %v2304_v19  ;;  %v1997_v59 = vld [vmem:[%s2121_s22 + $0x18] sm:$0xff]  }
  0x32   : > { %v939_v48 = vshrl.u32 %v2309_v32, 16  ;;  %v948_v49 = vshrl.u32 %v894_v33, 16  ;;  %v951_v50 = vshll.u32 %v894_v33, 16  ;;  %v761_v52 = vor.u32 %v760_v40, %v756_v5 }
  0x33   : > { %828 = vrot.lane.b32.xlu1 %v757_v21, %s2063_s25  ;;  %v729_v30 = vmul.f32 %v2282_v2, %v2320_v45  ;;  %v737_v54 = vpack.c.bf16 %v728_v29, %v728_v29  ;;  %v278_v58 = vadd.s32 24, %v2109_v3  ;;  %v2332_v0 = vrot.slane %v764_v41, 5 }
  0x34   : > { %973 = vrot.lane.b32.xlu0 %v909_v42, %s2064_s26  ;;  %v941_v61 = vrot.slane %v939_v48, 7  ;;  %v2330_v62 = vrot.slane %v948_v49, 7  ;;  %v762_v63 = vrot.slane %v761_v52, 4  ;;  %v918_v10 = vsel %vm2290_vm7, %v910_v27, %v917_v43 }
  0x35   : > { %v2334_v51 = vpack.c.bf16 %v729_v30, %v729_v30  ;;  %v794_v4 = vshll.u32 %v737_v54, 16  ;;  %v798_v5 = vshrl.u32 %v737_v54, 16  ;;  %v308_v8 = vand.u32 7, %v278_v58 }
  0x36   : > { %v946_v13 = vrot.slane %v941_v61, 4  ;;  %v953_v16 = vor.u32 %v951_v50, %v2330_v62  ;;  %1024 = vrot.lane.b32.xlu2 %v1007_v15, %s2062_s24  ;;  %v2340_v21 = vunpack.c.h.bf16 %v2005_v60  ;;  %v767_v27 = vsel %vm2276_vm4, %v762_v63, %v2332_v0 }
  0x37   : > { %v2342_v22 = vrot.slane %v794_v4, 5  ;;  %v800_v33 = vrot.slane %v798_v5, 4  ;;  %v804_v40 = vshll.u32 %v2334_v51, 16  ;;  %vm382_vm8 = vcmp.ge.s32.totalorder %v308_v8, 1 }
  0x38   : > { %v954_v41 = vsel %vm2290_vm7, %v946_v13, %v953_v16  ;;  %v2351_v42 = vsel %vm382_vm8, 1.0, %v2944_v20  ;;  %v1073_v43 = vmul.f32 %v2230_v34, %v2146_v28  ;;  %v1074_v50 = vmul.f32 %v2232_v36, %v2213_v24 }
  0x39   : > { %v801_v29 = vor.u32 %v800_v33, %v2342_v22  ;;  %v2356_v48 = vrot.slane %v804_v40, 5  ;;  %v483_v49 = vrot.slane %v2351_v42, 1  ;;  %vm414_vm9 = vcmp.le.s32.totalorder %v308_v8, 6 }
  0x3a   : > { %v1082_v52 = vpack.c.bf16 %v1073_v43, %v1073_v43  ;;  %v2361_v15 = vunpack.c.l.bf16 %v2005_v60  ;;  %v768_v30 = vshrl.u32 %v2299_v17, 16  ;;  %v1083_v63 = vpack.c.bf16 %v1074_v50, %v1074_v50 }
  0x3b   : > { %975 = vrot.lane.b32.xlu1 %v918_v10, %s2064_s26  ;;  %v802_v54 = vrot.slane %v801_v29, 4  ;;  %v2371_v58 = vsel %vm477_vm6, %v483_v49, %v485_v26  ;;  %v1843_v4 = vsel %vm414_vm9, 1.0, %v2944_v20  ;;  %v1208_v10 = vld [vmem:[#allocation2 + $0x8] sm:$0x8]  ;;  %v942_v18 = vshll.u32 %v2309_v32, 16 }
  0x3c   : > { %983 = vrot.lane.b32.xlu0 %v954_v41, %s2064_s26  ;;  %v883_v60 = vmul.f32 %v2340_v21, %v2371_v58  ;;  %v1092_v5 = vshrl.u32 %v1082_v52, 16  ;;  %v1095_v17 = vshll.u32 %v1082_v52, 16  ;;  %v704_v8 = vrot.slane %v1843_v4, 7  ;;  %v1209_v26 = vld [vmem:[#allocation2 + $0xc] sm:$0xf] }
  0x3d   : > { %v807_v13 = vsel %vm2276_vm4, %v802_v54, %v2356_v48  ;;  %v1101_v16 = vshll.u32 %v1083_v63, 16  ;;  %v770_v33 = vrot.slane %v768_v30, 4  ;;  %v1217_v30 = vunpack.c.l.bf16 %v1208_v10 }
  0x3e   : > { %v2380_v40 = vpack.c.bf16 %v883_v60, %v883_v60  ;;  %v1094_v41 = vrot.slane %v1092_v5, 4  ;;  %v1097_v43 = vrot.slane %v1095_v17, 5  ;;  %v2385_v29 = vsel %vm698_vm5, %v702_v46, %v704_v8 }
  0x3f   : > { %v726_v50 = vmul.f32 %v2361_v15, %v2385_v29  ;;  %v771_v52 = vor.u32 %v770_v33, %v2332_v0  ;;  %v2393_v32 = vsel %vm698_vm5, %v704_v8, %v706_v57  ;;  %v1218_v60 = vunpack.c.l.bf16 %v1209_v26 }
  0x40   : > { %v930_v54 = vshrl.u32 %v2380_v40, 16  ;;  %v1098_v4 = vor.u32 %v1097_v43, %v1094_v41  ;;  %v727_v39 = vmul.f32 %v2340_v21, %v2393_v32  ;;  %v944_v46 = vor.u32 %v942_v18, %v941_v61 }
  0x41   : > { %v735_v5 = vpack.c.bf16 %v726_v50, %v726_v50  ;;  %v1075_v17 = vmul.f32 %v2361_v15, %v2268_v55  ;;  %v1103_v0 = vrot.slane %v1101_v16, 5  ;;  %v1227_v57 = vmul.f32 %v1218_v60, %v2217_v25 }
  0x42   : > { %v2400_v37 = vrot.slane %v930_v54, 7  ;;  %v736_v47 = vpack.c.bf16 %v727_v39, %v727_v39  ;;  %v772_v8 = vrot.slane %v771_v52, 4  ;;  %v1226_v61 = vmul.f32 %v1217_v30, %v2180_v56 }
  0x43   : > { %830 = vrot.lane.b32.xlu1 %v767_v27, %s2063_s25  ;;  %v774_v10 = vshll.u32 %v735_v5, 16  ;;  %v778_v33 = vshrl.u32 %v735_v5, 16  ;;  %v1099_v26 = vrot.slane %v1098_v4, 4  ;;  %v1236_v54 = vpack.c.bf16 %v1227_v57, %v1227_v57 }
  0x44   : > { %838 = vrot.lane.b32.xlu0 %v807_v13, %s2063_s25  ;;  %v937_v18 = vrot.slane %v2400_v37, 4  ;;  %v784_v41 = vshll.u32 %v736_v47, 16  ;;  %v788_v43 = vshrl.u32 %v736_v47, 16  ;;  %v2407_v39 = vpack.c.bf16 %v1075_v17, %v1075_v17 }
  0x45   : > { %v776_v50 = vrot.slane %v774_v10, 5  ;;  %v780_v16 = vrot.slane %v778_v33, 4  ;;  %v1105_v60 = vshrl.u32 %v1083_v63, 16  ;;  %v1104_v4 = vsel %vm2276_vm4, %v1099_v26, %v1103_v0 }
  0x46   : > { %v945_v27 = vsel %vm2290_vm7, %v937_v18, %v944_v46  ;;  %v786_v13 = vrot.slane %v784_v41, 5  ;;  %v790_v52 = vrot.slane %v788_v43, 4  ;;  %v1235_v17 = vpack.c.bf16 %v1226_v61, %v1226_v61 }
  0x47   : > { %981 = vrot.lane.b32.xlu2 %v945_v27, %s2064_s26  ;;  %v781_v30 = vor.u32 %v780_v16, %v776_v50  ;;  %v777_v5 = vsel %vm2276_vm4, %v772_v8, %v776_v50  ;;  %v1107_v57 = vrot.slane %v1105_v60, 4  ;;  %v1913_v10 = vunpack.c.l.bf16 %v1997_v59  ;;  %v1011_v27 = vld [vmem:[#allocation2 + $0x1c] sm:$0xf] }
  0x48   : > { %v791_v47 = vor.u32 %v790_v52, %v786_v13  ;;  %v1914_v33 = vunpack.c.h.bf16 %v1997_v59  ;;  %v1250_v46 = vshrl.u32 %v1236_v54, 16  ;;  %v1111_v18 = vshll.u32 %v2407_v39, 16 }
  0x49   : > { %v2423_v63 = vsel %vm477_vm6, %v481_v14, %v483_v49  ;;  %v782_v8 = vrot.slane %v781_v30, 4  ;;  %v234_v61 = vmul.f32 %v1913_v10, %v2123_v6  ;;  %v1108_v26 = vor.u32 %v1107_v57, %v1103_v0 }
  0x4a   : > { %v792_v20 = vrot.slane %v791_v47, 4  ;;  %v235_v42 = vmul.f32 %v1914_v33, %v2123_v6  ;;  %v882_v12 = vmul.f32 %v2361_v15, %v2423_v63  ;;  %v1077_v49 = vmul.f32 %v2280_v1, %v2393_v32 }
  0x4b   : > { %1175 = vrot.lane.b32.xlu1 %v1104_v4, %s2065_s27  ;;  %v243_v14 = vadd.f32 %v2125_v7, %v234_v61  ;;  %v1245_v41 = vshrl.u32 %v1235_v17, 16  ;;  %v2437_v43 = vrot.slane %v1250_v46, 7  ;;  %v1253_v50 = vshll.u32 %v1236_v54, 16 }
  0x4c   : > { %832 = vrot.lane.b32.xlu0 %v777_v5, %s2063_s25  ;;  %v797_v59 = vsel %vm2276_vm4, %v792_v20, %v2342_v22  ;;  %v2439_v16 = vrot.slane %v1111_v18, 5  ;;  %v787_v20 = vsel %vm2276_vm4, %v782_v8, %v786_v13  ;;  %v1228_v22 = vmul.f32 %v2361_v15, %v2227_v31 }
  0x4d   : > { %v251_v6 = vmax.f32 %v243_v14, 0.0  ;;  %v244_v0 = vadd.f32 %v2125_v7, %v235_v42  ;;  %v1109_v52 = vrot.slane %v1108_v26, 4  ;;  %v2447_v60 = vpack.c.bf16 %v882_v12, %v882_v12 }
  0x4e   : > { %v1078_v54 = vmul.f32 %v2282_v2, %v2304_v19  ;;  %v2452_v30 = vadd.s32 56, %v2109_v3  ;;  %v1086_v5 = vpack.c.bf16 %v1077_v49, %v1077_v49  ;;  %v1850_v13 = vrot.slane %v1245_v41, 11  ;;  %v621_v41 = vld [vmem:[#allocation2 + $0x1c] sm:$0xf] }
  0x4f   : > { %836 = vrot.lane.b32.xlu2 %v797_v59, %s2063_s25  ;;  %v259_v4 = vpack.c.bf16 %v251_v6, %v251_v6  ;;  %v252_v47 = vmax.f32 %v244_v0, 0.0  ;;  %v1237_v7 = vpack.c.bf16 %v1228_v22, %v1228_v22  ;;  %v1255_v10 = vor.u32 %v1253_v50, %v2437_v43 }
  0x50   : > { %v336_v17 = vand.u32 7, %v2452_v30  ;;  %v1114_v3 = vsel %vm2276_vm4, %v1109_v52, %v2439_v16  ;;  %v921_v33 = vshrl.u32 %v2447_v60, 16  ;;  %v2463_v46 = vpack.c.bf16 %v1078_v54, %v1078_v54 }
  0x51   : > { %272 = vst.msk [vmem:[#allocation2 + $0x20] sm:$0xf] %vm261_vm0, %v259_v4  ;;  %v260_v57 = vpack.c.bf16 %v252_v47, %v252_v47  ;;  %v1131_v18 = vshll.u32 %v1086_v5, 16  ;;  %v1135_v8 = vshrl.u32 %v1086_v5, 16  ;;  %v2959_v61 = vmov 0.0  }
  0x52   : > { %vm418_vm10 = vcmp.le.s32.totalorder %v336_v17, 6  ;;  %v933_v26 = vshll.u32 %v2380_v40, 16  ;;  %v1259_v42 = vshrl.u32 %v1237_v7, 16  ;;  %v1231_v14 = vmul.f32 %v2282_v2, %v2239_v38 }
  0x53   : > { %834 = vrot.lane.b32.xlu1 %v787_v20, %s2063_s25  ;;  %273 = vst.msk [vmem:[#allocation2 + $0x24] sm:$0xf] %vm261_vm0, %v260_v57  ;;  %v1847_v59 = vsel %vm418_vm10, 1.0, %v2959_v61  ;;  %v1256_v49 = vsel %vm2290_vm7, %v1850_v13, %v1255_v10  ;;  %v2475_v50 = vrot.slane %v921_v33, 7  ;;  %v1141_v20 = vshll.u32 %v2463_v46, 16 }
  0x54   : > { %1032 = vrot.lane.b32.xlu0 %v1011_v27, %s2062_s24  ;;  %v2469_v12 = vrot.slane %v1847_v59, 7  ;;  %v1421_v6 = vmul.f32 %v2361_v15, %v2213_v24  ;;  %v2480_v22 = vrot.slane %v1131_v18, 5  ;;  %v1137_v40 = vrot.slane %v1135_v8, 4  ;;  %v1010_v24 = vld [vmem:[#allocation2 + $0x18] sm:$0xf] }
  0x55   : > { %v1230_v0 = vmul.f32 %v2280_v1, %v2371_v58  ;;  %v2960_v52 = vrot.slane %v2261_v53, 7  ;;  %v1422_v30 = vmul.f32 %v2340_v21, %v2268_v55  ;;  %v1257_v5 = vrot.slane %v2437_v43, 4 }
  0x56   : > { %v1430_v4 = vpack.c.bf16 %v1421_v6, %v1421_v6  ;;  %v2495_v47 = vrot.slane %v1259_v42, 7  ;;  %v1262_v13 = vshll.u32 %v1237_v7, 16  ;;  %v928_v53 = vrot.slane %v2475_v50, 4 }
  0x57   : > { %1177 = vrot.lane.b32.xlu2 %v1114_v3, %s2065_s27  ;;  %v2488_v54 = vsel %vm698_vm5, %v2960_v52, %v2469_v12  ;;  %v935_v10 = vor.u32 %v933_v26, %v2400_v37  ;;  %v2499_v3 = vrot.slane %v1141_v20, 5  ;;  %v1138_v8 = vor.u32 %v1137_v40, %v2480_v22 }
  0x58   : > { %v671_v27 = vld [vmem:[#allocation2 + $0x20] sm:$0xf]  ;;  %v1448_v18 = vshll.u32 %v1430_v4, 16  ;;  %v2505_v43 = vpack.c.bf16 %v1230_v0, %v1230_v0  ;;  %v1240_v42 = vpack.c.bf16 %v1231_v14, %v1231_v14  ;;  %v2507_v7 = vpack.c.bf16 %v1422_v30, %v1422_v30 }
  0x59   : > { %v680_v57 = vunpack.c.l.bf16 %v671_v27  ;;  %v1452_v6 = vshrl.u32 %v1430_v4, 16  ;;  %v1264_v37 = vor.u32 %v1262_v13, %v2495_v47  ;;  %v1145_v40 = vshrl.u32 %v2463_v46, 16  ;;  %v622_v27 = vld [vmem:[#allocation2 + $0x20] sm:$0xf] }
  0x5a   : > { %v672_v55 = vld [vmem:[#allocation2 + $0x24] sm:$0x1]  ;;  %2961 = vst [vmem:[#allocation5_spill] sm:$0xff] %v2507_v7  ;;  %v936_v0 = vsel %vm2290_vm7, %v928_v53, %v935_v10  ;;  %vm2519_vm11 = vcmp.ge.s32.totalorder %v336_v17, 1  ;;  %v924_v13 = vshll.u32 %v2447_v60, 16  ;;  %v1277_v46 = vshrl.u32 %v2505_v43, 16 }
  0x5b   : > { %1320 = vrot.lane.b32.xlu1 %v1256_v49, %s2066_s28  ;;  %v2501_v33 = vld [vmem:[#allocation2 + $0x20] sm:$0xff]   ;;  %v681_v59 = vunpack.c.l.bf16 %v672_v55  ;;  %v730_v49 = vmul.f32 %v2488_v54, %v680_v57  ;;  %v1454_v30 = vrot.slane %v1452_v6, 4  ;;  %v1286_v55 = vshrl.u32 %v1240_v42, 16 }
  0x5c   : > { %643 = vrot.lane.b32.xlu0 %v621_v41, %s2061_s23  ;;  %v2509_v41 = vrot.slane %v1448_v18, 5  ;;  %v2514_v20 = vunpack.c.l.bf16 %v2501_v33  ;;  %v1458_v17 = vshll.u32 %v2507_v7, 16  ;;  %v1139_v53 = vrot.slane %v1138_v8, 4 }
  0x5d   : > { %v739_v26 = vpack.c.bf16 %v730_v49, %v730_v49  ;;  %v731_v52 = vmul.f32 %v2469_v12, %v681_v59  ;;  %v1265_v10 = vsel %vm2290_vm7, %v1257_v5, %v1264_v37  ;;  %v1147_v59 = vrot.slane %v1145_v40, 4  ;;  %v443_v40 = vld [vmem:[#allocation2] sm:$0x8] }
  0x5e   : > { %v1079_v57 = vmul.f32 %v2514_v20, %v2320_v45  ;;  %v1455_v18 = vor.u32 %v1454_v30, %v2509_v41  ;;  %v1232_v60 = vmul.f32 %v2514_v20, %v2253_v44  ;;  %v919_v30 = vrot.slane %v2286_v9, 4 }
  0x5f   : > { %1030 = vrot.lane.b32.xlu2 %v1010_v24, %s2062_s24  ;;  %v814_v4 = vshll.u32 %v739_v26, 16  ;;  %v818_v24 = vshrl.u32 %v739_v26, 16  ;;  %v740_v49 = vpack.c.bf16 %v731_v52, %v731_v52  ;;  %v926_v8 = vor.u32 %v924_v13, %v2475_v50 }
  0x60   : > { %v2538_v2 = vrot.slane %v1455_v18, 4  ;;  %v2541_v7 = vpack.c.bf16 %v1079_v57, %v1079_v57  ;;  %v2548_v5 = vrot.slane %v1286_v55, 7  ;;  %v1289_v37 = vshll.u32 %v1240_v42, 16  ;;  %v1353_v42 = vld [vmem:[#allocation2 + $0xc] sm:$0xf] }
  0x61   : > { %v2536_v6 = vrot.slane %v814_v4, 5  ;;  %v820_v26 = vrot.slane %v818_v24, 4  ;;  %v1148_v52 = vor.u32 %v1147_v59, %v2499_v3  ;;  %v1241_v4 = vpack.c.bf16 %v1232_v60, %v1232_v60  ;;  %v444_v55 = vld [vmem:[#allocation2 + $0x4] sm:$0xf] }
  0x62   : > { %v1839_v50 = vsel %vm2519_vm11, 1.0, %v2959_v61  ;;  %v1144_v24 = vsel %vm2276_vm4, %v1139_v53, %v2499_v3  ;;  %v824_v57 = vshll.u32 %v740_v49, 16  ;;  %v1151_v18 = vshll.u32 %v2541_v7, 16 }
  0x63   : > { %645 = vrot.lane.b32.xlu1 %v622_v27, %s2061_s23  ;;  %v2543_v27 = vrot.slane %v1458_v17, 5  ;;  %v821_v13 = vor.u32 %v820_v26, %v2536_v6  ;;  %v452_v17 = vunpack.c.l.bf16 %v443_v40  ;;  %v1291_v61 = vor.u32 %v1289_v37, %v2548_v5  ;;  %s208_s23 = scalar_lea.vmem %s2941_s4, %s1831_s19 }
  0x64   : > { %979 = vrot.lane.b32.xlu0 %v936_v0, %s2064_s26  ;;  %v2546_v0 = vrot.slane %v1277_v46, 7  ;;  %v808_v46 = vshrl.u32 %v2334_v51, 16  ;;  %v2569_v59 = vrot.slane %v1839_v50, 1  ;;  %v1149_v3 = vrot.slane %v1148_v52, 4 }
  0x65   : > { %v1461_v9 = vsel %vm2276_vm4, %v2538_v2, %v2543_v27  ;;  %v1295_v51 = vshrl.u32 %v1241_v4, 16  ;;  %v453_v53 = vunpack.c.l.bf16 %v444_v55  ;;  %v502_v60 = vmul.f32 %v2180_v56, %v452_v17 }
  0x66   : > { %v1284_v14 = vrot.slane %v2546_v0, 4  ;;  %v822_v49 = vrot.slane %v821_v13, 4  ;;  %v826_v26 = vrot.slane %v824_v57, 5  ;;  %v810_v40 = vrot.slane %v808_v46, 4 }
  0x67   : > { %1322 = vrot.lane.b32.xlu2 %v1265_v10, %s2066_s28  ;;  %v927_v10 = vsel %vm2290_vm7, %v919_v30, %v926_v8  ;;  %v506_v30 = vmul.f32 %v2361_v15, %v2371_v58  ;;  %v2576_v8 = vrot.slane %v1151_v18, 5  ;;  %v503_v37 = vmul.f32 %v2217_v25, %v453_v53  ;;  %v1402_v53 = vld [vmem:[#allocation2 + $0xc] sm:$0xf] }
  0x68   : > { %v511_v50 = vpack.c.bf16 %v502_v60, %v502_v60  ;;  %v1292_v52 = vsel %vm2290_vm7, %v1284_v14, %v1291_v61  ;;  %v1298_v56 = vshll.u32 %v1241_v4, 16  ;;  %v2964_v13 = vrot.slane %v2205_v23, 1 }
  0x69   : > { %v512_v15 = vpack.c.bf16 %v503_v37, %v503_v37  ;;  %v2591_v58 = vpack.c.bf16 %v506_v30, %v506_v30  ;;  %v827_v55 = vsel %vm2276_vm4, %v822_v49, %v826_v26  ;;  %v2595_v18 = vrot.slane %v1295_v51, 7 }
  0x6a   : > { %v2588_v57 = vsel %vm477_vm6, %v2964_v13, %v2569_v59  ;;  %v524_v25 = vshrl.u32 %v511_v50, 16  ;;  %v811_v4 = vor.u32 %v810_v40, %v2356_v48  ;;  %v504_v23 = vmul.f32 %v2230_v34, %v2227_v31 }
  0x6b   : > { %1183 = vrot.lane.b32.xlu1 %v1144_v24, %s2065_s27  ;;  %v507_v24 = vmul.f32 %v2340_v21, %v2239_v38  ;;  %v1354_v38 = vld [vmem:[#allocation2 + $0x10] sm:$0xf]  ;;  %v1154_v17 = vsel %vm2276_vm4, %v1149_v3, %v2576_v8  ;;  %v532_v14 = vshll.u32 %v512_v15, 16  ;;  %v556_v61 = vshrl.u32 %v2591_v58, 16 }
  0x6c   : > { %1369 = vrot.lane.b32.xlu0 %v1353_v42, %s2067_s29  ;;  %v1293_v42 = vrot.slane %v2548_v5, 4  ;;  %v886_v60 = vmul.f32 %v2514_v20, %v2588_v57  ;;  %v1848_v49 = vrot.slane %v524_v25, 11  ;;  %v508_v48 = vmul.f32 %v2280_v1, %v2253_v44 }
  0x6d   : > { %v516_v46 = vpack.c.bf16 %v507_v24, %v507_v24  ;;  %v558_v34 = vrot.slane %v556_v61, 7  ;;  %v513_v3 = vpack.c.bf16 %v504_v23, %v504_v23  ;;  %v1300_v40 = vor.u32 %v1298_v56, %v2595_v18  ;;  %v1008_v61 = vld [vmem:[#allocation2 + $0x10] sm:$0xf] }
  0x6e   : > { %v1076_v30 = vmul.f32 %v2340_v21, %v2385_v29  ;;  %v1411_v50 = vunpack.c.l.bf16 %v1402_v53  ;;  %v1115_v24 = vshrl.u32 %v2407_v39, 16  ;;  %v517_v25 = vpack.c.bf16 %v508_v48, %v508_v48 }
  0x6f   : > { %977 = vrot.lane.b32.xlu2 %v927_v10, %s2064_s26  ;;  %v529_v10 = vshrl.u32 %v512_v15, 16  ;;  %v565_v51 = vshrl.u32 %v516_v46, 16  ;;  %v568_v26 = vshll.u32 %v516_v46, 16  ;;  %v563_v15 = vrot.slane %v558_v34, 4 }
  0x70   : > { %v812_v46 = vrot.slane %v811_v4, 4  ;;  %v574_v1 = vshrl.u32 %v517_v25, 16  ;;  %v577_v56 = vshll.u32 %v517_v25, 16  ;;  %v541_v23 = vshll.u32 %v513_v3, 16 }
  0x71   : > { %v531_v31 = vrot.slane %v529_v10, 7  ;;  %v567_v37 = vrot.slane %v565_v51, 7  ;;  %v538_v10 = vshrl.u32 %v513_v3, 16  ;;  %v1420_v53 = vmul.f32 %v1411_v50, %v2146_v28 }
  0x72   : > { %v1117_v48 = vrot.slane %v1115_v24, 4  ;;  %vm655_vm6 = vcmask 126016   ;;  %vm852_vm12 = vcmask 191616   ;;  %vm997_vm13 = vcmask 257216  }
  0x73   : > { %1371 = vrot.lane.b32.xlu1 %v1354_v38, %s2067_s29  ;;  %v534_v13 = vor.u32 %v532_v14, %v531_v31  ;;  %v2614_v38 = vpack.c.bf16 %v886_v60, %v886_v60  ;;  %v536_v14 = vrot.slane %v531_v31, 4  ;;  %v540_v4 = vrot.slane %v538_v10, 7 }
  0x74   : > { %842 = vrot.lane.b32.xlu0 %v827_v55, %s2063_s25  ;;  %v570_v55 = vor.u32 %v568_v26, %v567_v37  ;;  %v1085_v60 = vpack.c.bf16 %v1076_v30, %v1076_v30  ;;  %v572_v51 = vrot.slane %v567_v37, 4  ;;  %v817_v26 = vsel %vm2276_vm4, %v812_v46, %v2536_v6 }
  0x75   : > { %v535_v44 = vsel %vm2290_vm7, %v1848_v49, %v534_v13  ;;  %v505_v49 = vmul.f32 %v2232_v36, %v2423_v63  ;;  %v543_v3 = vor.u32 %v541_v23, %v540_v4  ;;  %v1429_v13 = vpack.c.bf16 %v1420_v53, %v1420_v53 }
  0x76   : > { %607 = vst.msk [vmem:[#allocation3] sm:$0xf] %vm261_vm0, %v535_v44  ;;  %v571_v39 = vsel %vm2290_vm7, %v563_v15, %v570_v55  ;;  %v957_v28 = vshrl.u32 %v2614_v38, 16  ;;  %v559_v30 = vshll.u32 %v2591_v58, 16  ;;  %v2639_v6 = vunpack.c.h.bf16 %v2501_v33 }
  0x77   : > { %1185 = vrot.lane.b32.xlu2 %v1154_v17, %s2065_s27  ;;  %611 = vst.msk [vmem:[#allocation3 + $0x10] sm:$0xf] %vm261_vm0, %v571_v39  ;;  %v2624_v17 = vrot.slane %v574_v1, 7  ;;  %v514_v37 = vpack.c.bf16 %v505_v49, %v505_v49  ;;  %v544_v36 = vsel %vm2290_vm7, %v536_v14, %v543_v3  ;;  %v1439_v50 = vshrl.u32 %v1429_v13, 16 }
  0x78   : > { %v1442_v15 = vshll.u32 %v1429_v13, 16  ;;  %608 = vst.msk [vmem:[#allocation3 + $0x4] sm:$0xf] %vm261_vm0, %v544_v36  ;;  %v1118_v46 = vor.u32 %v1117_v48, %v2439_v16  ;;  %v1121_v55 = vshll.u32 %v1085_v60, 16  ;;  %v1125_v10 = vshrl.u32 %v1085_v60, 16 }
  0x79   : > { %v579_v31 = vor.u32 %v577_v56, %v2624_v17  ;;  %v547_v58 = vshrl.u32 %v514_v37, 16  ;;  %v550_v25 = vshll.u32 %v514_v37, 16  ;;  %v960_v33 = vshll.u32 %v2614_v38, 16 }
  0x7a   : > { %v561_v5 = vor.u32 %v559_v30, %v558_v34  ;;  %v2652_v44 = vrot.slane %v957_v28, 7  ;;  %v1441_v56 = vrot.slane %v1439_v50, 4  ;;  %v1444_v23 = vrot.slane %v1442_v15, 5 }
  0x7b   : > { %1026 = vrot.lane.b32.xlu1 %v1008_v61, %s2062_s24  ;;  %v580_v24 = vsel %vm2290_vm7, %v572_v51, %v579_v31  ;;  %v887_v16 = vmul.f32 %v2639_v6, %v2569_v59  ;;  %v1119_v14 = vrot.slane %v1118_v46, 4  ;;  %v1127_v53 = vrot.slane %v1125_v10, 4  ;;  %v1358_v10 = vld [vmem:[#allocation2 + $0x20] sm:$0xf] }
  0x7c   : > { %1328 = vrot.lane.b32.xlu0 %v1292_v52, %s2066_s28  ;;  %v1301_v52 = vsel %vm2290_vm7, %v1293_v42, %v1300_v40  ;;  %612 = vst.msk [vmem:[#allocation3 + $0x14] sm:$0xf] %vm261_vm0, %v580_v24  ;;  %v549_v42 = vrot.slane %v547_v58, 7  ;;  %v545_v40 = vrot.slane %v540_v4, 4  ;;  %v1123_v34 = vrot.slane %v1121_v55, 5  ;;  %v2688_v58 = vld [vmem:[#allocation2 + $0x18] sm:$0xff]  }
  0x7d   : > { %v1229_v38 = vmul.f32 %v2340_v21, %v2423_v63  ;;  %v955_v51 = vrot.slane %v2330_v62, 4  ;;  %v962_v49 = vor.u32 %v960_v33, %v2652_v44  ;;  %v1445_v48 = vor.u32 %v1444_v23, %v1441_v56 }
  0x7e   : > { %v554_v61 = vrot.slane %v549_v42, 4  ;;  %v552_v39 = vor.u32 %v550_v25, %v549_v42  ;;  %v896_v2 = vpack.c.bf16 %v887_v16, %v887_v16  ;;  %v1128_v21 = vor.u32 %v1127_v53, %v1123_v34 }
  0x7f   : > { %840 = vrot.lane.b32.xlu2 %v817_v26, %s2063_s25  ;;  %v1009_v26 = vld [vmem:[#allocation2 + $0x14] sm:$0xf]  ;;  %v1124_v63 = vsel %vm2276_vm4, %v1119_v14, %v1123_v34  ;;  %v1238_v3 = vpack.c.bf16 %v1229_v38, %v1229_v38  ;;  %v963_v62 = vsel %vm2290_vm7, %v955_v51, %v962_v49  ;;  %v1446_v28 = vrot.slane %v1445_v48, 4  ;;  %v1012_v38 = vld [vmem:[#allocation2 + $0x20] sm:$0xf] }
  0x80   : > { %v640_v1 = vpop.permute.xlu2 %639  ;;  %v562_v4 = vsel %vm2290_vm7, %v554_v61, %v561_v5  ;;  %v553_v60 = vsel %vm2290_vm7, %v545_v40, %v552_v39  ;;  %v966_v31 = vshrl.u32 %v896_v2, 16  ;;  %v1425_v30 = vmul.f32 %v2514_v20, %v2304_v19  ;;  %v1216_v40 = vld [vmem:[#allocation2 + $0x28] sm:$0xf] }
  0x81   : > { %660 = vst.msk [vmem:[#allocation3 + $0x10] sm:$0xf] %vm655_vm6, %v640_v1  ;;  %v1129_v37 = vrot.slane %v1128_v21, 4  ;;  %v1268_v36 = vshrl.u32 %v1238_v3, 16  ;;  %v1451_v50 = vsel %vm2276_vm4, %v1446_v28, %v2509_v41  ;;  %v1271_v25 = vshll.u32 %v1238_v3, 16 }
  0x82   : > { %610 = vst.msk [vmem:[#allocation3 + $0xc] sm:$0xf] %vm261_vm0, %v562_v4  ;;  %v968_v15 = vrot.slane %v966_v31, 7  ;;  %v1434_v24 = vpack.c.bf16 %v1425_v30, %v1425_v30  ;;  %v964_v46 = vrot.slane %v2652_v44, 4  ;;  %v1990_v55 = vunpack.c.h.bf16 %v2688_v58 }
  0x83   : > { %1330 = vrot.lane.b32.xlu1 %v1301_v52, %s2066_s28  ;;  %609 = vst.msk [vmem:[#allocation3 + $0x8] sm:$0xf] %vm261_vm0, %v553_v60  ;;  %v969_v52 = vshll.u32 %v896_v2, 16  ;;  %v1134_v19 = vsel %vm2276_vm4, %v1129_v37, %v2480_v22  ;;  %v1270_v20 = vrot.slane %v1268_v36, 7  ;;  %v1426_v41 = vmul.f32 %v2639_v6, %v2320_v45  ;;  %v1063_v37 = vld [vmem:[#allocation2 + $0x28] sm:$0x1] }
  0x84   : > { %1524 = vrot.lane.b32.xlu0 %v1461_v9, %s2068_s30  ;;  %v1488_v5 = vshll.u32 %v1434_v24, 16  ;;  %v1492_v42 = vshrl.u32 %v1434_v24, 16  ;;  %v1266_v22 = vrot.slane %v2495_v47, 4  ;;  %v1424_v56 = vmul.f32 %v1990_v55, %v2393_v32 }
  0x85   : > { %v971_v33 = vor.u32 %v969_v52, %v968_v15  ;;  %v1273_v1 = vor.u32 %v1271_v25, %v1270_v20  ;;  %v2704_v23 = vpack.c.bf16 %v1426_v41, %v1426_v41  ;;  %v1225_v14 = vunpack.c.l.bf16 %v1216_v40 }
  0x86   : > { %v632_v9 = vpop.permute.xlu0 %631  ;;  %v2706_v16 = vrot.slane %v1488_v5, 5  ;;  %v1494_v45 = vrot.slane %v1492_v42, 4  ;;  %v1280_v32 = vshll.u32 %v2505_v43, 16  ;;  %v1433_v34 = vpack.c.bf16 %v1424_v56, %v1424_v56  ;;  %v1013_v42 = vld [vmem:[#allocation2 + $0x24] sm:$0xf] }
  0x87   : > { %656 = vst.msk [vmem:[#allocation3] sm:$0xf] %vm655_vm6, %v632_v9  ;;  %1028 = vrot.lane.b32.xlu2 %v1009_v26, %s2062_s24  ;;  %v972_v44 = vsel %vm2290_vm7, %v964_v46, %v971_v33  ;;  %v1274_v47 = vsel %vm2290_vm7, %v1266_v22, %v1273_v1  ;;  %v1498_v60 = vshll.u32 %v2704_v23, 16  ;;  %v1080_v51 = vmul.f32 %v2639_v6, %v2488_v54 }
  0x88   : > { %v642_v13 = vpop.permute.xlu2 %641  ;;  %v1495_v4 = vor.u32 %v1494_v45, %v2706_v16  ;;  %v1155_v49 = vshrl.u32 %v2541_v7, 16  ;;  %v1233_v26 = vmul.f32 %v2639_v6, %v2588_v57  ;;  %v1234_v48 = vmul.f32 %v1225_v14, %v2569_v59 }
  0x89   : > { %661 = vst.msk [vmem:[#allocation3 + $0x14] sm:$0xf] %vm655_vm6, %v642_v13  ;;  %v1275_v43 = vrot.slane %v1270_v20, 4  ;;  %v1282_v2 = vor.u32 %v1280_v32, %v2546_v0  ;;  %v1478_v9 = vshll.u32 %v1433_v34, 16  ;;  %v1482_v21 = vshrl.u32 %v1433_v34, 16  ;;  %v2966_v32 = vld [vmem:[#allocation5_spill] sm:$0xff] }
  0x8a   : > { %v2728_v3 = vrot.slane %v1498_v60, 5  ;;  %v1089_v13 = vpack.c.bf16 %v1080_v51, %v1080_v51  ;;  %v1157_v7 = vrot.slane %v1155_v49, 4  ;;  %v2730_v6 = vpack.c.bf16 %v1233_v26, %v1233_v26  ;;  %v1409_v20 = vld [vmem:[#allocation2 + $0x28] sm:$0xf]  ;;  %v1410_v26 = vld [vmem:[#allocation2 + $0x2c] sm:$0x1] }
  0x8b   : > { %985 = vrot.lane.b32.xlu1 %v963_v62, %s2064_s26  ;;  %v1357_v62 = vld [vmem:[#allocation2 + $0x1c] sm:$0xf]  ;;  %v1243_v30 = vpack.c.bf16 %v1234_v48, %v1234_v48  ;;  %v1283_v0 = vsel %vm2290_vm7, %v1275_v43, %v1282_v2  ;;  %v2737_v36 = vrot.slane %v1478_v9, 5  ;;  %vm1046_vm14 = vcmask 322816   ;;  %v451_v9 = vld [vmem:[#allocation2 + $0x20] sm:$0xf] }
  0x8c   : > { %1179 = vrot.lane.b32.xlu0 %v1124_v63, %s2065_s27  ;;  %v1496_v63 = vrot.slane %v1495_v4, 4  ;;  %v1158_v52 = vor.u32 %v1157_v7, %v2576_v8  ;;  %v1161_v24 = vshll.u32 %v1089_v13, 16  ;;  %v1304_v46 = vshrl.u32 %v2730_v6, 16 }
  0x8d   : > { %v1313_v55 = vshrl.u32 %v1243_v30, 16  ;;  %v1418_v41 = vunpack.c.l.bf16 %v1409_v20  ;;  %v1165_v22 = vshrl.u32 %v1089_v13, 16  ;;  %v1462_v34 = vshrl.u32 %v2966_v32, 16 }
  0x8e   : > { %v1501_v15 = vsel %vm2276_vm4, %v1496_v63, %v2728_v3  ;;  %v1159_v8 = vrot.slane %v1158_v52, 4  ;;  %v1163_v5 = vrot.slane %v1161_v24, 5  ;;  %v1419_v13 = vunpack.c.l.bf16 %v1410_v26 }
  0x8f   : > { %1522 = vrot.lane.b32.xlu2 %v1451_v50, %s2068_s30  ;;  %v1484_v50 = vrot.slane %v1482_v21, 4  ;;  %v1315_v45 = vrot.slane %v1313_v55, 7  ;;  %v1427_v60 = vmul.f32 %v1418_v41, %v2488_v54  ;;  %v1167_v49 = vrot.slane %v1165_v22, 4 }
  0x90   : > { %v2713_v53 = vpop.permute.xlu2 %1024  ;;  %v1164_v51 = vsel %vm2276_vm4, %v1159_v8, %v1163_v5  ;;  %v1464_v63 = vrot.slane %v1462_v34, 4  ;;  %v581_v52 = vrot.slane %v2624_v17, 4  ;;  %vm1199_vm15 = vcmask 388416  }
  0x91   : > { %v1485_v33 = vor.u32 %v1484_v50, %v2737_v36  ;;  %v1436_v7 = vpack.c.bf16 %v1427_v60, %v1427_v60  ;;  %v1359_v60 = vld [vmem:[#allocation2 + $0x24] sm:$0xf]  ;;  %vm1344_vm1 = vcmask 454016   ;;  %vm1632_vm2 = vcmask 1043456  }
  0x92   : > { %vm1393_vm3 = vcmask 519616   ;;  %vm1681_vm8 = vcmask 64512   ;;  %vm1733_vm9 = vcmask 1041408  }
  0x93   : > { %1181 = vrot.lane.b32.xlu1 %v1134_v19, %s2065_s27  ;;  %v1072_v19 = vunpack.c.l.bf16 %v1063_v37  ;;  %v1486_v4 = vrot.slane %v1485_v33, 4  ;;  %v1508_v55 = vshll.u32 %v1436_v7, 16  ;;  %v1356_v33 = vld [vmem:[#allocation2 + $0x18] sm:$0xf] }
  0x94   : > { %1379 = vrot.lane.b32.xlu0 %v1358_v10, %s2067_s29  ;;  %v1989_v10 = vunpack.c.l.bf16 %v2688_v58  ;;  %v1316_v58 = vshll.u32 %v1243_v30, 16 }
  0x95   : > { %v2708_v61 = vpop.permute.xlu1 %1022  ;;  %v1081_v40 = vmul.f32 %v1072_v19, %v2469_v12  ;;  %v1465_v19 = vor.u32 %v1464_v63, %v2543_v27 }
  0x96   : > { %v634_v39 = vpop.permute.xlu0 %633  ;;  %v1318_v2 = vor.u32 %v1316_v58, %v1315_v45  ;;  %v1307_v58 = vshll.u32 %v2730_v6, 16 }
  0x97   : > { %657 = vst.msk [vmem:[#allocation3 + $0x4] sm:$0xf] %vm655_vm6, %v634_v39  ;;  %987 = vrot.lane.b32.xlu2 %v972_v44, %s2064_s26  ;;  %v2749_v44 = vrot.slane %v1304_v46, 7  ;;  %v2965_v39 = vld [vmem:[#allocation4_spill] sm:$0xff]  ;;  %v1428_v46 = vmul.f32 %v1419_v13, %v2469_v12 }
  0x98   : > { %v509_v14 = vmul.f32 %v2965_v39, %v2588_v57  ;;  %v1090_v57 = vpack.c.bf16 %v1081_v40, %v1081_v40  ;;  %v1466_v40 = vrot.slane %v1465_v19, 4 }
  0x99   : > { %v1311_v43 = vrot.slane %v2749_v44, 4  ;;  %v1437_v22 = vpack.c.bf16 %v1428_v46, %v1428_v46  ;;  %v1895_v46 = vld [vmem:[%s2939_s2] sm:$0xff] }
  0x9a   : > { %v1171_v30 = vshll.u32 %v1090_v57, 16  ;;  %v1309_v57 = vor.u32 %v1307_v58, %v2749_v44 }
  0x9b   : > { %1034 = vrot.lane.b32.xlu1 %v1012_v38, %s2062_s24  ;;  %v1355_v38 = vld [vmem:[#allocation2 + $0x14] sm:$0xf]  ;;  %v1319_v24 = vsel %vm2290_vm7, %v1311_v43, %v1318_v2  ;;  %v1502_v2 = vshrl.u32 %v2704_v23, 16 }
  0x9c   : > { %1324 = vrot.lane.b32.xlu0 %v1274_v47, %s2066_s28  ;;  %v1423_v47 = vmul.f32 %v1989_v10, %v2385_v29  ;;  %v518_v29 = vpack.c.bf16 %v509_v14, %v509_v14  ;;  %v1512_v10 = vshrl.u32 %v1436_v7, 16  ;;  %v1173_v41 = vrot.slane %v1171_v30, 5 }
  0x9d   : > { %v638_v28 = vpop.permute.xlu1 %637 }
  0x9e   : > { %v636_v31 = vpop.permute.xlu0 %635  ;;  %659 = vst.msk [vmem:[#allocation3 + $0xc] sm:$0xf] %vm655_vm6, %v638_v28  ;;  %v1432_v21 = vpack.c.bf16 %v1423_v47, %v1423_v47  ;;  %v583_v54 = vshrl.u32 %v518_v29, 16  ;;  %v586_v28 = vshll.u32 %v518_v29, 16  ;;  %v1514_v45 = vrot.slane %v1512_v10, 4 }
  0x9f   : > { %658 = vst.msk [vmem:[#allocation3 + $0x8] sm:$0xf] %vm655_vm6, %v636_v31  ;;  %1377 = vrot.lane.b32.xlu2 %v1357_v62, %s2067_s29  ;;  %v460_v62 = vunpack.c.l.bf16 %v451_v9  ;;  %v1168_v31 = vor.u32 %v1167_v49, %v1163_v5 }
  0xa0   : > { %v585_v37 = vrot.slane %v583_v54, 7  ;;  %v1472_v39 = vshrl.u32 %v1432_v21, 16  ;;  %v1504_v54 = vrot.slane %v1502_v2, 4 }
  0xa1   : > { %v982_v25 = vpop.permute.xlu2 %981 }
  0xa2   : > { %v588_v20 = vor.u32 %v586_v28, %v585_v37  ;;  %v590_v32 = vrot.slane %v585_v37, 4  ;;  %v1474_v49 = vrot.slane %v1472_v39, 4  ;;  %v1571_v28 = vld [vmem:[%s2939_s2 + $0x20] sm:$0xf] }
  0xa3   : > { %1326 = vrot.lane.b32.xlu1 %v1283_v0, %s2066_s28  ;;  %v510_v0 = vmul.f32 %v2569_v59, %v460_v62  ;;  %v1169_v59 = vrot.slane %v1168_v31, 4  ;;  %v1609_v30 = vunpack.c.l.b16 %v1571_v28 }
  0xa4   : > { %1532 = vrot.lane.b32.xlu0 %v1501_v15, %s2068_s30  ;;  %v589_v17 = vsel %vm2290_vm7, %v581_v52, %v588_v20  ;;  %v1898_v52 = vld [vmem:[%s2939_s2 + $0x18] sm:$0xff] }
  0xa5   : > { %v829_v1 = vpop.permute.xlu1 %828  ;;  %613 = vst.msk [vmem:[#allocation3 + $0x18] sm:$0xf] %vm261_vm0, %v589_v17 }
  0xa6   : > { %v974_v56 = vpop.permute.xlu0 %973  ;;  %853 = vst.msk [vmem:[#allocation3] sm:$0xf] %vm852_vm12, %v829_v1  ;;  %v2783_v1 = vrot.slane %v1508_v55, 5 }
  0xa7   : > { %998 = vst.msk [vmem:[#allocation3] sm:$0xf] %vm997_vm13, %v974_v56  ;;  %1036 = vrot.lane.b32.xlu2 %v1013_v42, %s2062_s24  ;;  %v1174_v56 = vsel %vm2276_vm4, %v1169_v59, %v1173_v41 }
  0xa8   : > { %1047 = vst.msk [vmem:[#allocation3] sm:$0xf] %vm1046_vm14, %v2708_v61  ;;  %v1491_v61 = vsel %vm2276_vm4, %v1486_v4, %v2706_v16  ;;  %v1468_v16 = vshll.u32 %v1432_v21, 16  ;;  %v1518_v4 = vshll.u32 %v1437_v22, 16  ;;  %v1515_v6 = vor.u32 %v1514_v45, %v2783_v1  ;;  %v1360_v21 = vld [vmem:[#allocation2 + $0x28] sm:$0xf] }
  0xa9   : > { %v837_v48 = vpop.permute.xlu2 %836 }
  0xaa   : > { %857 = vst.msk [vmem:[#allocation3 + $0x10] sm:$0xf] %vm852_vm12, %v837_v48  ;;  %v1470_v12 = vrot.slane %v1468_v16, 5  ;;  %v1520_v48 = vrot.slane %v1518_v4, 5 }
  0xab   : > { %1187 = vrot.lane.b32.xlu1 %v1164_v51, %s2065_s27  ;;  %1002 = vst.msk [vmem:[#allocation3 + $0x10] sm:$0xf] %vm997_vm13, %v982_v25  ;;  %v519_v25 = vpack.c.bf16 %v510_v0, %v510_v0  ;;  %v1302_v51 = vrot.slane %v2595_v18, 4  ;;  %v1516_v18 = vrot.slane %v1515_v6, 4 }
  0xac   : > { %1373 = vrot.lane.b32.xlu0 %v1355_v38, %s2067_s29  ;;  %v1471_v38 = vsel %vm2276_vm4, %v1466_v40, %v1470_v12  ;;  %v1475_v43 = vor.u32 %v1474_v49, %v1470_v12 }
  0xad   : > { %v976_v50 = vpop.permute.xlu1 %975  ;;  %v592_v8 = vshrl.u32 %v519_v25, 16  ;;  %v595_v42 = vshll.u32 %v519_v25, 16  ;;  %v1310_v44 = vsel %vm2290_vm7, %v1302_v51, %v1309_v57  ;;  %v1521_v63 = vsel %vm2276_vm4, %v1516_v18, %v1520_v48  ;;  %v1896_v25 = vld [vmem:[%s2939_s2 + $0x8] sm:$0xff] }
  0xae   : > { %v984_v15 = vpop.permute.xlu0 %983  ;;  %v1476_v11 = vrot.slane %v1475_v43, 4 }
  0xaf   : > { %1530 = vrot.lane.b32.xlu2 %v1491_v61, %s2068_s30  ;;  %v594_v27 = vrot.slane %v592_v8, 7  ;;  %v1505_v61 = vor.u32 %v1504_v54, %v2728_v3 }
  0xb0   : > { %v1481_v23 = vsel %vm2276_vm4, %v1476_v11, %v2737_v36  ;;  %v1614_v36 = vpack.c.b16 %v1609_v30, %v1609_v30 }
  0xb1   : > { %v1178_v5 = vpop.permute.xlu2 %1177  ;;  %v597_v34 = vor.u32 %v595_v42, %v594_v27  ;;  %v1506_v31 = vrot.slane %v1505_v61, 4 }
  0xb2   : > { %v1634_v0 = vsel %vm1632_vm2, %v1614_v36, 0 }
  0xb3   : > { %1375 = vrot.lane.b32.xlu1 %v1356_v33, %s2067_s29  ;;  %v598_v29 = vsel %vm2290_vm7, %v590_v32, %v597_v34  ;;  %v1511_v3 = vsel %vm2276_vm4, %v1506_v31, %v2783_v1  ;;  %1639 = vmatpush.bf16.msra.mxu0 %v1634_v0  ;;  %vm1546_vm4 = vcmask 585216   ;;  %vm1619_vm7 = vcmask 588800  }
  0xb4   : > { %1334 = vrot.lane.b32.xlu0 %v1319_v24, %s2066_s28  ;;  %614 = vst.msk [vmem:[#allocation3 + $0x1c] sm:$0xf] %vm261_vm0, %v598_v29  ;;  %2019 = vmatpush.bf16.msra.mxu2 %v1634_v0 }
  0xb5   : > { %v831_v14 = vpop.permute.xlu1 %830  ;;  %2018 = vmatpush.bf16.msra.mxu1 %v1634_v0  ;;  %2020 = vmatpush.bf16.msra.mxu3 %v1634_v0 }
  0xb6   : > { %v839_v47 = vpop.permute.xlu0 %838  ;;  %854 = vst.msk [vmem:[#allocation3 + $0x4] sm:$0xf] %vm852_vm12, %v831_v14 }
  0xb7   : > { %999 = vst.msk [vmem:[#allocation3 + $0x4] sm:$0xf] %vm997_vm13, %v976_v50  ;;  %1189 = vrot.lane.b32.xlu2 %v1174_v56, %s2065_s27  ;;  %1640 = vmatpush.bf16.msra.mxu0 %v1898_v52 }
  0xb8   : > { %858 = vst.msk [vmem:[#allocation3 + $0x14] sm:$0xf] %vm852_vm12, %v839_v47  ;;  %2022 = vmatpush.bf16.msra.mxu2 %v1898_v52 }
  0xb9   : > { %1003 = vst.msk [vmem:[#allocation3 + $0x14] sm:$0xf] %vm997_vm13, %v984_v15  ;;  %v1031_v26 = vpop.permute.xlu2 %1030  ;;  %2021 = vmatpush.bf16.msra.mxu1 %v1898_v52  ;;  %2023 = vmatpush.bf16.msra.mxu3 %v1898_v52 }
  0xba   : > { %1048 = vst.msk [vmem:[#allocation3 + $0x4] sm:$0xf] %vm1046_vm14, %v2713_v53 }
  0xbb   : > { %1526 = vrot.lane.b32.xlu1 %v1471_v38, %s2068_s30  ;;  %1201 = vst.msk [vmem:[#allocation3 + $0x4] sm:$0xf] %vm1199_vm15, %v1178_v5  ;;  %1641 = vmatpush.bf16.msra.mxu0 %v1897_v35 }
  0xbc   : > { %1381 = vrot.lane.b32.xlu0 %v1359_v60, %s2067_s29  ;;  %1051 = vst.msk [vmem:[#allocation3 + $0x10] sm:$0xf] %vm1046_vm14, %v1031_v26  ;;  %2025 = vmatpush.bf16.msra.mxu2 %v1897_v35 }
  0xbd   : > { %v1176_v53 = vpop.permute.xlu1 %1175  ;;  %2024 = vmatpush.bf16.msra.mxu1 %v1897_v35  ;;  %2026 = vmatpush.bf16.msra.mxu3 %v1897_v35 }
  0xbe   : > { %v833_v9 = vpop.permute.xlu0 %832  ;;  %1200 = vst.msk [vmem:[#allocation3] sm:$0xf] %vm1199_vm15, %v1176_v53 }
  0xbf   : > { %855 = vst.msk [vmem:[#allocation3 + $0x8] sm:$0xf] %vm852_vm12, %v833_v9  ;;  %1332 = vrot.lane.b32.xlu2 %v1310_v44, %s2066_s28  ;;  %1642 = vmatpush.bf16.msra.mxu0 %v1896_v25 }
  0xc0   : > { %2028 = vmatpush.bf16.msra.mxu2 %v1896_v25 }
  0xc1   : > { %v1323_v62 = vpop.permute.xlu2 %1322  ;;  %2027 = vmatpush.bf16.msra.mxu1 %v1896_v25  ;;  %2029 = vmatpush.bf16.msra.mxu3 %v1896_v25 }
  0xc2   : > { %1346 = vst.msk [vmem:[#allocation3 + $0x4] sm:$0xf] %vm1344_vm1, %v1323_v62 }
  0xc3   : > { %1383 = vrot.lane.b32.xlu1 %v1360_v21, %s2067_s29  ;;  %1643 = vmatpush.bf16.msra.mxu0 %v1895_v46 }
  0xc4   : > { %1536 = vrot.lane.b32.xlu0 %v1521_v63, %s2068_s30  ;;  %2031 = vmatpush.bf16.msra.mxu2 %v1895_v46 }
  0xc5   : > { %v835_v13 = vpop.permute.xlu1 %834  ;;  %2030 = vmatpush.bf16.msra.mxu1 %v1895_v46  ;;  %2032 = vmatpush.bf16.msra.mxu3 %v1895_v46 }
  0xc6   : > { %v1033_v7 = vpop.permute.xlu0 %1032  ;;  %856 = vst.msk [vmem:[#allocation3 + $0xc] sm:$0xf] %vm852_vm12, %v835_v13 }
  0xc7   : > { %1052 = vst.msk [vmem:[#allocation3 + $0x14] sm:$0xf] %vm1046_vm14, %v1033_v7  ;;  %1528 = vrot.lane.b32.xlu2 %v1481_v23, %s2068_s30 }
  0xc9   : > { %v978_v37 = vpop.permute.xlu2 %977 }
  0xca   : > { %1000 = vst.msk [vmem:[#allocation3 + $0x8] sm:$0xf] %vm997_vm13, %v978_v37 }
  0xcd   : > { %v1321_v50 = vpop.permute.xlu1 %1320 }
  0xce   : > { %v644_v15 = vpop.permute.xlu0 %643  ;;  %1345 = vst.msk [vmem:[#allocation3] sm:$0xf] %vm1344_vm1, %v1321_v50 }
  0xcf   : > { %662 = vst.msk [vmem:[#allocation3 + $0x18] sm:$0xf] %vm655_vm6, %v644_v15  ;;  %1534 = vrot.lane.b32.xlu2 %v1511_v3, %s2068_s30 }
  0xd1   : > { %v1186_v24 = vpop.permute.xlu2 %1185 }
  0xd2   : > { %1205 = vst.msk [vmem:[#allocation3 + $0x14] sm:$0xf] %vm1199_vm15, %v1186_v24 }
  0xd5   : > { %v646_v19 = vpop.permute.xlu1 %645 }
  0xd6   : > { %v980_v20 = vpop.permute.xlu0 %979  ;;  %663 = vst.msk [vmem:[#allocation3 + $0x1c] sm:$0xf] %vm655_vm6, %v646_v19 }
  0xd7   : > { %1001 = vst.msk [vmem:[#allocation3 + $0xc] sm:$0xf] %vm997_vm13, %v980_v20 }
  0xd9   : > { %v841_v16 = vpop.permute.xlu2 %840 }
  0xda   : > { %859 = vst.msk [vmem:[#allocation3 + $0x18] sm:$0xf] %vm852_vm12, %v841_v16 }
  0xdd   : > { %v1184_v55 = vpop.permute.xlu1 %1183 }
  0xde   : > { %v1370_v10 = vpop.permute.xlu0 %1369  ;;  %1204 = vst.msk [vmem:[#allocation3 + $0x10] sm:$0xf] %vm1199_vm15, %v1184_v55 }
  0xdf   : > { %1394 = vst.msk [vmem:[#allocation3] sm:$0xf] %vm1393_vm3, %v1370_v10 }
  0xe1   : > { %v1029_v33 = vpop.permute.xlu2 %1028 }
  0xe2   : > { %1050 = vst.msk [vmem:[#allocation3 + $0xc] sm:$0xf] %vm1046_vm14, %v1029_v33 }
  0xe5   : > { %v1372_v59 = vpop.permute.xlu1 %1371 }
  0xe6   : > { %v843_v41 = vpop.permute.xlu0 %842  ;;  %1395 = vst.msk [vmem:[#allocation3 + $0x4] sm:$0xf] %vm1393_vm3, %v1372_v59 }
  0xe7   : > { %860 = vst.msk [vmem:[#allocation3 + $0x1c] sm:$0xf] %vm852_vm12, %v843_v41 }
  0xe9   : > { %v1523_v17 = vpop.permute.xlu2 %1522 }
  0xea   : > { %1547 = vst.msk [vmem:[#allocation3] sm:$0xf] %vm1546_vm4, %v1523_v17 }
  0xed   : > { %v1027_v8 = vpop.permute.xlu1 %1026 }
  0xee   : > { %v1329_v5 = vpop.permute.xlu0 %1328  ;;  %1049 = vst.msk [vmem:[#allocation3 + $0x8] sm:$0xf] %vm1046_vm14, %v1027_v8 }
  0xef   : > { %1349 = vst.msk [vmem:[#allocation3 + $0x10] sm:$0xf] %vm1344_vm1, %v1329_v5 }
  0xf1   : > { %v988_v27 = vpop.permute.xlu2 %987 }
  0xf2   : > { %1005 = vst.msk [vmem:[#allocation3 + $0x1c] sm:$0xf] %vm997_vm13, %v988_v27 }
  0xf5   : > { %v1331_v42 = vpop.permute.xlu1 %1330 }
  0xf6   : > { %v1525_v40 = vpop.permute.xlu0 %1524  ;;  %1350 = vst.msk [vmem:[#allocation3 + $0x14] sm:$0xf] %vm1344_vm1, %v1331_v42 }
  0xf7   : > { %1548 = vst.msk [vmem:[#allocation3 + $0x4] sm:$0xf] %vm1546_vm4, %v1525_v40 }
  0xf9   : > { %v1378_v12 = vpop.permute.xlu2 %1377 }
  0xfa   : > { %1398 = vst.msk [vmem:[#allocation3 + $0x10] sm:$0xf] %vm1393_vm3, %v1378_v12 }
  0xfd   : > { %v986_v22 = vpop.permute.xlu1 %985 }
  0xfe   : > { %v1180_v1 = vpop.permute.xlu0 %1179  ;;  %1004 = vst.msk [vmem:[#allocation3 + $0x18] sm:$0xf] %vm997_vm13, %v986_v22  ;;  %v1891_v56 = vld [vmem:[#allocation3] sm:$0xff] }
  0xff   : > { %1202 = vst.msk [vmem:[#allocation3 + $0x8] sm:$0xf] %vm1199_vm15, %v1180_v1  ;;  %1883 = vmatmul.msk.bf16.vlgmr.msra.gmra.mxu0 %vm1619_vm7, %v1891_v56 }
 0x101   : > { %v1037_v45 = vpop.permute.xlu2 %1036 }
 0x102   : > { %1054 = vst.msk [vmem:[#allocation3 + $0x1c] sm:$0xf] %vm1046_vm14, %v1037_v45 }
 0x105   : > { %v1182_v58 = vpop.permute.xlu1 %1181 }
 0x106   : > { %v1380_v39 = vpop.permute.xlu0 %1379  ;;  %1203 = vst.msk [vmem:[#allocation3 + $0xc] sm:$0xf] %vm1199_vm15, %v1182_v58 }
 0x107   : > { %1399 = vst.msk [vmem:[#allocation3 + $0x14] sm:$0xf] %vm1393_vm3, %v1380_v39 }
 0x109   : > { %v1531_v14 = vpop.permute.xlu2 %1530 }
 0x10a   : > { %1551 = vst.msk [vmem:[#allocation3 + $0x10] sm:$0xf] %vm1546_vm4, %v1531_v14 }
 0x10d   : > { %v1035_v47 = vpop.permute.xlu1 %1034 }
 0x10e   : > { %v1325_v32 = vpop.permute.xlu0 %1324  ;;  %1053 = vst.msk [vmem:[#allocation3 + $0x18] sm:$0xf] %vm1046_vm14, %v1035_v47 }
 0x10f   : > { %1347 = vst.msk [vmem:[#allocation3 + $0x8] sm:$0xf] %vm1344_vm1, %v1325_v32 }
 0x111   : > { %v1190_v34 = vpop.permute.xlu2 %1189 }
 0x112   : > { %1207 = vst.msk [vmem:[#allocation3 + $0x1c] sm:$0xf] %vm1199_vm15, %v1190_v34 }
 0x115   : > { %v1327_v38 = vpop.permute.xlu1 %1326 }
 0x116   : > { %v1533_v4 = vpop.permute.xlu0 %1532  ;;  %1348 = vst.msk [vmem:[#allocation3 + $0xc] sm:$0xf] %vm1344_vm1, %v1327_v38 }
 0x117   : > { %1552 = vst.msk [vmem:[#allocation3 + $0x14] sm:$0xf] %vm1546_vm4, %v1533_v4 }
 0x119   : > { %v1333_v60 = vpop.permute.xlu2 %1332 }
 0x11d   : > { %v1188_v6 = vpop.permute.xlu1 %1187 }
 0x11e   : > { %v1374_v51 = vpop.permute.xlu0 %1373  ;;  %1206 = vst.msk [vmem:[#allocation3 + $0x18] sm:$0xf] %vm1199_vm15, %v1188_v6  ;;  %v1893_v57 = vld [vmem:[#allocation3 + $0x10] sm:$0xff] }
 0x11f   : > { %1396 = vst.msk [vmem:[#allocation3 + $0x8] sm:$0xf] %vm1393_vm3, %v1374_v51  ;;  %1885 = vmatmul.msk.bf16.vlgmr.msra.gmra.mxu2 %vm1619_vm7, %v1893_v57 }
 0x120   : > { %1351 = vst.msk [vmem:[#allocation3 + $0x18] sm:$0xf] %vm1344_vm1, %v1333_v60 }
 0x121   : > { %v1529_v49 = vpop.permute.xlu2 %1528 }
 0x125   : > { %v1376_v26 = vpop.permute.xlu1 %1375 }
 0x126   : > { %v1335_v29 = vpop.permute.xlu0 %1334  ;;  %1397 = vst.msk [vmem:[#allocation3 + $0xc] sm:$0xf] %vm1393_vm3, %v1376_v26 }
 0x127   : > { %1352 = vst.msk [vmem:[#allocation3 + $0x1c] sm:$0xf] %vm1344_vm1, %v1335_v29 }
 0x128   : > { %1550 = vst.msk [vmem:[#allocation3 + $0xc] sm:$0xf] %vm1546_vm4, %v1529_v49 }
 0x129   : > { %v1535_v48 = vpop.permute.xlu2 %1534 }
 0x12d   : > { %v1527_v18 = vpop.permute.xlu1 %1526 }
 0x12e   : > { %v1382_v44 = vpop.permute.xlu0 %1381  ;;  %1549 = vst.msk [vmem:[#allocation3 + $0x8] sm:$0xf] %vm1546_vm4, %v1527_v18 }
 0x12f   : > { %1400 = vst.msk [vmem:[#allocation3 + $0x18] sm:$0xf] %vm1393_vm3, %v1382_v44 }
 0x130   : > { %1553 = vst.msk [vmem:[#allocation3 + $0x18] sm:$0xf] %vm1546_vm4, %v1535_v48 }
 0x135   : > { %v1384_v43 = vpop.permute.xlu1 %1383  ;;  %v1892_v53 = vld [vmem:[#allocation3 + $0x8] sm:$0xff] }
 0x136   : > { %v1537_v2 = vpop.permute.xlu0 %1536  ;;  %1401 = vst.msk [vmem:[#allocation3 + $0x1c] sm:$0xf] %vm1393_vm3, %v1384_v43  ;;  %1884 = vmatmul.msk.bf16.vlgmr.msra.gmra.mxu1 %vm1619_vm7, %v1892_v53 }
 0x137   : > { %1554 = vst.msk [vmem:[#allocation3 + $0x1c] sm:$0xf] %vm1546_vm4, %v1537_v2 }
 0x13e   : > { %v1894_v9 = vld [vmem:[#allocation3 + $0x18] sm:$0xff] }
 0x13f   : > { %1886 = vmatmul.msk.bf16.vlgmr.msra.gmra.mxu3 %vm1619_vm7, %v1894_v9 }
 0x17c   : > { %v1645_v21 = vpop.f32.mrf.mxu0 }
 0x17d   : > { %v1665_v63 = vpack.c.bf16 %v1645_v21, %v1645_v21  ;;  %v1703_v30 = vmul.f32 %v1645_v21, %v1645_v21  ;;  %v1682_v0 = vsel %vm1681_vm8, %v1645_v21, 0.0 }
 0x17f   : > { %1673 = vst.msk [vmem:[%s2894_s20] sm:$0xf] %vm261_vm0, %v1665_v63  ;;  %v1711_v15 = vsel %vm1681_vm8, %v1703_v30, 0.0 }
 0x184   : > { %v1647_v11 = vpop.f32.mrf.mxu0 }
 0x185   : > { %v1666_v54 = vpack.c.bf16 %v1647_v11, %v1647_v11  ;;  %v1704_v28 = vmul.f32 %v1647_v11, %v1647_v11  ;;  %v1683_v37 = vsel %vm1681_vm8, %v1647_v11, 0.0 }
 0x186   : > { %v1684_v52 = vadd.f32 %v1683_v37, %v1682_v0 }
 0x187   : > { %1674 = vst.msk [vmem:[%s2894_s20 + $0x4] sm:$0xf] %vm261_vm0, %v1666_v54  ;;  %v1712_v3 = vsel %vm1681_vm8, %v1704_v28, 0.0 }
 0x188   : > { %v1713_v24 = vadd.f32 %v1712_v3, %v1711_v15 }
 0x1a2   : > { %v1655_v62 = vpop.f32.mrf.mxu2 }
 0x1a3   : > { %v1669_v23 = vpack.c.bf16 %v1655_v62, %v1655_v62  ;;  %v1707_v59 = vmul.f32 %v1655_v62, %v1655_v62  ;;  %v1689_v17 = vsel %vm1681_vm8, %v1655_v62, 0.0 }
 0x1a5   : > { %1677 = vst.msk [vmem:[%s2894_s20 + $0x10] sm:$0xf] %vm261_vm0, %v1669_v23  ;;  %v1718_v27 = vsel %vm1681_vm8, %v1707_v59, 0.0 }
 0x1aa   : > { %v1657_v61 = vpop.f32.mrf.mxu2 }
 0x1ab   : > { %v1670_v13 = vpack.c.bf16 %v1657_v61, %v1657_v61  ;;  %v1708_v42 = vmul.f32 %v1657_v61, %v1657_v61  ;;  %v1691_v22 = vsel %vm1681_vm8, %v1657_v61, 0.0 }
 0x1ad   : > { %1678 = vst.msk [vmem:[%s2894_s20 + $0x14] sm:$0xf] %vm261_vm0, %v1670_v13  ;;  %v1720_v45 = vsel %vm1681_vm8, %v1708_v42, 0.0 }
 0x1b3   : > { %v1650_v7 = vpop.f32.mrf.mxu1 }
 0x1b4   : > { %v1667_v31 = vpack.c.bf16 %v1650_v7, %v1650_v7  ;;  %v1705_v36 = vmul.f32 %v1650_v7, %v1650_v7  ;;  %v1685_v50 = vsel %vm1681_vm8, %v1650_v7, 0.0 }
 0x1b5   : > { %v1686_v20 = vadd.f32 %v1685_v50, %v1684_v52 }
 0x1b6   : > { %1675 = vst.msk [vmem:[%s2894_s20 + $0x8] sm:$0xf] %vm261_vm0, %v1667_v31  ;;  %v1714_v35 = vsel %vm1681_vm8, %v1705_v36, 0.0 }
 0x1b7   : > { %v1715_v55 = vadd.f32 %v1714_v35, %v1713_v24 }
 0x1bb   : > { %v1652_v19 = vpop.f32.mrf.mxu1 }
 0x1bc   : > { %v1668_v25 = vpack.c.bf16 %v1652_v19, %v1652_v19  ;;  %v1687_v16 = vsel %vm1681_vm8, %v1652_v19, 0.0  ;;  %v1706_v46 = vmul.f32 %v1652_v19, %v1652_v19 }
 0x1bd   : > { %v1688_v10 = vadd.f32 %v1687_v16, %v1686_v20 }
 0x1be   : > { %1676 = vst.msk [vmem:[%s2894_s20 + $0xc] sm:$0xf] %vm261_vm0, %v1668_v25  ;;  %v1716_v33 = vsel %vm1681_vm8, %v1706_v46, 0.0 }
 0x1bf   : > { %v1717_v41 = vadd.f32 %v1716_v33, %v1715_v55  ;;  %v1690_v8 = vadd.f32 %v1689_v17, %v1688_v10 }
 0x1c1   : > { %v1719_v12 = vadd.f32 %v1718_v27, %v1717_v41  ;;  %v1692_v56 = vadd.f32 %v1691_v22, %v1690_v8 }
 0x1c2   : > { %v1660_v5 = vpop.f32.mrf.mxu3 }
 0x1c3   : > { %v1671_v40 = vpack.c.bf16 %v1660_v5, %v1660_v5  ;;  %v1709_v1 = vmul.f32 %v1660_v5, %v1660_v5  ;;  %v1693_v58 = vsel %vm1681_vm8, %v1660_v5, 0.0  ;;  %v1721_v39 = vadd.f32 %v1720_v45, %v1719_v12 }
 0x1c4   : > { %v1694_v47 = vadd.f32 %v1693_v58, %v1692_v56 }
 0x1c5   : > { %1679 = vst.msk [vmem:[%s2894_s20 + $0x18] sm:$0xf] %vm261_vm0, %v1671_v40  ;;  %v1722_v14 = vsel %vm1681_vm8, %v1709_v1, 0.0 }
 0x1c6   : > { %v1723_v60 = vadd.f32 %v1722_v14, %v1721_v39 }
 0x1ca   : > { %v1662_v32 = vpop.f32.mrf.mxu3 }
 0x1cb   : > { %v1672_v34 = vpack.c.bf16 %v1662_v32, %v1662_v32  ;;  %v1695_v38 = vsel %vm1681_vm8, %v1662_v32, 0.0  ;;  %v1710_v4 = vmul.f32 %v1662_v32, %v1662_v32 }
 0x1cc   : > { %v1696_v6 = vadd.f32 %v1695_v38, %v1694_v47 }
 0x1cd   : > { %1680 = vst.msk [vmem:[%s2894_s20 + $0x1c] sm:$0xf] %vm261_vm0, %v1672_v34  ;;  %v1724_v51 = vsel %vm1681_vm8, %v1710_v4, 0.0 }
 0x1ce   : > { %v1697_v57 = vrot.slane %v1696_v6, 4  ;;  %v1725_v49 = vadd.f32 %v1724_v51, %v1723_v60 }
 0x1d0   : > { %v1698_v26 = vadd.f32 %v1697_v57, %v1696_v6  ;;  %v1726_v29 = vrot.slane %v1725_v49, 4 }
 0x1d2   : > { %v1699_v48 = vrot.slane %v1698_v26, 2  ;;  %v1727_v18 = vadd.f32 %v1726_v29, %v1725_v49 }
 0x1d4   : > { %v1700_v44 = vadd.f32 %v1699_v48, %v1698_v26  ;;  %v1728_v43 = vrot.slane %v1727_v18, 2 }
 0x1d6   : > { %v1701_v2 = vrot.slane %v1700_v44, 1  ;;  %v1729_v53 = vadd.f32 %v1728_v43, %v1727_v18 }
 0x1d8   : > { %v1730_v9 = vrot.slane %v1729_v53, 1  ;;  %v1702_v21 = vadd.f32 %v1701_v2, %v1700_v44 }
 0x1da   : > { %v1731_v63 = vadd.f32 %v1730_v9, %v1729_v53 }
 0x1dc   : > { %v1732_v11 = vsel %vm698_vm5, %v1702_v21, %v1731_v63 }
 0x1dd   : > { %v1734_v54 = vsel %vm1733_vm9, %v1732_v11, 0.0 }
 0x1de   : > { %1735 = vst.msk [vmem:[%s208_s23] sm:$0xff] %vm1681_vm8, %v1734_v54 }
 0x1df PF: > { %s15_s15 = sadd.s32 1, %s2057_s15  }
 0x1e0   : > { %p12_p4 = scmp.ge.s32.totalorder %s15_s15, 4  }
 0x1e2   :  { %14 = sbr.rel (!%p12_p4) target bundleno = 1 (0x1), region = 74 }

</bundles_post_ra>
